<compile_context>
chip_gen: v7x
topology: tpu7x:2x2x1
jax: 0.10.0
libtpu: 0.0.40
codegen_flags: <defaults>
</compile_context>

<pallas_src>
import functools

import numpy as np
import jax
import jax.numpy as jnp
from jax import lax
from jax.experimental import pallas as pl
from jax.experimental.pallas import tpu as pltpu


# ----------------------------- in-kernel conv helpers -----------------------------

def _conv1d(w_ref, b_ref, x, *, stride, pad, relu):
    """Conv1d on a VMEM-resident activation.

    w_ref: (K, Cout, Cin) weight ref (torch (Cout, Cin, K) transposed to (K, Cout, Cin))
    b_ref: (Cout, 1) bias ref
    x:     (Cin, L) f32 value
    """
    K, Cout, Cin = w_ref.shape
    _, L = x.shape
    if pad:
        zpad = jnp.zeros((Cin, pad), jnp.float32)
        xp = jnp.concatenate([zpad, x, zpad], axis=1)
    else:
        xp = x
    Lp = L + 2 * pad
    Lfull = Lp - K + 1                       # stride-1 output length
    acc = jnp.zeros((Cout, Lfull), jnp.float32)
    for k in range(K):                       # in-kernel im2col: K shifted-slice matmuls
        acc = acc + jnp.dot(w_ref[k], xp[:, k:k + Lfull],
                            preferred_element_type=jnp.float32)
    if stride > 1:                           # downsample via a tiny selection matmul
        Lout = (Lp - K) // stride + 1
        rows = lax.broadcasted_iota(jnp.int32, (Lfull, Lout), 0)
        cols = lax.broadcasted_iota(jnp.int32, (Lfull, Lout), 1)
        sel = jnp.where(rows == stride * cols, jnp.float32(1.0), jnp.float32(0.0))
        acc = jnp.dot(acc, sel, preferred_element_type=jnp.float32)
    acc = acc + b_ref[...]
    if relu:
        acc = jnp.maximum(acc, 0.0)
    return acc


def _conv_transpose1d(w_ref, b_ref, x, *, stride, pad, output_pad, relu):
    """ConvTranspose1d on a VMEM-resident activation.

    w_ref holds the *equivalent direct conv* weight (K, Cout, Cin), i.e. the torch
    (Cin, Cout, K) weight flipped along K and (Cin, Cout)-transposed at setup time.
    Zero-dilation is done with a tiny (L, (L-1)*s+1) selection matmul on the MXU.
    """
    K, Cout, Cin = w_ref.shape
    _, L = x.shape
    if stride > 1:
        Ld = (L - 1) * stride + 1
        rows = lax.broadcasted_iota(jnp.int32, (L, Ld), 0)
        cols = lax.broadcasted_iota(jnp.int32, (L, Ld), 1)
        dil = jnp.where(cols == stride * rows, jnp.float32(1.0), jnp.float32(0.0))
        xd = jnp.dot(x, dil, preferred_element_type=jnp.float32)   # (Cin, Ld)
    else:
        Ld = L
        xd = x
    pad_l = K - 1 - pad
    pad_r = K - 1 - pad + output_pad
    parts = []
    if pad_l:
        parts.append(jnp.zeros((Cin, pad_l), jnp.float32))
    parts.append(xd)
    if pad_r:
        parts.append(jnp.zeros((Cin, pad_r), jnp.float32))
    xp = jnp.concatenate(parts, axis=1) if len(parts) > 1 else xd
    Lout = Ld + pad_l + pad_r - K + 1
    acc = jnp.zeros((Cout, Lout), jnp.float32)
    for k in range(K):
        acc = acc + jnp.dot(w_ref[k], xp[:, k:k + Lout],
                            preferred_element_type=jnp.float32)
    acc = acc + b_ref[...]
    if relu:
        acc = jnp.maximum(acc, 0.0)
    return acc


# ----------------------------- fused forward kernel -----------------------------

def _make_fused_kernel(*, num_class, num_reg, n_levels,
                       enc_neg_half_over_s2, dec_neg_half_over_s2):
    """One grid step == one batch element: encoder(s) -> UNet -> decoder(s)."""
    num_out = num_class + num_reg
    head_sizes = [1] * num_class + [2] * num_reg
    head_offsets = []
    off = 0
    for c in head_sizes:
        head_offsets.append(off)
        off += c

    def kernel(*refs):
        it = iter(refs)
        g_ref = next(it)
        ctx = [(next(it), next(it), next(it)) for _ in range(num_out)]   # (xc, ys, xt)
        w_init, b_init = next(it), next(it)
        before = [(next(it), next(it)) for _ in range(n_levels)]
        after = [(next(it), next(it)) for _ in range(n_levels)]
        w_final, b_final = next(it), next(it)
        out_refs = list(it)

        g = g_ref[...]                                           # (1, M)

        # --- SetConv1dEncoder per output: one (2,N)@(N,M) matmul gives
        #     [density; signal]; density-normalise with an EUP reciprocal. ---
        zs = []
        for (xc_ref, ys_ref, _xt_ref) in ctx:
            xc = xc_ref[0]                                       # (N, 1)
            ys = ys_ref[0]                                       # (2, N) = [ones; y]
            wgt = jnp.exp(((xc - g) ** 2) * enc_neg_half_over_s2)   # (N, M) RBF, f32
            e = jnp.dot(ys, wgt, preferred_element_type=jnp.float32)  # (2, M)
            density = e[0:1]
            inv = pl.reciprocal(density + 1e-8, approx=True)
            zs.append(jnp.concatenate([density, e[1:2] * inv], axis=0))
        z = jnp.concatenate(zs, axis=0)                          # (2*num_out, M)

        # --- UNet(dimensionality=1); all activations stay in VMEM/vregs. ---
        h = jnp.dot(w_init[...], z, preferred_element_type=jnp.float32) + b_init[...]
        h = jnp.maximum(h, 0.0)
        hs = [h]
        for (w_ref, b_ref) in before:
            hs.append(_conv1d(w_ref, b_ref, hs[-1], stride=2, pad=2, relu=True))

        w_ref, b_ref = after[-1]
        h = _conv_transpose1d(w_ref, b_ref, hs[-1],
                              stride=2, pad=2, output_pad=1, relu=True)
        for h_skip, (w_ref, b_ref) in zip(reversed(hs[1:-1]), reversed(after[:-1])):
            h = _conv_transpose1d(w_ref, b_ref,
                                  jnp.concatenate([h_skip, h], axis=0),  # in-kernel skip
                                  stride=2, pad=2, output_pad=1, relu=True)

        z_out = (jnp.dot(w_final[...], h, preferred_element_type=jnp.float32)
                 + b_final[...])                                 # (out_ch, M)

        # --- SetConv1dDecoder per head; store lane-dense (C, T). ---
        for c0, csz, (_xc_ref, _ys_ref, xt_ref), o_ref in zip(
                head_offsets, head_sizes, ctx, out_refs):
            xt = xt_ref[0]                                       # (T, 1)
            wgt = jnp.exp(((xt - g) ** 2) * dec_neg_half_over_s2)   # (T, M)
            head = z_out[c0:c0 + csz, :]                         # (C, M)
            o_ref[0] = lax.dot_general(head, wgt, (((1,), (1,)), ((), ())),
                                       preferred_element_type=jnp.float32)  # (C, T)

    return kernel


def multi_convcnp_fused_forward(x_grid, raw_outputs, params, *, num_class, num_reg,
                                enc_scale2, dec_scale2, n_levels):
    """Device-side forward. raw_outputs: tuple of (x_context (B,N,1), y_context (B,N,1),
    x_target (B,T,1)) per output.  Returns list of (B, T_i, C_i) readouts."""
    num_out = num_class + num_reg
    assert len(raw_outputs) == num_out
    B = raw_outputs[0][0].shape[0]
    M = x_grid.shape[0]

    g = x_grid.reshape(1, M).astype(jnp.float32)
    inputs = [g]
    in_specs = [pl.BlockSpec((1, M), lambda b: (0, 0))]

    for (x_ctx, y_ctx, x_tgt) in raw_outputs:
        N = x_ctx.shape[1]
        T = x_tgt.shape[1]
        xc = x_ctx.astype(jnp.float32)                       # (B, N, 1)
        yc = y_ctx[..., 0].astype(jnp.float32)               # (B, N)
        ys = jnp.stack([jnp.ones_like(yc), yc], axis=1)      # (B, 2, N) = [ones; y]
        xt = x_tgt.astype(jnp.float32)                       # (B, T, 1)
        inputs += [xc, ys, xt]
        in_specs += [
            pl.BlockSpec((1, N, 1), lambda b: (b, 0, 0)),
            pl.BlockSpec((1, 2, N), lambda b: (b, 0, 0)),
            pl.BlockSpec((1, T, 1), lambda b: (b, 0, 0)),
        ]

    def add_param(arr):
        arr = arr.astype(jnp.float32)
        inputs.append(arr)
        nd = arr.ndim
        in_specs.append(pl.BlockSpec(arr.shape, lambda b, _nd=nd: (0,) * _nd))

    add_param(params["w_init"]); add_param(params["b_init"])
    for (w, b) in params["before"]:
        add_param(w); add_param(b)
    for (w, b) in params["after"]:
        add_param(w); add_param(b)
    add_param(params["w_final"]); add_param(params["b_final"])

    head_sizes = [1] * num_class + [2] * num_reg
    out_shape = []
    out_specs = []
    for (_x_ctx, _y_ctx, x_tgt), csz in zip(raw_outputs, head_sizes):
        T = x_tgt.shape[1]
        out_shape.append(jax.ShapeDtypeStruct((B, csz, T), jnp.float32))
        out_specs.append(pl.BlockSpec((1, csz, T), lambda b: (b, 0, 0)))

    kernel = _make_fused_kernel(
        num_class=num_class, num_reg=num_reg, n_levels=n_levels,
        enc_neg_half_over_s2=-0.5 / enc_scale2,
        dec_neg_half_over_s2=-0.5 / dec_scale2)

    outs = pl.pallas_call(
        kernel,
        out_shape=tuple(out_shape),
        grid=(B,),
        in_specs=in_specs,
        out_specs=tuple(out_specs),
        compiler_params=pltpu.CompilerParams(
            dimension_semantics=("parallel",)),   # batch axis -> v7x 2-TC sharding
    )(*inputs)

    # kernel stores lane-dense (B, C, T); restore the torch decoder's (B, T, C).
    return [jnp.transpose(o, (0, 2, 1)) for o in outs]


# ----------------------------- parameters -----------------------------

def init_unet_params(key, in_channels, out_channels, channels):
    """Random UNet parameters in PyTorch layout (Conv1d: (Cout,Cin,K); ConvT: (Cin,Cout,K))."""
    state = {"key": key}

    def nxt():
        state["key"], sub = jax.random.split(state["key"])
        return sub

    def conv_param(cin, cout, ksz):
        w = 0.05 * jax.random.normal(nxt(), (cout, cin, ksz), jnp.float32)
        b = 0.05 * jax.random.normal(nxt(), (cout,), jnp.float32)
        return w, b

    def convT_param(cin, cout, ksz):
        w = 0.05 * jax.random.normal(nxt(), (cin, cout, ksz), jnp.float32)
        b = 0.05 * jax.random.normal(nxt(), (cout,), jnp.float32)
        return w, b

    params = {}
    params["initial"] = conv_param(in_channels, channels[0], 1)
    params["final"] = conv_param(channels[0], out_channels, 1)
    params["before"] = [
        conv_param(channels[max(i - 1, 0)], channels[i], 5) for i in range(len(channels))
    ]

    def after_in(i):
        return channels[i] if i == len(channels) - 1 else 2 * channels[i]

    params["after"] = [
        convT_param(after_in(i), channels[max(i - 1, 0)], 5) for i in range(len(channels))
    ]
    return params


def unet_params_to_kernel_layout(params):
    """Convert torch-layout params to the fused kernel's layout:
       Conv1d  (Cout,Cin,K) -> (K,Cout,Cin);  K=1 convs flattened to (Cout,Cin)
       ConvT1d (Cin,Cout,K) -> equivalent direct conv weight (K,Cout,Cin) (flip + transpose)
       biases -> (Cout, 1)."""
    def conv_w(w):
        return jnp.transpose(w, (2, 0, 1))

    def convT_w(w):
        return jnp.transpose(jnp.flip(w, axis=-1), (2, 1, 0))

    kp = {}
    w, b = params["initial"]
    kp["w_init"] = w[:, :, 0]
    kp["b_init"] = b.reshape(-1, 1)
    w, b = params["final"]
    kp["w_final"] = w[:, :, 0]
    kp["b_final"] = b.reshape(-1, 1)
    kp["before"] = [(conv_w(w), b.reshape(-1, 1)) for (w, b) in params["before"]]
    kp["after"] = [(convT_w(w), b.reshape(-1, 1)) for (w, b) in params["after"]]
    return kp


# ----------------------------- Discretisation -----------------------------

def discretisation_1d(all_x, points_per_unit, multiple, margin):
    """Host-side Discretisation1d: uniform grid with spacing 1/points_per_unit covering
    [min - margin, max + margin]; the point count is rounded up to `multiple` and the
    extra span is split evenly on both sides (same rule as the reference, with `multiple`
    enlarged to a lane-aligned value by the caller)."""
    resolution = 1.0 / points_per_unit
    grid_min = min(float(np.min(np.asarray(x))) for x in all_x) - margin
    grid_max = max(float(np.max(np.asarray(x))) for x in all_x) + margin
    n_raw = (grid_max - grid_min) / resolution
    n = int(multiple * int(np.ceil(n_raw / multiple)))
    extra = n * resolution - (grid_max - grid_min)
    start = grid_min - extra / 2.0
    grid = np.linspace(start, start + (n - 1) * resolution, n).astype(np.float32)
    return jnp.asarray(grid)


# ----------------------------- MultiConvCNP -----------------------------

class MultiConvCNPPallas:
    def __init__(self, sigma=0.1, points_per_unit=32.0, small=True,
                 num_class=1, num_reg=1, key=jax.random.PRNGKey(0)):
        self.num_class = num_class
        self.num_reg = num_reg
        self.channels = (8, 16, 16, 32) if small else (8, 16, 16, 32, 32, 64)
        self.num_halving_layers = len(self.channels)
        self.points_per_unit = points_per_unit
        # Keep the 2**num_halving_layers divisibility of the reference and additionally
        # round the grid length to a 128-lane multiple for clean (8,128) tiling at every
        # UNet level (same rounding rule, coarser multiple; spacing/margin unchanged).
        self.multiple = int(np.lcm(2 ** self.num_halving_layers, 128))
        self.margin = 0.1

        in_ch = int(2 * (num_class + num_reg))
        out_ch = int(num_class + 2 * num_reg)
        self.params = unet_params_to_kernel_layout(
            init_unet_params(key, in_ch, out_ch, self.channels))

        # SetConv length-scales (learnable in torch; baked as trace-time constants here).
        # TODO(synk): make the log-scales jnp scalars fed to the kernel if they must be trainable.
        log_scale = float(np.log(2.0 / points_per_unit))
        self.enc_scale2 = float(np.exp(2.0 * log_scale))
        self.dec_scale2 = float(np.exp(2.0 * log_scale))
        self.log_sigma = float(np.log(sigma))  # module parameter; unused in forward

        self._forward_jit = jax.jit(functools.partial(
            multi_convcnp_fused_forward,
            num_class=self.num_class, num_reg=self.num_reg,
            enc_scale2=self.enc_scale2, dec_scale2=self.dec_scale2,
            n_levels=len(self.channels)))

    def forward(self, batch):
        """batch: list of dicts with 'x_context' (B,N_i,1), 'y_context' (B,N_i,1),
        'x_target' (B,T_i,1); classification outputs first, then regression outputs.
        Returns per-output readouts: (B, T_i, 1) for class heads, (B, T_i, 2) for reg heads."""
        all_x = []
        for output in batch:
            all_x.append(output["x_context"])
            all_x.append(output["x_target"])
        # TODO(synk): grid sizing needs host min/max (static shape) -> one device sync per
        # call; hoist / cache the bounds if they are known ahead of time.
        x_grid = discretisation_1d(all_x, self.points_per_unit, self.multiple, self.margin)
        raw = tuple((o["x_context"], o["y_context"], o["x_target"]) for o in batch)
        return self._forward_jit(x_grid, raw, self.params)


# ----------------------------- main -----------------------------

if __name__ == "__main__":
    key = jax.random.PRNGKey(0)
    k1, k2, k3, k4, k5, k6, kp = jax.random.split(key, 7)

    B = 2
    N0, T0 = 10, 12   # classification output: context / target sizes
    N1, T1 = 7, 9     # regression output:    context / target sizes

    batch = [
        {   # classification output
            "x_context": jax.random.uniform(k1, (B, N0, 1), jnp.float32),
            "y_context": jax.random.normal(k2, (B, N0, 1), jnp.float32),
            "x_target": jax.random.uniform(k3, (B, T0, 1), jnp.float32),
        },
        {   # regression output
            "x_context": jax.random.uniform(k4, (B, N1, 1), jnp.float32),
            "y_context": jax.random.normal(k5, (B, N1, 1), jnp.float32),
            "x_target": jax.random.uniform(k6, (B, T1, 1), jnp.float32),
        },
    ]

    model = MultiConvCNPPallas(sigma=0.1, points_per_unit=32.0, small=True,
                               num_class=1, num_reg=1, key=kp)
    outs = model.forward(batch)
    for o in outs:
        jax.block_until_ready(o)

    assert outs[0].shape == (B, T0, 1), outs[0].shape   # classification head
    assert outs[1].shape == (B, T1, 2), outs[1].shape   # regression head (mean, pre-sigma)
    assert all(bool(jnp.all(jnp.isfinite(o))) for o in outs)
    print("KERNEL_OK")
</pallas_src>

<mosaic_0001>
module attributes {stable_mosaic.version = 11 : i64} {
  func.func @kernel(%arg0: i32, %arg1: memref<1x128xf32, #tpu.memory_space<vmem>>, %arg2: memref<1x10x1xf32, #tpu.memory_space<vmem>>, %arg3: memref<1x2x10xf32, #tpu.memory_space<vmem>>, %arg4: memref<1x12x1xf32, #tpu.memory_space<vmem>>, %arg5: memref<1x7x1xf32, #tpu.memory_space<vmem>>, %arg6: memref<1x2x7xf32, #tpu.memory_space<vmem>>, %arg7: memref<1x9x1xf32, #tpu.memory_space<vmem>>, %arg8: memref<8x4xf32, #tpu.memory_space<vmem>>, %arg9: memref<8x1xf32, #tpu.memory_space<vmem>>, %arg10: memref<5x8x8xf32, #tpu.memory_space<vmem>>, %arg11: memref<8x1xf32, #tpu.memory_space<vmem>>, %arg12: memref<5x16x8xf32, #tpu.memory_space<vmem>>, %arg13: memref<16x1xf32, #tpu.memory_space<vmem>>, %arg14: memref<5x16x16xf32, #tpu.memory_space<vmem>>, %arg15: memref<16x1xf32, #tpu.memory_space<vmem>>, %arg16: memref<5x32x16xf32, #tpu.memory_space<vmem>>, %arg17: memref<32x1xf32, #tpu.memory_space<vmem>>, %arg18: memref<5x8x16xf32, #tpu.memory_space<vmem>>, %arg19: memref<8x1xf32, #tpu.memory_space<vmem>>, %arg20: memref<5x8x32xf32, #tpu.memory_space<vmem>>, %arg21: memref<8x1xf32, #tpu.memory_space<vmem>>, %arg22: memref<5x16x32xf32, #tpu.memory_space<vmem>>, %arg23: memref<16x1xf32, #tpu.memory_space<vmem>>, %arg24: memref<5x16x32xf32, #tpu.memory_space<vmem>>, %arg25: memref<16x1xf32, #tpu.memory_space<vmem>>, %arg26: memref<3x8xf32, #tpu.memory_space<vmem>>, %arg27: memref<3x1xf32, #tpu.memory_space<vmem>>, %arg28: memref<1x1x12xf32, #tpu.memory_space<vmem>>, %arg29: memref<1x2x9xf32, #tpu.memory_space<vmem>>) attributes {dimension_semantics = [#tpu.dimension_semantics<parallel>], iteration_bounds = array<i64: 2>, scalar_prefetch = 0 : i64, scratch_operands = 0 : i64, tpu.core_type = #tpu.core_type<tc>, window_params = [{pipeline_mode = #tpu.pipeline_mode<synchronous>, transform_indices = @transform_0, window_bounds = array<i64: 1, 128>}, {transform_indices = @transform_1, window_bounds = array<i64: 1, 10, 1>}, {transform_indices = @transform_2, window_bounds = array<i64: 1, 2, 10>}, {transform_indices = @transform_3, window_bounds = array<i64: 1, 12, 1>}, {transform_indices = @transform_4, window_bounds = array<i64: 1, 7, 1>}, {transform_indices = @transform_5, window_bounds = array<i64: 1, 2, 7>}, {transform_indices = @transform_6, window_bounds = array<i64: 1, 9, 1>}, {pipeline_mode = #tpu.pipeline_mode<synchronous>, transform_indices = @transform_7, window_bounds = array<i64: 8, 4>}, {pipeline_mode = #tpu.pipeline_mode<synchronous>, transform_indices = @transform_8, window_bounds = array<i64: 8, 1>}, {pipeline_mode = #tpu.pipeline_mode<synchronous>, transform_indices = @transform_9, window_bounds = array<i64: 5, 8, 8>}, {pipeline_mode = #tpu.pipeline_mode<synchronous>, transform_indices = @transform_10, window_bounds = array<i64: 8, 1>}, {pipeline_mode = #tpu.pipeline_mode<synchronous>, transform_indices = @transform_11, window_bounds = array<i64: 5, 16, 8>}, {pipeline_mode = #tpu.pipeline_mode<synchronous>, transform_indices = @transform_12, window_bounds = array<i64: 16, 1>}, {pipeline_mode = #tpu.pipeline_mode<synchronous>, transform_indices = @transform_13, window_bounds = array<i64: 5, 16, 16>}, {pipeline_mode = #tpu.pipeline_mode<synchronous>, transform_indices = @transform_14, window_bounds = array<i64: 16, 1>}, {pipeline_mode = #tpu.pipeline_mode<synchronous>, transform_indices = @transform_15, window_bounds = array<i64: 5, 32, 16>}, {pipeline_mode = #tpu.pipeline_mode<synchronous>, transform_indices = @transform_16, window_bounds = array<i64: 32, 1>}, {pipeline_mode = #tpu.pipeline_mode<synchronous>, transform_indices = @transform_17, window_bounds = array<i64: 5, 8, 16>}, {pipeline_mode = #tpu.pipeline_mode<synchronous>, transform_indices = @transform_18, window_bounds = array<i64: 8, 1>}, {pipeline_mode = #tpu.pipeline_mode<synchronous>, transform_indices = @transform_19, window_bounds = array<i64: 5, 8, 32>}, {pipeline_mode = #tpu.pipeline_mode<synchronous>, transform_indices = @transform_20, window_bounds = array<i64: 8, 1>}, {pipeline_mode = #tpu.pipeline_mode<synchronous>, transform_indices = @transform_21, window_bounds = array<i64: 5, 16, 32>}, {pipeline_mode = #tpu.pipeline_mode<synchronous>, transform_indices = @transform_22, window_bounds = array<i64: 16, 1>}, {pipeline_mode = #tpu.pipeline_mode<synchronous>, transform_indices = @transform_23, window_bounds = array<i64: 5, 16, 32>}, {pipeline_mode = #tpu.pipeline_mode<synchronous>, transform_indices = @transform_24, window_bounds = array<i64: 16, 1>}, {pipeline_mode = #tpu.pipeline_mode<synchronous>, transform_indices = @transform_25, window_bounds = array<i64: 3, 8>}, {pipeline_mode = #tpu.pipeline_mode<synchronous>, transform_indices = @transform_26, window_bounds = array<i64: 3, 1>}, {transform_indices = @transform_27, window_bounds = array<i64: 1, 1, 12>}, {transform_indices = @transform_28, window_bounds = array<i64: 1, 2, 9>}]} {
    %c0 = arith.constant 0 : index
    %c0_0 = arith.constant 0 : index
    %0 = vector.load %arg1[%c0, %c0_0] : memref<1x128xf32, #tpu.memory_space<vmem>>, vector<1x128xf32>
    %c0_1 = arith.constant 0 : index
    %c0_2 = arith.constant 0 : index
    %c0_3 = arith.constant 0 : index
    %1 = vector.load %arg2[%c0_1, %c0_2, %c0_3] : memref<1x10x1xf32, #tpu.memory_space<vmem>>, vector<1x10x1xf32>
    %2 = vector.shape_cast %1 : vector<1x10x1xf32> to vector<10x1xf32>
    %c0_4 = arith.constant 0 : index
    %c0_5 = arith.constant 0 : index
    %c0_6 = arith.constant 0 : index
    %3 = vector.load %arg3[%c0_4, %c0_5, %c0_6] : memref<1x2x10xf32, #tpu.memory_space<vmem>>, vector<1x2x10xf32>
    %4 = vector.shape_cast %3 : vector<1x2x10xf32> to vector<2x10xf32>
    %5 = vector.broadcast %2 : vector<10x1xf32> to vector<10x128xf32>
    %6 = vector.broadcast %0 : vector<1x128xf32> to vector<10x128xf32>
    %7 = arith.subf %5, %6 : vector<10x128xf32>
    %8 = arith.mulf %7, %7 : vector<10x128xf32>
    %cst = arith.constant -1.280000e+02 : f32
    %9 = vector.broadcast %cst : f32 to vector<10x128xf32>
    %10 = arith.mulf %8, %9 : vector<10x128xf32>
    %11 = math.exp %10 : vector<10x128xf32>
    %cst_7 = arith.constant dense<0.000000e+00> : vector<2x128xf32>
    %12 = tpu.matmul %4, %11, %cst_7 {dimension_numbers = #tpu.dot_dimension_numbers<[1], [0], [0], [1], [0, 0, 1, 1], [], []>} : vector<2x10xf32>, vector<10x128xf32>, vector<2x128xf32> -> vector<2x128xf32>
    %13 = vector.extract_strided_slice %12 {offsets = [0, 0], sizes = [1, 128], strides = [1, 1]} : vector<2x128xf32> to vector<1x128xf32>
    %cst_8 = arith.constant 9.99999993E-9 : f32
    %14 = vector.broadcast %cst_8 : f32 to vector<1x128xf32>
    %15 = arith.addf %13, %14 : vector<1x128xf32>
    %16 = tpu.reciprocal %15 {approx = true} : vector<1x128xf32> -> vector<1x128xf32>
    %17 = vector.extract_strided_slice %12 {offsets = [1, 0], sizes = [1, 128], strides = [1, 1]} : vector<2x128xf32> to vector<1x128xf32>
    %18 = arith.mulf %17, %16 : vector<1x128xf32>
    %19 = tpu.concatenate %13, %18 in 0 : vector<1x128xf32>, vector<1x128xf32> -> vector<2x128xf32>
    %c0_9 = arith.constant 0 : index
    %c0_10 = arith.constant 0 : index
    %c0_11 = arith.constant 0 : index
    %20 = vector.load %arg5[%c0_9, %c0_10, %c0_11] : memref<1x7x1xf32, #tpu.memory_space<vmem>>, vector<1x7x1xf32>
    %21 = vector.shape_cast %20 : vector<1x7x1xf32> to vector<7x1xf32>
    %c0_12 = arith.constant 0 : index
    %c0_13 = arith.constant 0 : index
    %c0_14 = arith.constant 0 : index
    %22 = vector.load %arg6[%c0_12, %c0_13, %c0_14] : memref<1x2x7xf32, #tpu.memory_space<vmem>>, vector<1x2x7xf32>
    %23 = vector.shape_cast %22 : vector<1x2x7xf32> to vector<2x7xf32>
    %24 = vector.broadcast %21 : vector<7x1xf32> to vector<7x128xf32>
    %25 = vector.broadcast %0 : vector<1x128xf32> to vector<7x128xf32>
    %26 = arith.subf %24, %25 : vector<7x128xf32>
    %27 = arith.mulf %26, %26 : vector<7x128xf32>
    %cst_15 = arith.constant -1.280000e+02 : f32
    %28 = vector.broadcast %cst_15 : f32 to vector<7x128xf32>
    %29 = arith.mulf %27, %28 : vector<7x128xf32>
    %30 = math.exp %29 : vector<7x128xf32>
    %cst_16 = arith.constant dense<0.000000e+00> : vector<2x128xf32>
    %31 = tpu.matmul %23, %30, %cst_16 {dimension_numbers = #tpu.dot_dimension_numbers<[1], [0], [0], [1], [0, 0, 1, 1], [], []>} : vector<2x7xf32>, vector<7x128xf32>, vector<2x128xf32> -> vector<2x128xf32>
    %32 = vector.extract_strided_slice %31 {offsets = [0, 0], sizes = [1, 128], strides = [1, 1]} : vector<2x128xf32> to vector<1x128xf32>
    %cst_17 = arith.constant 9.99999993E-9 : f32
    %33 = vector.broadcast %cst_17 : f32 to vector<1x128xf32>
    %34 = arith.addf %32, %33 : vector<1x128xf32>
    %35 = tpu.reciprocal %34 {approx = true} : vector<1x128xf32> -> vector<1x128xf32>
    %36 = vector.extract_strided_slice %31 {offsets = [1, 0], sizes = [1, 128], strides = [1, 1]} : vector<2x128xf32> to vector<1x128xf32>
    %37 = arith.mulf %36, %35 : vector<1x128xf32>
    %38 = tpu.concatenate %32, %37 in 0 : vector<1x128xf32>, vector<1x128xf32> -> vector<2x128xf32>
    %39 = tpu.concatenate %19, %38 in 0 : vector<2x128xf32>, vector<2x128xf32> -> vector<4x128xf32>
    %c0_18 = arith.constant 0 : index
    %c0_19 = arith.constant 0 : index
    %40 = vector.load %arg8[%c0_18, %c0_19] : memref<8x4xf32, #tpu.memory_space<vmem>>, vector<8x4xf32>
    %cst_20 = arith.constant dense<0.000000e+00> : vector<8x128xf32>
    %41 = tpu.matmul %40, %39, %cst_20 {dimension_numbers = #tpu.dot_dimension_numbers<[1], [0], [0], [1], [0, 0, 1, 1], [], []>} : vector<8x4xf32>, vector<4x128xf32>, vector<8x128xf32> -> vector<8x128xf32>
    %c0_21 = arith.constant 0 : index
    %c0_22 = arith.constant 0 : index
    %42 = vector.load %arg9[%c0_21, %c0_22] : memref<8x1xf32, #tpu.memory_space<vmem>>, vector<8x1xf32>
    %43 = vector.broadcast %42 : vector<8x1xf32> to vector<8x128xf32>
    %44 = arith.addf %41, %43 : vector<8x128xf32>
    %cst_23 = arith.constant 0.000000e+00 : f32
    %45 = vector.broadcast %cst_23 : f32 to vector<8x128xf32>
    %46 = arith.maximumf %44, %45 : vector<8x128xf32>
    %cst_24 = arith.constant 0.000000e+00 : f32
    %47 = vector.broadcast %cst_24 : f32 to vector<8x2xf32>
    %48 = tpu.concatenate %47, %46, %47 in 1 : vector<8x2xf32>, vector<8x128xf32>, vector<8x2xf32> -> vector<8x132xf32>
    %cst_25 = arith.constant 0.000000e+00 : f32
    %49 = vector.broadcast %cst_25 : f32 to vector<8x128xf32>
    %c0_26 = arith.constant 0 : index
    %c0_27 = arith.constant 0 : index
    %c0_28 = arith.constant 0 : index
    %50 = vector.load %arg10[%c0_26, %c0_27, %c0_28] : memref<5x8x8xf32, #tpu.memory_space<vmem>>, vector<1x8x8xf32>
    %51 = vector.shape_cast %50 : vector<1x8x8xf32> to vector<8x8xf32>
    %52 = vector.extract_strided_slice %48 {offsets = [0, 0], sizes = [8, 128], strides = [1, 1]} : vector<8x132xf32> to vector<8x128xf32>
    %cst_29 = arith.constant dense<0.000000e+00> : vector<8x128xf32>
    %53 = tpu.matmul %51, %52, %cst_29 {dimension_numbers = #tpu.dot_dimension_numbers<[1], [0], [0], [1], [0, 0, 1, 1], [], []>} : vector<8x8xf32>, vector<8x128xf32>, vector<8x128xf32> -> vector<8x128xf32>
    %54 = arith.addf %49, %53 : vector<8x128xf32>
    %c1 = arith.constant 1 : index
    %c0_30 = arith.constant 0 : index
    %c0_31 = arith.constant 0 : index
    %55 = vector.load %arg10[%c1, %c0_30, %c0_31] : memref<5x8x8xf32, #tpu.memory_space<vmem>>, vector<1x8x8xf32>
    %56 = vector.shape_cast %55 : vector<1x8x8xf32> to vector<8x8xf32>
    %57 = vector.extract_strided_slice %48 {offsets = [0, 1], sizes = [8, 128], strides = [1, 1]} : vector<8x132xf32> to vector<8x128xf32>
    %cst_32 = arith.constant dense<0.000000e+00> : vector<8x128xf32>
    %58 = tpu.matmul %56, %57, %cst_32 {dimension_numbers = #tpu.dot_dimension_numbers<[1], [0], [0], [1], [0, 0, 1, 1], [], []>} : vector<8x8xf32>, vector<8x128xf32>, vector<8x128xf32> -> vector<8x128xf32>
    %59 = arith.addf %54, %58 : vector<8x128xf32>
    %c2 = arith.constant 2 : index
    %c0_33 = arith.constant 0 : index
    %c0_34 = arith.constant 0 : index
    %60 = vector.load %arg10[%c2, %c0_33, %c0_34] : memref<5x8x8xf32, #tpu.memory_space<vmem>>, vector<1x8x8xf32>
    %61 = vector.shape_cast %60 : vector<1x8x8xf32> to vector<8x8xf32>
    %62 = vector.extract_strided_slice %48 {offsets = [0, 2], sizes = [8, 128], strides = [1, 1]} : vector<8x132xf32> to vector<8x128xf32>
    %cst_35 = arith.constant dense<0.000000e+00> : vector<8x128xf32>
    %63 = tpu.matmul %61, %62, %cst_35 {dimension_numbers = #tpu.dot_dimension_numbers<[1], [0], [0], [1], [0, 0, 1, 1], [], []>} : vector<8x8xf32>, vector<8x128xf32>, vector<8x128xf32> -> vector<8x128xf32>
    %64 = arith.addf %59, %63 : vector<8x128xf32>
    %c3 = arith.constant 3 : index
    %c0_36 = arith.constant 0 : index
    %c0_37 = arith.constant 0 : index
    %65 = vector.load %arg10[%c3, %c0_36, %c0_37] : memref<5x8x8xf32, #tpu.memory_space<vmem>>, vector<1x8x8xf32>
    %66 = vector.shape_cast %65 : vector<1x8x8xf32> to vector<8x8xf32>
    %67 = vector.extract_strided_slice %48 {offsets = [0, 3], sizes = [8, 128], strides = [1, 1]} : vector<8x132xf32> to vector<8x128xf32>
    %cst_38 = arith.constant dense<0.000000e+00> : vector<8x128xf32>
    %68 = tpu.matmul %66, %67, %cst_38 {dimension_numbers = #tpu.dot_dimension_numbers<[1], [0], [0], [1], [0, 0, 1, 1], [], []>} : vector<8x8xf32>, vector<8x128xf32>, vector<8x128xf32> -> vector<8x128xf32>
    %69 = arith.addf %64, %68 : vector<8x128xf32>
    %c4 = arith.constant 4 : index
    %c0_39 = arith.constant 0 : index
    %c0_40 = arith.constant 0 : index
    %70 = vector.load %arg10[%c4, %c0_39, %c0_40] : memref<5x8x8xf32, #tpu.memory_space<vmem>>, vector<1x8x8xf32>
    %71 = vector.shape_cast %70 : vector<1x8x8xf32> to vector<8x8xf32>
    %72 = vector.extract_strided_slice %48 {offsets = [0, 4], sizes = [8, 128], strides = [1, 1]} : vector<8x132xf32> to vector<8x128xf32>
    %cst_41 = arith.constant dense<0.000000e+00> : vector<8x128xf32>
    %73 = tpu.matmul %71, %72, %cst_41 {dimension_numbers = #tpu.dot_dimension_numbers<[1], [0], [0], [1], [0, 0, 1, 1], [], []>} : vector<8x8xf32>, vector<8x128xf32>, vector<8x128xf32> -> vector<8x128xf32>
    %74 = arith.addf %69, %73 : vector<8x128xf32>
    %75 = tpu.iota {dimensions = array<i32: 0>} : vector<128x64xi32>
    %76 = tpu.iota {dimensions = array<i32: 1>} : vector<128x64xi32>
    %c2_i32 = arith.constant 2 : i32
    %77 = vector.broadcast %c2_i32 : i32 to vector<128x64xi32>
    %78 = arith.muli %77, %76 : vector<128x64xi32>
    %79 = arith.cmpi eq, %75, %78 : vector<128x64xi32>
    %cst_42 = arith.constant 1.000000e+00 : f32
    %cst_43 = arith.constant 0.000000e+00 : f32
    %80 = vector.broadcast %cst_42 : f32 to vector<128x64xf32>
    %81 = vector.broadcast %cst_43 : f32 to vector<128x64xf32>
    %82 = arith.select %79, %80, %81 : vector<128x64xi1>, vector<128x64xf32>
    %cst_44 = arith.constant dense<0.000000e+00> : vector<8x64xf32>
    %83 = tpu.matmul %74, %82, %cst_44 {dimension_numbers = #tpu.dot_dimension_numbers<[1], [0], [0], [1], [0, 0, 1, 1], [], []>} : vector<8x128xf32>, vector<128x64xf32>, vector<8x64xf32> -> vector<8x64xf32>
    %c0_45 = arith.constant 0 : index
    %c0_46 = arith.constant 0 : index
    %84 = vector.load %arg11[%c0_45, %c0_46] : memref<8x1xf32, #tpu.memory_space<vmem>>, vector<8x1xf32>
    %85 = vector.broadcast %84 : vector<8x1xf32> to vector<8x64xf32>
    %86 = arith.addf %83, %85 : vector<8x64xf32>
    %cst_47 = arith.constant 0.000000e+00 : f32
    %87 = vector.broadcast %cst_47 : f32 to vector<8x64xf32>
    %88 = arith.maximumf %86, %87 : vector<8x64xf32>
    %cst_48 = arith.constant 0.000000e+00 : f32
    %89 = vector.broadcast %cst_48 : f32 to vector<8x2xf32>
    %90 = tpu.concatenate %89, %88, %89 in 1 : vector<8x2xf32>, vector<8x64xf32>, vector<8x2xf32> -> vector<8x68xf32>
    %cst_49 = arith.constant 0.000000e+00 : f32
    %91 = vector.broadcast %cst_49 : f32 to vector<16x64xf32>
    %c0_50 = arith.constant 0 : index
    %c0_51 = arith.constant 0 : index
    %c0_52 = arith.constant 0 : index
    %92 = vector.load %arg12[%c0_50, %c0_51, %c0_52] : memref<5x16x8xf32, #tpu.memory_space<vmem>>, vector<1x16x8xf32>
    %93 = vector.shape_cast %92 : vector<1x16x8xf32> to vector<16x8xf32>
    %94 = vector.extract_strided_slice %90 {offsets = [0, 0], sizes = [8, 64], strides = [1, 1]} : vector<8x68xf32> to vector<8x64xf32>
    %cst_53 = arith.constant dense<0.000000e+00> : vector<16x64xf32>
    %95 = tpu.matmul %93, %94, %cst_53 {dimension_numbers = #tpu.dot_dimension_numbers<[1], [0], [0], [1], [0, 0, 1, 1], [], []>} : vector<16x8xf32>, vector<8x64xf32>, vector<16x64xf32> -> vector<16x64xf32>
    %96 = arith.addf %91, %95 : vector<16x64xf32>
    %c1_54 = arith.constant 1 : index
    %c0_55 = arith.constant 0 : index
    %c0_56 = arith.constant 0 : index
    %97 = vector.load %arg12[%c1_54, %c0_55, %c0_56] : memref<5x16x8xf32, #tpu.memory_space<vmem>>, vector<1x16x8xf32>
    %98 = vector.shape_cast %97 : vector<1x16x8xf32> to vector<16x8xf32>
    %99 = vector.extract_strided_slice %90 {offsets = [0, 1], sizes = [8, 64], strides = [1, 1]} : vector<8x68xf32> to vector<8x64xf32>
    %cst_57 = arith.constant dense<0.000000e+00> : vector<16x64xf32>
    %100 = tpu.matmul %98, %99, %cst_57 {dimension_numbers = #tpu.dot_dimension_numbers<[1], [0], [0], [1], [0, 0, 1, 1], [], []>} : vector<16x8xf32>, vector<8x64xf32>, vector<16x64xf32> -> vector<16x64xf32>
    %101 = arith.addf %96, %100 : vector<16x64xf32>
    %c2_58 = arith.constant 2 : index
    %c0_59 = arith.constant 0 : index
    %c0_60 = arith.constant 0 : index
    %102 = vector.load %arg12[%c2_58, %c0_59, %c0_60] : memref<5x16x8xf32, #tpu.memory_space<vmem>>, vector<1x16x8xf32>
    %103 = vector.shape_cast %102 : vector<1x16x8xf32> to vector<16x8xf32>
    %104 = vector.extract_strided_slice %90 {offsets = [0, 2], sizes = [8, 64], strides = [1, 1]} : vector<8x68xf32> to vector<8x64xf32>
    %cst_61 = arith.constant dense<0.000000e+00> : vector<16x64xf32>
    %105 = tpu.matmul %103, %104, %cst_61 {dimension_numbers = #tpu.dot_dimension_numbers<[1], [0], [0], [1], [0, 0, 1, 1], [], []>} : vector<16x8xf32>, vector<8x64xf32>, vector<16x64xf32> -> vector<16x64xf32>
    %106 = arith.addf %101, %105 : vector<16x64xf32>
    %c3_62 = arith.constant 3 : index
    %c0_63 = arith.constant 0 : index
    %c0_64 = arith.constant 0 : index
    %107 = vector.load %arg12[%c3_62, %c0_63, %c0_64] : memref<5x16x8xf32, #tpu.memory_space<vmem>>, vector<1x16x8xf32>
    %108 = vector.shape_cast %107 : vector<1x16x8xf32> to vector<16x8xf32>
    %109 = vector.extract_strided_slice %90 {offsets = [0, 3], sizes = [8, 64], strides = [1, 1]} : vector<8x68xf32> to vector<8x64xf32>
    %cst_65 = arith.constant dense<0.000000e+00> : vector<16x64xf32>
    %110 = tpu.matmul %108, %109, %cst_65 {dimension_numbers = #tpu.dot_dimension_numbers<[1], [0], [0], [1], [0, 0, 1, 1], [], []>} : vector<16x8xf32>, vector<8x64xf32>, vector<16x64xf32> -> vector<16x64xf32>
    %111 = arith.addf %106, %110 : vector<16x64xf32>
    %c4_66 = arith.constant 4 : index
    %c0_67 = arith.constant 0 : index
    %c0_68 = arith.constant 0 : index
    %112 = vector.load %arg12[%c4_66, %c0_67, %c0_68] : memref<5x16x8xf32, #tpu.memory_space<vmem>>, vector<1x16x8xf32>
    %113 = vector.shape_cast %112 : vector<1x16x8xf32> to vector<16x8xf32>
    %114 = vector.extract_strided_slice %90 {offsets = [0, 4], sizes = [8, 64], strides = [1, 1]} : vector<8x68xf32> to vector<8x64xf32>
    %cst_69 = arith.constant dense<0.000000e+00> : vector<16x64xf32>
    %115 = tpu.matmul %113, %114, %cst_69 {dimension_numbers = #tpu.dot_dimension_numbers<[1], [0], [0], [1], [0, 0, 1, 1], [], []>} : vector<16x8xf32>, vector<8x64xf32>, vector<16x64xf32> -> vector<16x64xf32>
    %116 = arith.addf %111, %115 : vector<16x64xf32>
    %117 = tpu.iota {dimensions = array<i32: 0>} : vector<64x32xi32>
    %118 = tpu.iota {dimensions = array<i32: 1>} : vector<64x32xi32>
    %c2_i32_70 = arith.constant 2 : i32
    %119 = vector.broadcast %c2_i32_70 : i32 to vector<64x32xi32>
    %120 = arith.muli %119, %118 : vector<64x32xi32>
    %121 = arith.cmpi eq, %117, %120 : vector<64x32xi32>
    %cst_71 = arith.constant 1.000000e+00 : f32
    %cst_72 = arith.constant 0.000000e+00 : f32
    %122 = vector.broadcast %cst_71 : f32 to vector<64x32xf32>
    %123 = vector.broadcast %cst_72 : f32 to vector<64x32xf32>
    %124 = arith.select %121, %122, %123 : vector<64x32xi1>, vector<64x32xf32>
    %cst_73 = arith.constant dense<0.000000e+00> : vector<16x32xf32>
    %125 = tpu.matmul %116, %124, %cst_73 {dimension_numbers = #tpu.dot_dimension_numbers<[1], [0], [0], [1], [0, 0, 1, 1], [], []>} : vector<16x64xf32>, vector<64x32xf32>, vector<16x32xf32> -> vector<16x32xf32>
    %c0_74 = arith.constant 0 : index
    %c0_75 = arith.constant 0 : index
    %126 = vector.load %arg13[%c0_74, %c0_75] : memref<16x1xf32, #tpu.memory_space<vmem>>, vector<16x1xf32>
    %127 = vector.broadcast %126 : vector<16x1xf32> to vector<16x32xf32>
    %128 = arith.addf %125, %127 : vector<16x32xf32>
    %cst_76 = arith.constant 0.000000e+00 : f32
    %129 = vector.broadcast %cst_76 : f32 to vector<16x32xf32>
    %130 = arith.maximumf %128, %129 : vector<16x32xf32>
    %cst_77 = arith.constant 0.000000e+00 : f32
    %131 = vector.broadcast %cst_77 : f32 to vector<16x2xf32>
    %132 = tpu.concatenate %131, %130, %131 in 1 : vector<16x2xf32>, vector<16x32xf32>, vector<16x2xf32> -> vector<16x36xf32>
    %cst_78 = arith.constant 0.000000e+00 : f32
    %133 = vector.broadcast %cst_78 : f32 to vector<16x32xf32>
    %c0_79 = arith.constant 0 : index
    %c0_80 = arith.constant 0 : index
    %c0_81 = arith.constant 0 : index
    %134 = vector.load %arg14[%c0_79, %c0_80, %c0_81] : memref<5x16x16xf32, #tpu.memory_space<vmem>>, vector<1x16x16xf32>
    %135 = vector.shape_cast %134 : vector<1x16x16xf32> to vector<16x16xf32>
    %136 = vector.extract_strided_slice %132 {offsets = [0, 0], sizes = [16, 32], strides = [1, 1]} : vector<16x36xf32> to vector<16x32xf32>
    %cst_82 = arith.constant dense<0.000000e+00> : vector<16x32xf32>
    %137 = tpu.matmul %135, %136, %cst_82 {dimension_numbers = #tpu.dot_dimension_numbers<[1], [0], [0], [1], [0, 0, 1, 1], [], []>} : vector<16x16xf32>, vector<16x32xf32>, vector<16x32xf32> -> vector<16x32xf32>
    %138 = arith.addf %133, %137 : vector<16x32xf32>
    %c1_83 = arith.constant 1 : index
    %c0_84 = arith.constant 0 : index
    %c0_85 = arith.constant 0 : index
    %139 = vector.load %arg14[%c1_83, %c0_84, %c0_85] : memref<5x16x16xf32, #tpu.memory_space<vmem>>, vector<1x16x16xf32>
    %140 = vector.shape_cast %139 : vector<1x16x16xf32> to vector<16x16xf32>
    %141 = vector.extract_strided_slice %132 {offsets = [0, 1], sizes = [16, 32], strides = [1, 1]} : vector<16x36xf32> to vector<16x32xf32>
    %cst_86 = arith.constant dense<0.000000e+00> : vector<16x32xf32>
    %142 = tpu.matmul %140, %141, %cst_86 {dimension_numbers = #tpu.dot_dimension_numbers<[1], [0], [0], [1], [0, 0, 1, 1], [], []>} : vector<16x16xf32>, vector<16x32xf32>, vector<16x32xf32> -> vector<16x32xf32>
    %143 = arith.addf %138, %142 : vector<16x32xf32>
    %c2_87 = arith.constant 2 : index
    %c0_88 = arith.constant 0 : index
    %c0_89 = arith.constant 0 : index
    %144 = vector.load %arg14[%c2_87, %c0_88, %c0_89] : memref<5x16x16xf32, #tpu.memory_space<vmem>>, vector<1x16x16xf32>
    %145 = vector.shape_cast %144 : vector<1x16x16xf32> to vector<16x16xf32>
    %146 = vector.extract_strided_slice %132 {offsets = [0, 2], sizes = [16, 32], strides = [1, 1]} : vector<16x36xf32> to vector<16x32xf32>
    %cst_90 = arith.constant dense<0.000000e+00> : vector<16x32xf32>
    %147 = tpu.matmul %145, %146, %cst_90 {dimension_numbers = #tpu.dot_dimension_numbers<[1], [0], [0], [1], [0, 0, 1, 1], [], []>} : vector<16x16xf32>, vector<16x32xf32>, vector<16x32xf32> -> vector<16x32xf32>
    %148 = arith.addf %143, %147 : vector<16x32xf32>
    %c3_91 = arith.constant 3 : index
    %c0_92 = arith.constant 0 : index
    %c0_93 = arith.constant 0 : index
    %149 = vector.load %arg14[%c3_91, %c0_92, %c0_93] : memref<5x16x16xf32, #tpu.memory_space<vmem>>, vector<1x16x16xf32>
    %150 = vector.shape_cast %149 : vector<1x16x16xf32> to vector<16x16xf32>
    %151 = vector.extract_strided_slice %132 {offsets = [0, 3], sizes = [16, 32], strides = [1, 1]} : vector<16x36xf32> to vector<16x32xf32>
    %cst_94 = arith.constant dense<0.000000e+00> : vector<16x32xf32>
    %152 = tpu.matmul %150, %151, %cst_94 {dimension_numbers = #tpu.dot_dimension_numbers<[1], [0], [0], [1], [0, 0, 1, 1], [], []>} : vector<16x16xf32>, vector<16x32xf32>, vector<16x32xf32> -> vector<16x32xf32>
    %153 = arith.addf %148, %152 : vector<16x32xf32>
    %c4_95 = arith.constant 4 : index
    %c0_96 = arith.constant 0 : index
    %c0_97 = arith.constant 0 : index
    %154 = vector.load %arg14[%c4_95, %c0_96, %c0_97] : memref<5x16x16xf32, #tpu.memory_space<vmem>>, vector<1x16x16xf32>
    %155 = vector.shape_cast %154 : vector<1x16x16xf32> to vector<16x16xf32>
    %156 = vector.extract_strided_slice %132 {offsets = [0, 4], sizes = [16, 32], strides = [1, 1]} : vector<16x36xf32> to vector<16x32xf32>
    %cst_98 = arith.constant dense<0.000000e+00> : vector<16x32xf32>
    %157 = tpu.matmul %155, %156, %cst_98 {dimension_numbers = #tpu.dot_dimension_numbers<[1], [0], [0], [1], [0, 0, 1, 1], [], []>} : vector<16x16xf32>, vector<16x32xf32>, vector<16x32xf32> -> vector<16x32xf32>
    %158 = arith.addf %153, %157 : vector<16x32xf32>
    %159 = tpu.iota {dimensions = array<i32: 0>} : vector<32x16xi32>
    %160 = tpu.iota {dimensions = array<i32: 1>} : vector<32x16xi32>
    %c2_i32_99 = arith.constant 2 : i32
    %161 = vector.broadcast %c2_i32_99 : i32 to vector<32x16xi32>
    %162 = arith.muli %161, %160 : vector<32x16xi32>
    %163 = arith.cmpi eq, %159, %162 : vector<32x16xi32>
    %cst_100 = arith.constant 1.000000e+00 : f32
    %cst_101 = arith.constant 0.000000e+00 : f32
    %164 = vector.broadcast %cst_100 : f32 to vector<32x16xf32>
    %165 = vector.broadcast %cst_101 : f32 to vector<32x16xf32>
    %166 = arith.select %163, %164, %165 : vector<32x16xi1>, vector<32x16xf32>
    %cst_102 = arith.constant dense<0.000000e+00> : vector<16x16xf32>
    %167 = tpu.matmul %158, %166, %cst_102 {dimension_numbers = #tpu.dot_dimension_numbers<[1], [0], [0], [1], [0, 0, 1, 1], [], []>} : vector<16x32xf32>, vector<32x16xf32>, vector<16x16xf32> -> vector<16x16xf32>
    %c0_103 = arith.constant 0 : index
    %c0_104 = arith.constant 0 : index
    %168 = vector.load %arg15[%c0_103, %c0_104] : memref<16x1xf32, #tpu.memory_space<vmem>>, vector<16x1xf32>
    %169 = vector.broadcast %168 : vector<16x1xf32> to vector<16x16xf32>
    %170 = arith.addf %167, %169 : vector<16x16xf32>
    %cst_105 = arith.constant 0.000000e+00 : f32
    %171 = vector.broadcast %cst_105 : f32 to vector<16x16xf32>
    %172 = arith.maximumf %170, %171 : vector<16x16xf32>
    %cst_106 = arith.constant 0.000000e+00 : f32
    %173 = vector.broadcast %cst_106 : f32 to vector<16x2xf32>
    %174 = tpu.concatenate %173, %172, %173 in 1 : vector<16x2xf32>, vector<16x16xf32>, vector<16x2xf32> -> vector<16x20xf32>
    %cst_107 = arith.constant 0.000000e+00 : f32
    %175 = vector.broadcast %cst_107 : f32 to vector<32x16xf32>
    %c0_108 = arith.constant 0 : index
    %c0_109 = arith.constant 0 : index
    %c0_110 = arith.constant 0 : index
    %176 = vector.load %arg16[%c0_108, %c0_109, %c0_110] : memref<5x32x16xf32, #tpu.memory_space<vmem>>, vector<1x32x16xf32>
    %177 = vector.shape_cast %176 : vector<1x32x16xf32> to vector<32x16xf32>
    %178 = vector.extract_strided_slice %174 {offsets = [0, 0], sizes = [16, 16], strides = [1, 1]} : vector<16x20xf32> to vector<16x16xf32>
    %cst_111 = arith.constant dense<0.000000e+00> : vector<32x16xf32>
    %179 = tpu.matmul %177, %178, %cst_111 {dimension_numbers = #tpu.dot_dimension_numbers<[1], [0], [0], [1], [0, 0, 1, 1], [], []>} : vector<32x16xf32>, vector<16x16xf32>, vector<32x16xf32> -> vector<32x16xf32>
    %180 = arith.addf %175, %179 : vector<32x16xf32>
    %c1_112 = arith.constant 1 : index
    %c0_113 = arith.constant 0 : index
    %c0_114 = arith.constant 0 : index
    %181 = vector.load %arg16[%c1_112, %c0_113, %c0_114] : memref<5x32x16xf32, #tpu.memory_space<vmem>>, vector<1x32x16xf32>
    %182 = vector.shape_cast %181 : vector<1x32x16xf32> to vector<32x16xf32>
    %183 = vector.extract_strided_slice %174 {offsets = [0, 1], sizes = [16, 16], strides = [1, 1]} : vector<16x20xf32> to vector<16x16xf32>
    %cst_115 = arith.constant dense<0.000000e+00> : vector<32x16xf32>
    %184 = tpu.matmul %182, %183, %cst_115 {dimension_numbers = #tpu.dot_dimension_numbers<[1], [0], [0], [1], [0, 0, 1, 1], [], []>} : vector<32x16xf32>, vector<16x16xf32>, vector<32x16xf32> -> vector<32x16xf32>
    %185 = arith.addf %180, %184 : vector<32x16xf32>
    %c2_116 = arith.constant 2 : index
    %c0_117 = arith.constant 0 : index
    %c0_118 = arith.constant 0 : index
    %186 = vector.load %arg16[%c2_116, %c0_117, %c0_118] : memref<5x32x16xf32, #tpu.memory_space<vmem>>, vector<1x32x16xf32>
    %187 = vector.shape_cast %186 : vector<1x32x16xf32> to vector<32x16xf32>
    %188 = vector.extract_strided_slice %174 {offsets = [0, 2], sizes = [16, 16], strides = [1, 1]} : vector<16x20xf32> to vector<16x16xf32>
    %cst_119 = arith.constant dense<0.000000e+00> : vector<32x16xf32>
    %189 = tpu.matmul %187, %188, %cst_119 {dimension_numbers = #tpu.dot_dimension_numbers<[1], [0], [0], [1], [0, 0, 1, 1], [], []>} : vector<32x16xf32>, vector<16x16xf32>, vector<32x16xf32> -> vector<32x16xf32>
    %190 = arith.addf %185, %189 : vector<32x16xf32>
    %c3_120 = arith.constant 3 : index
    %c0_121 = arith.constant 0 : index
    %c0_122 = arith.constant 0 : index
    %191 = vector.load %arg16[%c3_120, %c0_121, %c0_122] : memref<5x32x16xf32, #tpu.memory_space<vmem>>, vector<1x32x16xf32>
    %192 = vector.shape_cast %191 : vector<1x32x16xf32> to vector<32x16xf32>
    %193 = vector.extract_strided_slice %174 {offsets = [0, 3], sizes = [16, 16], strides = [1, 1]} : vector<16x20xf32> to vector<16x16xf32>
    %cst_123 = arith.constant dense<0.000000e+00> : vector<32x16xf32>
    %194 = tpu.matmul %192, %193, %cst_123 {dimension_numbers = #tpu.dot_dimension_numbers<[1], [0], [0], [1], [0, 0, 1, 1], [], []>} : vector<32x16xf32>, vector<16x16xf32>, vector<32x16xf32> -> vector<32x16xf32>
    %195 = arith.addf %190, %194 : vector<32x16xf32>
    %c4_124 = arith.constant 4 : index
    %c0_125 = arith.constant 0 : index
    %c0_126 = arith.constant 0 : index
    %196 = vector.load %arg16[%c4_124, %c0_125, %c0_126] : memref<5x32x16xf32, #tpu.memory_space<vmem>>, vector<1x32x16xf32>
    %197 = vector.shape_cast %196 : vector<1x32x16xf32> to vector<32x16xf32>
    %198 = vector.extract_strided_slice %174 {offsets = [0, 4], sizes = [16, 16], strides = [1, 1]} : vector<16x20xf32> to vector<16x16xf32>
    %cst_127 = arith.constant dense<0.000000e+00> : vector<32x16xf32>
    %199 = tpu.matmul %197, %198, %cst_127 {dimension_numbers = #tpu.dot_dimension_numbers<[1], [0], [0], [1], [0, 0, 1, 1], [], []>} : vector<32x16xf32>, vector<16x16xf32>, vector<32x16xf32> -> vector<32x16xf32>
    %200 = arith.addf %195, %199 : vector<32x16xf32>
    %201 = tpu.iota {dimensions = array<i32: 0>} : vector<16x8xi32>
    %202 = tpu.iota {dimensions = array<i32: 1>} : vector<16x8xi32>
    %c2_i32_128 = arith.constant 2 : i32
    %203 = vector.broadcast %c2_i32_128 : i32 to vector<16x8xi32>
    %204 = arith.muli %203, %202 : vector<16x8xi32>
    %205 = arith.cmpi eq, %201, %204 : vector<16x8xi32>
    %cst_129 = arith.constant 1.000000e+00 : f32
    %cst_130 = arith.constant 0.000000e+00 : f32
    %206 = vector.broadcast %cst_129 : f32 to vector<16x8xf32>
    %207 = vector.broadcast %cst_130 : f32 to vector<16x8xf32>
    %208 = arith.select %205, %206, %207 : vector<16x8xi1>, vector<16x8xf32>
    %cst_131 = arith.constant dense<0.000000e+00> : vector<32x8xf32>
    %209 = tpu.matmul %200, %208, %cst_131 {dimension_numbers = #tpu.dot_dimension_numbers<[1], [0], [0], [1], [0, 0, 1, 1], [], []>} : vector<32x16xf32>, vector<16x8xf32>, vector<32x8xf32> -> vector<32x8xf32>
    %c0_132 = arith.constant 0 : index
    %c0_133 = arith.constant 0 : index
    %210 = vector.load %arg17[%c0_132, %c0_133] : memref<32x1xf32, #tpu.memory_space<vmem>>, vector<32x1xf32>
    %211 = vector.broadcast %210 : vector<32x1xf32> to vector<32x8xf32>
    %212 = arith.addf %209, %211 : vector<32x8xf32>
    %cst_134 = arith.constant 0.000000e+00 : f32
    %213 = vector.broadcast %cst_134 : f32 to vector<32x8xf32>
    %214 = arith.maximumf %212, %213 : vector<32x8xf32>
    %215 = tpu.iota {dimensions = array<i32: 0>} : vector<8x15xi32>
    %216 = tpu.iota {dimensions = array<i32: 1>} : vector<8x15xi32>
    %c2_i32_135 = arith.constant 2 : i32
    %217 = vector.broadcast %c2_i32_135 : i32 to vector<8x15xi32>
    %218 = arith.muli %217, %215 : vector<8x15xi32>
    %219 = arith.cmpi eq, %216, %218 : vector<8x15xi32>
    %cst_136 = arith.constant 1.000000e+00 : f32
    %cst_137 = arith.constant 0.000000e+00 : f32
    %220 = vector.broadcast %cst_136 : f32 to vector<8x15xf32>
    %221 = vector.broadcast %cst_137 : f32 to vector<8x15xf32>
    %222 = arith.select %219, %220, %221 : vector<8x15xi1>, vector<8x15xf32>
    %cst_138 = arith.constant dense<0.000000e+00> : vector<32x15xf32>
    %223 = tpu.matmul %214, %222, %cst_138 {dimension_numbers = #tpu.dot_dimension_numbers<[1], [0], [0], [1], [0, 0, 1, 1], [], []>} : vector<32x8xf32>, vector<8x15xf32>, vector<32x15xf32> -> vector<32x15xf32>
    %cst_139 = arith.constant 0.000000e+00 : f32
    %224 = vector.broadcast %cst_139 : f32 to vector<32x2xf32>
    %cst_140 = arith.constant 0.000000e+00 : f32
    %225 = vector.broadcast %cst_140 : f32 to vector<32x3xf32>
    %226 = tpu.concatenate %224, %223, %225 in 1 : vector<32x2xf32>, vector<32x15xf32>, vector<32x3xf32> -> vector<32x20xf32>
    %cst_141 = arith.constant 0.000000e+00 : f32
    %227 = vector.broadcast %cst_141 : f32 to vector<16x16xf32>
    %c0_142 = arith.constant 0 : index
    %c0_143 = arith.constant 0 : index
    %c0_144 = arith.constant 0 : index
    %228 = vector.load %arg24[%c0_142, %c0_143, %c0_144] : memref<5x16x32xf32, #tpu.memory_space<vmem>>, vector<1x16x32xf32>
    %229 = vector.shape_cast %228 : vector<1x16x32xf32> to vector<16x32xf32>
    %230 = vector.extract_strided_slice %226 {offsets = [0, 0], sizes = [32, 16], strides = [1, 1]} : vector<32x20xf32> to vector<32x16xf32>
    %cst_145 = arith.constant dense<0.000000e+00> : vector<16x16xf32>
    %231 = tpu.matmul %229, %230, %cst_145 {dimension_numbers = #tpu.dot_dimension_numbers<[1], [0], [0], [1], [0, 0, 1, 1], [], []>} : vector<16x32xf32>, vector<32x16xf32>, vector<16x16xf32> -> vector<16x16xf32>
    %232 = arith.addf %227, %231 : vector<16x16xf32>
    %c1_146 = arith.constant 1 : index
    %c0_147 = arith.constant 0 : index
    %c0_148 = arith.constant 0 : index
    %233 = vector.load %arg24[%c1_146, %c0_147, %c0_148] : memref<5x16x32xf32, #tpu.memory_space<vmem>>, vector<1x16x32xf32>
    %234 = vector.shape_cast %233 : vector<1x16x32xf32> to vector<16x32xf32>
    %235 = vector.extract_strided_slice %226 {offsets = [0, 1], sizes = [32, 16], strides = [1, 1]} : vector<32x20xf32> to vector<32x16xf32>
    %cst_149 = arith.constant dense<0.000000e+00> : vector<16x16xf32>
    %236 = tpu.matmul %234, %235, %cst_149 {dimension_numbers = #tpu.dot_dimension_numbers<[1], [0], [0], [1], [0, 0, 1, 1], [], []>} : vector<16x32xf32>, vector<32x16xf32>, vector<16x16xf32> -> vector<16x16xf32>
    %237 = arith.addf %232, %236 : vector<16x16xf32>
    %c2_150 = arith.constant 2 : index
    %c0_151 = arith.constant 0 : index
    %c0_152 = arith.constant 0 : index
    %238 = vector.load %arg24[%c2_150, %c0_151, %c0_152] : memref<5x16x32xf32, #tpu.memory_space<vmem>>, vector<1x16x32xf32>
    %239 = vector.shape_cast %238 : vector<1x16x32xf32> to vector<16x32xf32>
    %240 = vector.extract_strided_slice %226 {offsets = [0, 2], sizes = [32, 16], strides = [1, 1]} : vector<32x20xf32> to vector<32x16xf32>
    %cst_153 = arith.constant dense<0.000000e+00> : vector<16x16xf32>
    %241 = tpu.matmul %239, %240, %cst_153 {dimension_numbers = #tpu.dot_dimension_numbers<[1], [0], [0], [1], [0, 0, 1, 1], [], []>} : vector<16x32xf32>, vector<32x16xf32>, vector<16x16xf32> -> vector<16x16xf32>
    %242 = arith.addf %237, %241 : vector<16x16xf32>
    %c3_154 = arith.constant 3 : index
    %c0_155 = arith.constant 0 : index
    %c0_156 = arith.constant 0 : index
    %243 = vector.load %arg24[%c3_154, %c0_155, %c0_156] : memref<5x16x32xf32, #tpu.memory_space<vmem>>, vector<1x16x32xf32>
    %244 = vector.shape_cast %243 : vector<1x16x32xf32> to vector<16x32xf32>
    %245 = vector.extract_strided_slice %226 {offsets = [0, 3], sizes = [32, 16], strides = [1, 1]} : vector<32x20xf32> to vector<32x16xf32>
    %cst_157 = arith.constant dense<0.000000e+00> : vector<16x16xf32>
    %246 = tpu.matmul %244, %245, %cst_157 {dimension_numbers = #tpu.dot_dimension_numbers<[1], [0], [0], [1], [0, 0, 1, 1], [], []>} : vector<16x32xf32>, vector<32x16xf32>, vector<16x16xf32> -> vector<16x16xf32>
    %247 = arith.addf %242, %246 : vector<16x16xf32>
    %c4_158 = arith.constant 4 : index
    %c0_159 = arith.constant 0 : index
    %c0_160 = arith.constant 0 : index
    %248 = vector.load %arg24[%c4_158, %c0_159, %c0_160] : memref<5x16x32xf32, #tpu.memory_space<vmem>>, vector<1x16x32xf32>
    %249 = vector.shape_cast %248 : vector<1x16x32xf32> to vector<16x32xf32>
    %250 = vector.extract_strided_slice %226 {offsets = [0, 4], sizes = [32, 16], strides = [1, 1]} : vector<32x20xf32> to vector<32x16xf32>
    %cst_161 = arith.constant dense<0.000000e+00> : vector<16x16xf32>
    %251 = tpu.matmul %249, %250, %cst_161 {dimension_numbers = #tpu.dot_dimension_numbers<[1], [0], [0], [1], [0, 0, 1, 1], [], []>} : vector<16x32xf32>, vector<32x16xf32>, vector<16x16xf32> -> vector<16x16xf32>
    %252 = arith.addf %247, %251 : vector<16x16xf32>
    %c0_162 = arith.constant 0 : index
    %c0_163 = arith.constant 0 : index
    %253 = vector.load %arg25[%c0_162, %c0_163] : memref<16x1xf32, #tpu.memory_space<vmem>>, vector<16x1xf32>
    %254 = vector.broadcast %253 : vector<16x1xf32> to vector<16x16xf32>
    %255 = arith.addf %252, %254 : vector<16x16xf32>
    %cst_164 = arith.constant 0.000000e+00 : f32
    %256 = vector.broadcast %cst_164 : f32 to vector<16x16xf32>
    %257 = arith.maximumf %255, %256 : vector<16x16xf32>
    %258 = tpu.concatenate %172, %257 in 0 : vector<16x16xf32>, vector<16x16xf32> -> vector<32x16xf32>
    %259 = tpu.iota {dimensions = array<i32: 0>} : vector<16x31xi32>
    %260 = tpu.iota {dimensions = array<i32: 1>} : vector<16x31xi32>
    %c2_i32_165 = arith.constant 2 : i32
    %261 = vector.broadcast %c2_i32_165 : i32 to vector<16x31xi32>
    %262 = arith.muli %261, %259 : vector<16x31xi32>
    %263 = arith.cmpi eq, %260, %262 : vector<16x31xi32>
    %cst_166 = arith.constant 1.000000e+00 : f32
    %cst_167 = arith.constant 0.000000e+00 : f32
    %264 = vector.broadcast %cst_166 : f32 to vector<16x31xf32>
    %265 = vector.broadcast %cst_167 : f32 to vector<16x31xf32>
    %266 = arith.select %263, %264, %265 : vector<16x31xi1>, vector<16x31xf32>
    %cst_168 = arith.constant dense<0.000000e+00> : vector<32x31xf32>
    %267 = tpu.matmul %258, %266, %cst_168 {dimension_numbers = #tpu.dot_dimension_numbers<[1], [0], [0], [1], [0, 0, 1, 1], [], []>} : vector<32x16xf32>, vector<16x31xf32>, vector<32x31xf32> -> vector<32x31xf32>
    %cst_169 = arith.constant 0.000000e+00 : f32
    %268 = vector.broadcast %cst_169 : f32 to vector<32x2xf32>
    %cst_170 = arith.constant 0.000000e+00 : f32
    %269 = vector.broadcast %cst_170 : f32 to vector<32x3xf32>
    %270 = tpu.concatenate %268, %267, %269 in 1 : vector<32x2xf32>, vector<32x31xf32>, vector<32x3xf32> -> vector<32x36xf32>
    %cst_171 = arith.constant 0.000000e+00 : f32
    %271 = vector.broadcast %cst_171 : f32 to vector<16x32xf32>
    %c0_172 = arith.constant 0 : index
    %c0_173 = arith.constant 0 : index
    %c0_174 = arith.constant 0 : index
    %272 = vector.load %arg22[%c0_172, %c0_173, %c0_174] : memref<5x16x32xf32, #tpu.memory_space<vmem>>, vector<1x16x32xf32>
    %273 = vector.shape_cast %272 : vector<1x16x32xf32> to vector<16x32xf32>
    %274 = vector.extract_strided_slice %270 {offsets = [0, 0], sizes = [32, 32], strides = [1, 1]} : vector<32x36xf32> to vector<32x32xf32>
    %cst_175 = arith.constant dense<0.000000e+00> : vector<16x32xf32>
    %275 = tpu.matmul %273, %274, %cst_175 {dimension_numbers = #tpu.dot_dimension_numbers<[1], [0], [0], [1], [0, 0, 1, 1], [], []>} : vector<16x32xf32>, vector<32x32xf32>, vector<16x32xf32> -> vector<16x32xf32>
    %276 = arith.addf %271, %275 : vector<16x32xf32>
    %c1_176 = arith.constant 1 : index
    %c0_177 = arith.constant 0 : index
    %c0_178 = arith.constant 0 : index
    %277 = vector.load %arg22[%c1_176, %c0_177, %c0_178] : memref<5x16x32xf32, #tpu.memory_space<vmem>>, vector<1x16x32xf32>
    %278 = vector.shape_cast %277 : vector<1x16x32xf32> to vector<16x32xf32>
    %279 = vector.extract_strided_slice %270 {offsets = [0, 1], sizes = [32, 32], strides = [1, 1]} : vector<32x36xf32> to vector<32x32xf32>
    %cst_179 = arith.constant dense<0.000000e+00> : vector<16x32xf32>
    %280 = tpu.matmul %278, %279, %cst_179 {dimension_numbers = #tpu.dot_dimension_numbers<[1], [0], [0], [1], [0, 0, 1, 1], [], []>} : vector<16x32xf32>, vector<32x32xf32>, vector<16x32xf32> -> vector<16x32xf32>
    %281 = arith.addf %276, %280 : vector<16x32xf32>
    %c2_180 = arith.constant 2 : index
    %c0_181 = arith.constant 0 : index
    %c0_182 = arith.constant 0 : index
    %282 = vector.load %arg22[%c2_180, %c0_181, %c0_182] : memref<5x16x32xf32, #tpu.memory_space<vmem>>, vector<1x16x32xf32>
    %283 = vector.shape_cast %282 : vector<1x16x32xf32> to vector<16x32xf32>
    %284 = vector.extract_strided_slice %270 {offsets = [0, 2], sizes = [32, 32], strides = [1, 1]} : vector<32x36xf32> to vector<32x32xf32>
    %cst_183 = arith.constant dense<0.000000e+00> : vector<16x32xf32>
    %285 = tpu.matmul %283, %284, %cst_183 {dimension_numbers = #tpu.dot_dimension_numbers<[1], [0], [0], [1], [0, 0, 1, 1], [], []>} : vector<16x32xf32>, vector<32x32xf32>, vector<16x32xf32> -> vector<16x32xf32>
    %286 = arith.addf %281, %285 : vector<16x32xf32>
    %c3_184 = arith.constant 3 : index
    %c0_185 = arith.constant 0 : index
    %c0_186 = arith.constant 0 : index
    %287 = vector.load %arg22[%c3_184, %c0_185, %c0_186] : memref<5x16x32xf32, #tpu.memory_space<vmem>>, vector<1x16x32xf32>
    %288 = vector.shape_cast %287 : vector<1x16x32xf32> to vector<16x32xf32>
    %289 = vector.extract_strided_slice %270 {offsets = [0, 3], sizes = [32, 32], strides = [1, 1]} : vector<32x36xf32> to vector<32x32xf32>
    %cst_187 = arith.constant dense<0.000000e+00> : vector<16x32xf32>
    %290 = tpu.matmul %288, %289, %cst_187 {dimension_numbers = #tpu.dot_dimension_numbers<[1], [0], [0], [1], [0, 0, 1, 1], [], []>} : vector<16x32xf32>, vector<32x32xf32>, vector<16x32xf32> -> vector<16x32xf32>
    %291 = arith.addf %286, %290 : vector<16x32xf32>
    %c4_188 = arith.constant 4 : index
    %c0_189 = arith.constant 0 : index
    %c0_190 = arith.constant 0 : index
    %292 = vector.load %arg22[%c4_188, %c0_189, %c0_190] : memref<5x16x32xf32, #tpu.memory_space<vmem>>, vector<1x16x32xf32>
    %293 = vector.shape_cast %292 : vector<1x16x32xf32> to vector<16x32xf32>
    %294 = vector.extract_strided_slice %270 {offsets = [0, 4], sizes = [32, 32], strides = [1, 1]} : vector<32x36xf32> to vector<32x32xf32>
    %cst_191 = arith.constant dense<0.000000e+00> : vector<16x32xf32>
    %295 = tpu.matmul %293, %294, %cst_191 {dimension_numbers = #tpu.dot_dimension_numbers<[1], [0], [0], [1], [0, 0, 1, 1], [], []>} : vector<16x32xf32>, vector<32x32xf32>, vector<16x32xf32> -> vector<16x32xf32>
    %296 = arith.addf %291, %295 : vector<16x32xf32>
    %c0_192 = arith.constant 0 : index
    %c0_193 = arith.constant 0 : index
    %297 = vector.load %arg23[%c0_192, %c0_193] : memref<16x1xf32, #tpu.memory_space<vmem>>, vector<16x1xf32>
    %298 = vector.broadcast %297 : vector<16x1xf32> to vector<16x32xf32>
    %299 = arith.addf %296, %298 : vector<16x32xf32>
    %cst_194 = arith.constant 0.000000e+00 : f32
    %300 = vector.broadcast %cst_194 : f32 to vector<16x32xf32>
    %301 = arith.maximumf %299, %300 : vector<16x32xf32>
    %302 = tpu.concatenate %130, %301 in 0 : vector<16x32xf32>, vector<16x32xf32> -> vector<32x32xf32>
    %303 = tpu.iota {dimensions = array<i32: 0>} : vector<32x63xi32>
    %304 = tpu.iota {dimensions = array<i32: 1>} : vector<32x63xi32>
    %c2_i32_195 = arith.constant 2 : i32
    %305 = vector.broadcast %c2_i32_195 : i32 to vector<32x63xi32>
    %306 = arith.muli %305, %303 : vector<32x63xi32>
    %307 = arith.cmpi eq, %304, %306 : vector<32x63xi32>
    %cst_196 = arith.constant 1.000000e+00 : f32
    %cst_197 = arith.constant 0.000000e+00 : f32
    %308 = vector.broadcast %cst_196 : f32 to vector<32x63xf32>
    %309 = vector.broadcast %cst_197 : f32 to vector<32x63xf32>
    %310 = arith.select %307, %308, %309 : vector<32x63xi1>, vector<32x63xf32>
    %cst_198 = arith.constant dense<0.000000e+00> : vector<32x63xf32>
    %311 = tpu.matmul %302, %310, %cst_198 {dimension_numbers = #tpu.dot_dimension_numbers<[1], [0], [0], [1], [0, 0, 1, 1], [], []>} : vector<32x32xf32>, vector<32x63xf32>, vector<32x63xf32> -> vector<32x63xf32>
    %cst_199 = arith.constant 0.000000e+00 : f32
    %312 = vector.broadcast %cst_199 : f32 to vector<32x2xf32>
    %cst_200 = arith.constant 0.000000e+00 : f32
    %313 = vector.broadcast %cst_200 : f32 to vector<32x3xf32>
    %314 = tpu.concatenate %312, %311, %313 in 1 : vector<32x2xf32>, vector<32x63xf32>, vector<32x3xf32> -> vector<32x68xf32>
    %cst_201 = arith.constant 0.000000e+00 : f32
    %315 = vector.broadcast %cst_201 : f32 to vector<8x64xf32>
    %c0_202 = arith.constant 0 : index
    %c0_203 = arith.constant 0 : index
    %c0_204 = arith.constant 0 : index
    %316 = vector.load %arg20[%c0_202, %c0_203, %c0_204] : memref<5x8x32xf32, #tpu.memory_space<vmem>>, vector<1x8x32xf32>
    %317 = vector.shape_cast %316 : vector<1x8x32xf32> to vector<8x32xf32>
    %318 = vector.extract_strided_slice %314 {offsets = [0, 0], sizes = [32, 64], strides = [1, 1]} : vector<32x68xf32> to vector<32x64xf32>
    %cst_205 = arith.constant dense<0.000000e+00> : vector<8x64xf32>
    %319 = tpu.matmul %317, %318, %cst_205 {dimension_numbers = #tpu.dot_dimension_numbers<[1], [0], [0], [1], [0, 0, 1, 1], [], []>} : vector<8x32xf32>, vector<32x64xf32>, vector<8x64xf32> -> vector<8x64xf32>
    %320 = arith.addf %315, %319 : vector<8x64xf32>
    %c1_206 = arith.constant 1 : index
    %c0_207 = arith.constant 0 : index
    %c0_208 = arith.constant 0 : index
    %321 = vector.load %arg20[%c1_206, %c0_207, %c0_208] : memref<5x8x32xf32, #tpu.memory_space<vmem>>, vector<1x8x32xf32>
    %322 = vector.shape_cast %321 : vector<1x8x32xf32> to vector<8x32xf32>
    %323 = vector.extract_strided_slice %314 {offsets = [0, 1], sizes = [32, 64], strides = [1, 1]} : vector<32x68xf32> to vector<32x64xf32>
    %cst_209 = arith.constant dense<0.000000e+00> : vector<8x64xf32>
    %324 = tpu.matmul %322, %323, %cst_209 {dimension_numbers = #tpu.dot_dimension_numbers<[1], [0], [0], [1], [0, 0, 1, 1], [], []>} : vector<8x32xf32>, vector<32x64xf32>, vector<8x64xf32> -> vector<8x64xf32>
    %325 = arith.addf %320, %324 : vector<8x64xf32>
    %c2_210 = arith.constant 2 : index
    %c0_211 = arith.constant 0 : index
    %c0_212 = arith.constant 0 : index
    %326 = vector.load %arg20[%c2_210, %c0_211, %c0_212] : memref<5x8x32xf32, #tpu.memory_space<vmem>>, vector<1x8x32xf32>
    %327 = vector.shape_cast %326 : vector<1x8x32xf32> to vector<8x32xf32>
    %328 = vector.extract_strided_slice %314 {offsets = [0, 2], sizes = [32, 64], strides = [1, 1]} : vector<32x68xf32> to vector<32x64xf32>
    %cst_213 = arith.constant dense<0.000000e+00> : vector<8x64xf32>
    %329 = tpu.matmul %327, %328, %cst_213 {dimension_numbers = #tpu.dot_dimension_numbers<[1], [0], [0], [1], [0, 0, 1, 1], [], []>} : vector<8x32xf32>, vector<32x64xf32>, vector<8x64xf32> -> vector<8x64xf32>
    %330 = arith.addf %325, %329 : vector<8x64xf32>
    %c3_214 = arith.constant 3 : index
    %c0_215 = arith.constant 0 : index
    %c0_216 = arith.constant 0 : index
    %331 = vector.load %arg20[%c3_214, %c0_215, %c0_216] : memref<5x8x32xf32, #tpu.memory_space<vmem>>, vector<1x8x32xf32>
    %332 = vector.shape_cast %331 : vector<1x8x32xf32> to vector<8x32xf32>
    %333 = vector.extract_strided_slice %314 {offsets = [0, 3], sizes = [32, 64], strides = [1, 1]} : vector<32x68xf32> to vector<32x64xf32>
    %cst_217 = arith.constant dense<0.000000e+00> : vector<8x64xf32>
    %334 = tpu.matmul %332, %333, %cst_217 {dimension_numbers = #tpu.dot_dimension_numbers<[1], [0], [0], [1], [0, 0, 1, 1], [], []>} : vector<8x32xf32>, vector<32x64xf32>, vector<8x64xf32> -> vector<8x64xf32>
    %335 = arith.addf %330, %334 : vector<8x64xf32>
    %c4_218 = arith.constant 4 : index
    %c0_219 = arith.constant 0 : index
    %c0_220 = arith.constant 0 : index
    %336 = vector.load %arg20[%c4_218, %c0_219, %c0_220] : memref<5x8x32xf32, #tpu.memory_space<vmem>>, vector<1x8x32xf32>
    %337 = vector.shape_cast %336 : vector<1x8x32xf32> to vector<8x32xf32>
    %338 = vector.extract_strided_slice %314 {offsets = [0, 4], sizes = [32, 64], strides = [1, 1]} : vector<32x68xf32> to vector<32x64xf32>
    %cst_221 = arith.constant dense<0.000000e+00> : vector<8x64xf32>
    %339 = tpu.matmul %337, %338, %cst_221 {dimension_numbers = #tpu.dot_dimension_numbers<[1], [0], [0], [1], [0, 0, 1, 1], [], []>} : vector<8x32xf32>, vector<32x64xf32>, vector<8x64xf32> -> vector<8x64xf32>
    %340 = arith.addf %335, %339 : vector<8x64xf32>
    %c0_222 = arith.constant 0 : index
    %c0_223 = arith.constant 0 : index
    %341 = vector.load %arg21[%c0_222, %c0_223] : memref<8x1xf32, #tpu.memory_space<vmem>>, vector<8x1xf32>
    %342 = vector.broadcast %341 : vector<8x1xf32> to vector<8x64xf32>
    %343 = arith.addf %340, %342 : vector<8x64xf32>
    %cst_224 = arith.constant 0.000000e+00 : f32
    %344 = vector.broadcast %cst_224 : f32 to vector<8x64xf32>
    %345 = arith.maximumf %343, %344 : vector<8x64xf32>
    %346 = tpu.concatenate %88, %345 in 0 : vector<8x64xf32>, vector<8x64xf32> -> vector<16x64xf32>
    %347 = tpu.iota {dimensions = array<i32: 0>} : vector<64x127xi32>
    %348 = tpu.iota {dimensions = array<i32: 1>} : vector<64x127xi32>
    %c2_i32_225 = arith.constant 2 : i32
    %349 = vector.broadcast %c2_i32_225 : i32 to vector<64x127xi32>
    %350 = arith.muli %349, %347 : vector<64x127xi32>
    %351 = arith.cmpi eq, %348, %350 : vector<64x127xi32>
    %cst_226 = arith.constant 1.000000e+00 : f32
    %cst_227 = arith.constant 0.000000e+00 : f32
    %352 = vector.broadcast %cst_226 : f32 to vector<64x127xf32>
    %353 = vector.broadcast %cst_227 : f32 to vector<64x127xf32>
    %354 = arith.select %351, %352, %353 : vector<64x127xi1>, vector<64x127xf32>
    %cst_228 = arith.constant dense<0.000000e+00> : vector<16x127xf32>
    %355 = tpu.matmul %346, %354, %cst_228 {dimension_numbers = #tpu.dot_dimension_numbers<[1], [0], [0], [1], [0, 0, 1, 1], [], []>} : vector<16x64xf32>, vector<64x127xf32>, vector<16x127xf32> -> vector<16x127xf32>
    %cst_229 = arith.constant 0.000000e+00 : f32
    %356 = vector.broadcast %cst_229 : f32 to vector<16x2xf32>
    %cst_230 = arith.constant 0.000000e+00 : f32
    %357 = vector.broadcast %cst_230 : f32 to vector<16x3xf32>
    %358 = tpu.concatenate %356, %355, %357 in 1 : vector<16x2xf32>, vector<16x127xf32>, vector<16x3xf32> -> vector<16x132xf32>
    %cst_231 = arith.constant 0.000000e+00 : f32
    %359 = vector.broadcast %cst_231 : f32 to vector<8x128xf32>
    %c0_232 = arith.constant 0 : index
    %c0_233 = arith.constant 0 : index
    %c0_234 = arith.constant 0 : index
    %360 = vector.load %arg18[%c0_232, %c0_233, %c0_234] : memref<5x8x16xf32, #tpu.memory_space<vmem>>, vector<1x8x16xf32>
    %361 = vector.shape_cast %360 : vector<1x8x16xf32> to vector<8x16xf32>
    %362 = vector.extract_strided_slice %358 {offsets = [0, 0], sizes = [16, 128], strides = [1, 1]} : vector<16x132xf32> to vector<16x128xf32>
    %cst_235 = arith.constant dense<0.000000e+00> : vector<8x128xf32>
    %363 = tpu.matmul %361, %362, %cst_235 {dimension_numbers = #tpu.dot_dimension_numbers<[1], [0], [0], [1], [0, 0, 1, 1], [], []>} : vector<8x16xf32>, vector<16x128xf32>, vector<8x128xf32> -> vector<8x128xf32>
    %364 = arith.addf %359, %363 : vector<8x128xf32>
    %c1_236 = arith.constant 1 : index
    %c0_237 = arith.constant 0 : index
    %c0_238 = arith.constant 0 : index
    %365 = vector.load %arg18[%c1_236, %c0_237, %c0_238] : memref<5x8x16xf32, #tpu.memory_space<vmem>>, vector<1x8x16xf32>
    %366 = vector.shape_cast %365 : vector<1x8x16xf32> to vector<8x16xf32>
    %367 = vector.extract_strided_slice %358 {offsets = [0, 1], sizes = [16, 128], strides = [1, 1]} : vector<16x132xf32> to vector<16x128xf32>
    %cst_239 = arith.constant dense<0.000000e+00> : vector<8x128xf32>
    %368 = tpu.matmul %366, %367, %cst_239 {dimension_numbers = #tpu.dot_dimension_numbers<[1], [0], [0], [1], [0, 0, 1, 1], [], []>} : vector<8x16xf32>, vector<16x128xf32>, vector<8x128xf32> -> vector<8x128xf32>
    %369 = arith.addf %364, %368 : vector<8x128xf32>
    %c2_240 = arith.constant 2 : index
    %c0_241 = arith.constant 0 : index
    %c0_242 = arith.constant 0 : index
    %370 = vector.load %arg18[%c2_240, %c0_241, %c0_242] : memref<5x8x16xf32, #tpu.memory_space<vmem>>, vector<1x8x16xf32>
    %371 = vector.shape_cast %370 : vector<1x8x16xf32> to vector<8x16xf32>
    %372 = vector.extract_strided_slice %358 {offsets = [0, 2], sizes = [16, 128], strides = [1, 1]} : vector<16x132xf32> to vector<16x128xf32>
    %cst_243 = arith.constant dense<0.000000e+00> : vector<8x128xf32>
    %373 = tpu.matmul %371, %372, %cst_243 {dimension_numbers = #tpu.dot_dimension_numbers<[1], [0], [0], [1], [0, 0, 1, 1], [], []>} : vector<8x16xf32>, vector<16x128xf32>, vector<8x128xf32> -> vector<8x128xf32>
    %374 = arith.addf %369, %373 : vector<8x128xf32>
    %c3_244 = arith.constant 3 : index
    %c0_245 = arith.constant 0 : index
    %c0_246 = arith.constant 0 : index
    %375 = vector.load %arg18[%c3_244, %c0_245, %c0_246] : memref<5x8x16xf32, #tpu.memory_space<vmem>>, vector<1x8x16xf32>
    %376 = vector.shape_cast %375 : vector<1x8x16xf32> to vector<8x16xf32>
    %377 = vector.extract_strided_slice %358 {offsets = [0, 3], sizes = [16, 128], strides = [1, 1]} : vector<16x132xf32> to vector<16x128xf32>
    %cst_247 = arith.constant dense<0.000000e+00> : vector<8x128xf32>
    %378 = tpu.matmul %376, %377, %cst_247 {dimension_numbers = #tpu.dot_dimension_numbers<[1], [0], [0], [1], [0, 0, 1, 1], [], []>} : vector<8x16xf32>, vector<16x128xf32>, vector<8x128xf32> -> vector<8x128xf32>
    %379 = arith.addf %374, %378 : vector<8x128xf32>
    %c4_248 = arith.constant 4 : index
    %c0_249 = arith.constant 0 : index
    %c0_250 = arith.constant 0 : index
    %380 = vector.load %arg18[%c4_248, %c0_249, %c0_250] : memref<5x8x16xf32, #tpu.memory_space<vmem>>, vector<1x8x16xf32>
    %381 = vector.shape_cast %380 : vector<1x8x16xf32> to vector<8x16xf32>
    %382 = vector.extract_strided_slice %358 {offsets = [0, 4], sizes = [16, 128], strides = [1, 1]} : vector<16x132xf32> to vector<16x128xf32>
    %cst_251 = arith.constant dense<0.000000e+00> : vector<8x128xf32>
    %383 = tpu.matmul %381, %382, %cst_251 {dimension_numbers = #tpu.dot_dimension_numbers<[1], [0], [0], [1], [0, 0, 1, 1], [], []>} : vector<8x16xf32>, vector<16x128xf32>, vector<8x128xf32> -> vector<8x128xf32>
    %384 = arith.addf %379, %383 : vector<8x128xf32>
    %c0_252 = arith.constant 0 : index
    %c0_253 = arith.constant 0 : index
    %385 = vector.load %arg19[%c0_252, %c0_253] : memref<8x1xf32, #tpu.memory_space<vmem>>, vector<8x1xf32>
    %386 = vector.broadcast %385 : vector<8x1xf32> to vector<8x128xf32>
    %387 = arith.addf %384, %386 : vector<8x128xf32>
    %cst_254 = arith.constant 0.000000e+00 : f32
    %388 = vector.broadcast %cst_254 : f32 to vector<8x128xf32>
    %389 = arith.maximumf %387, %388 : vector<8x128xf32>
    %c0_255 = arith.constant 0 : index
    %c0_256 = arith.constant 0 : index
    %390 = vector.load %arg26[%c0_255, %c0_256] : memref<3x8xf32, #tpu.memory_space<vmem>>, vector<3x8xf32>
    %cst_257 = arith.constant dense<0.000000e+00> : vector<3x128xf32>
    %391 = tpu.matmul %390, %389, %cst_257 {dimension_numbers = #tpu.dot_dimension_numbers<[1], [0], [0], [1], [0, 0, 1, 1], [], []>} : vector<3x8xf32>, vector<8x128xf32>, vector<3x128xf32> -> vector<3x128xf32>
    %c0_258 = arith.constant 0 : index
    %c0_259 = arith.constant 0 : index
    %392 = vector.load %arg27[%c0_258, %c0_259] : memref<3x1xf32, #tpu.memory_space<vmem>>, vector<3x1xf32>
    %393 = vector.broadcast %392 : vector<3x1xf32> to vector<3x128xf32>
    %394 = arith.addf %391, %393 : vector<3x128xf32>
    %c0_260 = arith.constant 0 : index
    %c0_261 = arith.constant 0 : index
    %c0_262 = arith.constant 0 : index
    %395 = vector.load %arg4[%c0_260, %c0_261, %c0_262] : memref<1x12x1xf32, #tpu.memory_space<vmem>>, vector<1x12x1xf32>
    %396 = vector.shape_cast %395 : vector<1x12x1xf32> to vector<12x1xf32>
    %397 = vector.broadcast %396 : vector<12x1xf32> to vector<12x128xf32>
    %398 = vector.broadcast %0 : vector<1x128xf32> to vector<12x128xf32>
    %399 = arith.subf %397, %398 : vector<12x128xf32>
    %400 = arith.mulf %399, %399 : vector<12x128xf32>
    %cst_263 = arith.constant -1.280000e+02 : f32
    %401 = vector.broadcast %cst_263 : f32 to vector<12x128xf32>
    %402 = arith.mulf %400, %401 : vector<12x128xf32>
    %403 = math.exp %402 : vector<12x128xf32>
    %404 = vector.extract_strided_slice %394 {offsets = [0, 0], sizes = [1, 128], strides = [1, 1]} : vector<3x128xf32> to vector<1x128xf32>
    %cst_264 = arith.constant dense<0.000000e+00> : vector<1x12xf32>
    %405 = tpu.matmul %404, %403, %cst_264 {dimension_numbers = #tpu.dot_dimension_numbers<[1], [1], [0], [0], [0, 0, 1, 0], [], []>} : vector<1x128xf32>, vector<12x128xf32>, vector<1x12xf32> -> vector<1x12xf32>
    %c0_265 = arith.constant 0 : index
    %c0_266 = arith.constant 0 : index
    %c0_267 = arith.constant 0 : index
    %406 = vector.load %arg28[%c0_265, %c0_266, %c0_267] : memref<1x1x12xf32, #tpu.memory_space<vmem>>, vector<1x1x12xf32>
    %407 = vector.shape_cast %406 : vector<1x1x12xf32> to vector<1x12xf32>
    %408 = vector.shape_cast %405 : vector<1x12xf32> to vector<1x1x12xf32>
    tpu.vector_store %arg28[%c0_265, %c0_266, %c0_267], %408 {strides = array<i32>} : memref<1x1x12xf32, #tpu.memory_space<vmem>>, vector<1x1x12xf32>,
    %c0_268 = arith.constant 0 : index
    %c0_269 = arith.constant 0 : index
    %c0_270 = arith.constant 0 : index
    %409 = vector.load %arg7[%c0_268, %c0_269, %c0_270] : memref<1x9x1xf32, #tpu.memory_space<vmem>>, vector<1x9x1xf32>
    %410 = vector.shape_cast %409 : vector<1x9x1xf32> to vector<9x1xf32>
    %411 = vector.broadcast %410 : vector<9x1xf32> to vector<9x128xf32>
    %412 = vector.broadcast %0 : vector<1x128xf32> to vector<9x128xf32>
    %413 = arith.subf %411, %412 : vector<9x128xf32>
    %414 = arith.mulf %413, %413 : vector<9x128xf32>
    %cst_271 = arith.constant -1.280000e+02 : f32
    %415 = vector.broadcast %cst_271 : f32 to vector<9x128xf32>
    %416 = arith.mulf %414, %415 : vector<9x128xf32>
    %417 = math.exp %416 : vector<9x128xf32>
    %418 = vector.extract_strided_slice %394 {offsets = [1, 0], sizes = [2, 128], strides = [1, 1]} : vector<3x128xf32> to vector<2x128xf32>
    %cst_272 = arith.constant dense<0.000000e+00> : vector<2x9xf32>
    %419 = tpu.matmul %418, %417, %cst_272 {dimension_numbers = #tpu.dot_dimension_numbers<[1], [1], [0], [0], [0, 0, 1, 0], [], []>} : vector<2x128xf32>, vector<9x128xf32>, vector<2x9xf32> -> vector<2x9xf32>
    %c0_273 = arith.constant 0 : index
    %c0_274 = arith.constant 0 : index
    %c0_275 = arith.constant 0 : index
    %420 = vector.load %arg29[%c0_273, %c0_274, %c0_275] : memref<1x2x9xf32, #tpu.memory_space<vmem>>, vector<1x2x9xf32>
    %421 = vector.shape_cast %420 : vector<1x2x9xf32> to vector<2x9xf32>
    %422 = vector.shape_cast %419 : vector<2x9xf32> to vector<1x2x9xf32>
    tpu.vector_store %arg29[%c0_273, %c0_274, %c0_275], %422 {strides = array<i32>} : memref<1x2x9xf32, #tpu.memory_space<vmem>>, vector<1x2x9xf32>,
    return
  }
  func.func @transform_0(%arg0: i32) -> (i32, i32) {
    %c0_i32 = arith.constant 0 : i32
    %c0_i32_0 = arith.constant 0 : i32
    %c0_i32_1 = arith.constant 0 : i32
    return %c0_i32, %c0_i32_0 : i32, i32
  }
  func.func @transform_1(%arg0: i32) -> (i32, i32, i32) {
    %c0_i32 = arith.constant 0 : i32
    %c0_i32_0 = arith.constant 0 : i32
    %c0_i32_1 = arith.constant 0 : i32
    return %arg0, %c0_i32, %c0_i32_0 : i32, i32, i32
  }
  func.func @transform_2(%arg0: i32) -> (i32, i32, i32) {
    %c0_i32 = arith.constant 0 : i32
    %c0_i32_0 = arith.constant 0 : i32
    %c0_i32_1 = arith.constant 0 : i32
    return %arg0, %c0_i32, %c0_i32_0 : i32, i32, i32
  }
  func.func @transform_3(%arg0: i32) -> (i32, i32, i32) {
    %c0_i32 = arith.constant 0 : i32
    %c0_i32_0 = arith.constant 0 : i32
    %c0_i32_1 = arith.constant 0 : i32
    return %arg0, %c0_i32, %c0_i32_0 : i32, i32, i32
  }
  func.func @transform_4(%arg0: i32) -> (i32, i32, i32) {
    %c0_i32 = arith.constant 0 : i32
    %c0_i32_0 = arith.constant 0 : i32
    %c0_i32_1 = arith.constant 0 : i32
    return %arg0, %c0_i32, %c0_i32_0 : i32, i32, i32
  }
  func.func @transform_5(%arg0: i32) -> (i32, i32, i32) {
    %c0_i32 = arith.constant 0 : i32
    %c0_i32_0 = arith.constant 0 : i32
    %c0_i32_1 = arith.constant 0 : i32
    return %arg0, %c0_i32, %c0_i32_0 : i32, i32, i32
  }
  func.func @transform_6(%arg0: i32) -> (i32, i32, i32) {
    %c0_i32 = arith.constant 0 : i32
    %c0_i32_0 = arith.constant 0 : i32
    %c0_i32_1 = arith.constant 0 : i32
    return %arg0, %c0_i32, %c0_i32_0 : i32, i32, i32
  }
  func.func @transform_7(%arg0: i32) -> (i32, i32) {
    %c0_i32 = arith.constant 0 : i32
    %c0_i32_0 = arith.constant 0 : i32
    %c0_i32_1 = arith.constant 0 : i32
    return %c0_i32, %c0_i32_0 : i32, i32
  }
  func.func @transform_8(%arg0: i32) -> (i32, i32) {
    %c0_i32 = arith.constant 0 : i32
    %c0_i32_0 = arith.constant 0 : i32
    %c0_i32_1 = arith.constant 0 : i32
    return %c0_i32, %c0_i32_0 : i32, i32
  }
  func.func @transform_9(%arg0: i32) -> (i32, i32, i32) {
    %c0_i32 = arith.constant 0 : i32
    %c0_i32_0 = arith.constant 0 : i32
    %c0_i32_1 = arith.constant 0 : i32
    %c0_i32_2 = arith.constant 0 : i32
    return %c0_i32, %c0_i32_0, %c0_i32_1 : i32, i32, i32
  }
  func.func @transform_10(%arg0: i32) -> (i32, i32) {
    %c0_i32 = arith.constant 0 : i32
    %c0_i32_0 = arith.constant 0 : i32
    %c0_i32_1 = arith.constant 0 : i32
    return %c0_i32, %c0_i32_0 : i32, i32
  }
  func.func @transform_11(%arg0: i32) -> (i32, i32, i32) {
    %c0_i32 = arith.constant 0 : i32
    %c0_i32_0 = arith.constant 0 : i32
    %c0_i32_1 = arith.constant 0 : i32
    %c0_i32_2 = arith.constant 0 : i32
    return %c0_i32, %c0_i32_0, %c0_i32_1 : i32, i32, i32
  }
  func.func @transform_12(%arg0: i32) -> (i32, i32) {
    %c0_i32 = arith.constant 0 : i32
    %c0_i32_0 = arith.constant 0 : i32
    %c0_i32_1 = arith.constant 0 : i32
    return %c0_i32, %c0_i32_0 : i32, i32
  }
  func.func @transform_13(%arg0: i32) -> (i32, i32, i32) {
    %c0_i32 = arith.constant 0 : i32
    %c0_i32_0 = arith.constant 0 : i32
    %c0_i32_1 = arith.constant 0 : i32
    %c0_i32_2 = arith.constant 0 : i32
    return %c0_i32, %c0_i32_0, %c0_i32_1 : i32, i32, i32
  }
  func.func @transform_14(%arg0: i32) -> (i32, i32) {
    %c0_i32 = arith.constant 0 : i32
    %c0_i32_0 = arith.constant 0 : i32
    %c0_i32_1 = arith.constant 0 : i32
    return %c0_i32, %c0_i32_0 : i32, i32
  }
  func.func @transform_15(%arg0: i32) -> (i32, i32, i32) {
    %c0_i32 = arith.constant 0 : i32
    %c0_i32_0 = arith.constant 0 : i32
    %c0_i32_1 = arith.constant 0 : i32
    %c0_i32_2 = arith.constant 0 : i32
    return %c0_i32, %c0_i32_0, %c0_i32_1 : i32, i32, i32
  }
  func.func @transform_16(%arg0: i32) -> (i32, i32) {
    %c0_i32 = arith.constant 0 : i32
    %c0_i32_0 = arith.constant 0 : i32
    %c0_i32_1 = arith.constant 0 : i32
    return %c0_i32, %c0_i32_0 : i32, i32
  }
  func.func @transform_17(%arg0: i32) -> (i32, i32, i32) {
    %c0_i32 = arith.constant 0 : i32
    %c0_i32_0 = arith.constant 0 : i32
    %c0_i32_1 = arith.constant 0 : i32
    %c0_i32_2 = arith.constant 0 : i32
    return %c0_i32, %c0_i32_0, %c0_i32_1 : i32, i32, i32
  }
  func.func @transform_18(%arg0: i32) -> (i32, i32) {
    %c0_i32 = arith.constant 0 : i32
    %c0_i32_0 = arith.constant 0 : i32
    %c0_i32_1 = arith.constant 0 : i32
    return %c0_i32, %c0_i32_0 : i32, i32
  }
  func.func @transform_19(%arg0: i32) -> (i32, i32, i32) {
    %c0_i32 = arith.constant 0 : i32
    %c0_i32_0 = arith.constant 0 : i32
    %c0_i32_1 = arith.constant 0 : i32
    %c0_i32_2 = arith.constant 0 : i32
    return %c0_i32, %c0_i32_0, %c0_i32_1 : i32, i32, i32
  }
  func.func @transform_20(%arg0: i32) -> (i32, i32) {
    %c0_i32 = arith.constant 0 : i32
    %c0_i32_0 = arith.constant 0 : i32
    %c0_i32_1 = arith.constant 0 : i32
    return %c0_i32, %c0_i32_0 : i32, i32
  }
  func.func @transform_21(%arg0: i32) -> (i32, i32, i32) {
    %c0_i32 = arith.constant 0 : i32
    %c0_i32_0 = arith.constant 0 : i32
    %c0_i32_1 = arith.constant 0 : i32
    %c0_i32_2 = arith.constant 0 : i32
    return %c0_i32, %c0_i32_0, %c0_i32_1 : i32, i32, i32
  }
  func.func @transform_22(%arg0: i32) -> (i32, i32) {
    %c0_i32 = arith.constant 0 : i32
    %c0_i32_0 = arith.constant 0 : i32
    %c0_i32_1 = arith.constant 0 : i32
    return %c0_i32, %c0_i32_0 : i32, i32
  }
  func.func @transform_23(%arg0: i32) -> (i32, i32, i32) {
    %c0_i32 = arith.constant 0 : i32
    %c0_i32_0 = arith.constant 0 : i32
    %c0_i32_1 = arith.constant 0 : i32
    %c0_i32_2 = arith.constant 0 : i32
    return %c0_i32, %c0_i32_0, %c0_i32_1 : i32, i32, i32
  }
  func.func @transform_24(%arg0: i32) -> (i32, i32) {
    %c0_i32 = arith.constant 0 : i32
    %c0_i32_0 = arith.constant 0 : i32
    %c0_i32_1 = arith.constant 0 : i32
    return %c0_i32, %c0_i32_0 : i32, i32
  }
  func.func @transform_25(%arg0: i32) -> (i32, i32) {
    %c0_i32 = arith.constant 0 : i32
    %c0_i32_0 = arith.constant 0 : i32
    %c0_i32_1 = arith.constant 0 : i32
    return %c0_i32, %c0_i32_0 : i32, i32
  }
  func.func @transform_26(%arg0: i32) -> (i32, i32) {
    %c0_i32 = arith.constant 0 : i32
    %c0_i32_0 = arith.constant 0 : i32
    %c0_i32_1 = arith.constant 0 : i32
    return %c0_i32, %c0_i32_0 : i32, i32
  }
  func.func @transform_27(%arg0: i32) -> (i32, i32, i32) {
    %c0_i32 = arith.constant 0 : i32
    %c0_i32_0 = arith.constant 0 : i32
    %c0_i32_1 = arith.constant 0 : i32
    return %arg0, %c0_i32, %c0_i32_0 : i32, i32, i32
  }
  func.func @transform_28(%arg0: i32) -> (i32, i32, i32) {
    %c0_i32 = arith.constant 0 : i32
    %c0_i32_0 = arith.constant 0 : i32
    %c0_i32_1 = arith.constant 0 : i32
    return %arg0, %c0_i32, %c0_i32_0 : i32, i32, i32
  }
}

</mosaic_0001>

<bundles_post_ra>
// kernel: multi_convcnp_fused_forward.1
= control target key start
LH: loop header
LB: loop body
LE: loop exit
PB: predicated region body
PF: predicated region fallthrough
CT: control target
= control target key end

     0   :  { %s9339_s0 = inlined_call_operand.vmem [shape: f32[1,128], index: 0, kind: input, shape index: {}]   ;;  %s9340_s1 = inlined_call_operand.vmem [shape: f32[2,10,1], index: 1, kind: input, shape index: {}]   ;;  %s9341_s2 = inlined_call_operand.vmem [shape: f32[2,2,10], index: 2, kind: input, shape index: {}]   ;;  %s9342_s3 = inlined_call_operand.vmem [shape: f32[2,12,1], index: 3, kind: input, shape index: {}]   ;;  %s9343_s4 = inlined_call_operand.vmem [shape: f32[2,7,1], index: 4, kind: input, shape index: {}]   ;;  %s9344_s5 = inlined_call_operand.vmem [shape: f32[2,2,7], index: 5, kind: input, shape index: {}]   ;;  %s9345_s6 = inlined_call_operand.vmem [shape: f32[2,9,1], index: 6, kind: input, shape index: {}]   ;;  %s9346_s7 = inlined_call_operand.vmem [shape: f32[8,4], index: 7, kind: input, shape index: {}]   ;;  %s9347_s8 = inlined_call_operand.vmem [shape: f32[8,1], index: 8, kind: input, shape index: {}]   ;;  %s9348_s9 = inlined_call_operand.vmem [shape: f32[5,8,8], index: 9, kind: input, shape index: {}]   ;;  %s9349_s10 = inlined_call_operand.vmem [shape: f32[8,1], index: 10, kind: input, shape index: {}]   ;;  %s9350_s11 = inlined_call_operand.vmem [shape: f32[5,16,8], index: 11, kind: input, shape index: {}]   ;;  %s9351_s12 = inlined_call_operand.vmem [shape: f32[16,1], index: 12, kind: input, shape index: {}]   ;;  %s9352_s13 = inlined_call_operand.vmem [shape: f32[5,16,16], index: 13, kind: input, shape index: {}]   ;;  %s9353_s14 = inlined_call_operand.vmem [shape: f32[16,1], index: 14, kind: input, shape index: {}]   ;;  %s9354_s15 = inlined_call_operand.vmem [shape: f32[5,32,16], index: 15, kind: input, shape index: {}]   ;;  %s9355_s16 = inlined_call_operand.vmem [shape: f32[32,1], index: 16, kind: input, shape index: {}]   ;;  %s9356_s17 = inlined_call_operand.vmem [shape: f32[5,8,16], index: 17, kind: input, shape index: {}]   ;;  %s9357_s18 = inlined_call_operand.vmem [shape: f32[8,1], index: 18, kind: input, shape index: {}]   ;;  %s9358_s19 = inlined_call_operand.vmem [shape: f32[5,8,32], index: 19, kind: input, shape index: {}]   ;;  %s9359_s20 = inlined_call_operand.vmem [shape: f32[8,1], index: 20, kind: input, shape index: {}]   ;;  %s9360_s21 = inlined_call_operand.vmem [shape: f32[5,16,32], index: 21, kind: input, shape index: {}]   ;;  %s9361_s22 = inlined_call_operand.vmem [shape: f32[16,1], index: 22, kind: input, shape index: {}]   ;;  %s9362_s23 = inlined_call_operand.vmem [shape: f32[5,16,32], index: 23, kind: input, shape index: {}]   ;;  %s9363_s24 = inlined_call_operand.vmem [shape: f32[16,1], index: 24, kind: input, shape index: {}]   ;;  %s9364_s25 = inlined_call_operand.vmem [shape: f32[3,8], index: 25, kind: input, shape index: {}]   ;;  %s9365_s26 = inlined_call_operand.vmem [shape: f32[3,1], index: 26, kind: input, shape index: {}]   ;;  %s9366_s27 = inlined_call_operand.hbm [shape: f32[2,1,12], index: 27, kind: output, shape index: {0}]   ;;  %s9367_s28 = inlined_call_operand.hbm [shape: f32[2,2,9], index: 28, kind: output, shape index: {1}]  }
   0x1   :  { %9394 = sst [smem:[#allocation14_spill]] %s9339_s0 }
   0x2   :  { %9395 = sst [smem:[#allocation15_spill]] %s9340_s1 }
   0x3   :  { %9396 = sst [smem:[#allocation16_spill]] %s9341_s2 }
   0x4   :  { %9397 = sst [smem:[#allocation17_spill]] %s9342_s3 }
   0x5   :  { %9398 = sst [smem:[#allocation18_spill]] %s9343_s4 }
   0x6   :  { %9399 = sst [smem:[#allocation19_spill]] %s9344_s5 }
   0x7   :  { %9400 = sst [smem:[#allocation20_spill]] %s9345_s6 }
   0x8   :  { %9401 = sst [smem:[#allocation21_spill]] %s9346_s7 }
   0x9   :  { %9402 = sst [smem:[#allocation22_spill]] %s9347_s8 }
   0xa   :  { %9403 = sst [smem:[#allocation23_spill]] %s9348_s9 }
   0xb   :  { %9404 = sst [smem:[#allocation24_spill]] %s9349_s10 }
   0xc   :  { %9405 = sst [smem:[#allocation25_spill]] %s9350_s11 }
   0xd   :  { %9406 = sst [smem:[#allocation26_spill]] %s9351_s12 }
   0xe   :  { %9407 = sst [smem:[#allocation27_spill]] %s9352_s13 }
   0xf   :  { %9408 = sst [smem:[#allocation28_spill]] %s9353_s14 }
  0x10   :  { %9409 = sst [smem:[#allocation29_spill]] %s9366_s27 }
  0x11   :  { %9410 = sst [smem:[#allocation30_spill]] %s9367_s28 }
  0x12   :  { %34 = vsyncpa [#allocation3], 0 }
  0x13   :  { %36 = vsyncpa [#allocation3 + $0x1], 0 }
  0x14   :  { %37 = vsyncpa [#allocation5], 0 }
  0x15   :  { %39 = vsyncpa [#allocation5 + $0x1], 0  ;;  %s8280_s8 = smov 0   ;;  %s8282_s5 = smov 0  }
  0x16   :  { %s8284_s9 = smov 0   ;;  %s8286_s30 = smov 0  }
  0x17 LB: > { %9411 = sst [smem:[#allocation8_spill]] %s8107_s8  ;;  %s8301_s3 = sadd.s32 4294967295, %s8119_s30   ;;  %s8119_s30 = sphi %s8286_s30, %s9465_s30   ;;  %s8115_s9 = sphi %s8284_s9, %s9467_s9   ;;  %s8111_s5 = sphi %s8282_s5, %s9469_s5   ;;  %s8107_s8 = sphi %s8280_s8, %s9468_s8  }
  0x18   : > { %9412 = sst [smem:[#allocation9_spill]] %s8115_s9  ;;  %s6367_s6 = sadd.s32 4294967294, %s8119_s30  }
  0x19   : > { %9413 = sst [smem:[#allocation10_spill]] %s8119_s30  ;;  %s8305_s10 = sadd.s32 1, %s8119_s30  }
  0x1a   : > { %9414 = sst [smem:[#allocation11_spill]] %s8305_s10  ;;  %s649_s0 = sadd.s32 1, %s8115_s9 }
  0x1b   : > { %s646_s11 = ssub.s32 %s8119_s30, %s8305_s10  ;;  %p659_p0 = scmp.ne.s32.totalorder %s8115_s9, %s8111_s5 }
  0x1c   : > { %p647_p1 = scmp.eq.s32.totalorder %s646_s11, 0  ;;  %p660_p2 = scmp.eq.s32.totalorder %s8301_s3, 1 }
  0x1d   : > { %p665_p3 = scmp.ne.s32.totalorder %s8111_s5, %s8107_s8  ;;  %p666_p4 = scmp.eq.s32.totalorder %s6367_s6, 1 }
  0x1e   : > { %s8316_s29 = scalar_select %p647_p1, %s8115_s9, %s649_s0  }
  0x1f   : > { %p8318_p5 = por %p660_p2, %p659_p0  ;;  %p8322_p6 = por %p666_p4, %p665_p3 }
  0x20   : > { %9415 = sst [smem:[#allocation12_spill]] %s8316_s29  ;;  %p6370_p7 = scmp.ge.s32.totalorder %s8119_s30, 1 }
  0x21   : > { %s9417_s7 = scalar_select %p8322_p6, 1, 0 }
  0x22   : > { %p818_p8 = scmp.lt.s32.totalorder %s8119_s30, 3 }
  0x23   : > { %9418 = sst [smem:[#allocation13_spill]] %s9417_s7 }
  0x24   : > { %p819_p9 = pnand %p6370_p7, %p818_p8 }
  0x25   : > { %p918_p10 = scmp.lt.s32.totalorder (!%p819_p9), %s8301_s3, 1  ;;  %v8121_v0 = vmov (!%p819_p9), 0   ;;  %s9419_s11 = sld [smem:[#allocation18_spill]] (!%p819_p9)  ;;  %v8122_v5 = vmov (!%p819_p9), 0.0   ;;  %vm8123_vm0 = vmmov (!%p819_p9), 0   ;;  %v8124_v6 = vmov (!%p819_p9), 0.0|0.0  }
  0x26   : > { %822 = sbr.rel (%p819_p9) target bundleno = 6741 (0x1a55), region = 128  ;;  %7760 = vset.pattern.permute.xlu1 (!%p819_p9), %v8121_v0  ;;  %7759 = vset.pattern.permute.xlu0 (!%p819_p9), %v8121_v0  ;;  %s9420_s7 = sld [smem:[#allocation15_spill]] (!%p819_p9)  ;;  %vm1077_vm1 = vcmask (!%p819_p9), 1046528   ;;  %vm1073_vm2 = vcmask (!%p819_p9), 56320   ;;  %vm979_vm3 = vcmask (!%p819_p9), 1041408   ;;  %vm8125_vm4 = vmmov (!%p819_p9), 1  }
  0x27   : > { %s9421_s27 = sld [smem:[#allocation22_spill]] (!%p819_p9)  ;;  %6887 = vmatprep.subr.mxu1 (!%p819_p9), %v8122_v5  ;;  %6889 = vmatprep.mubr.msk.f32.mxu1 (!%p819_p9), %vm8123_vm0, %v8122_v5  ;;  %vm7379_vm5 = vmpackc.low (!%p819_p9), %vm979_vm3, %vm8125_vm4  ;;  %s9424_s6 = sld [smem:[#allocation16_spill]] (!%p819_p9)  ;;  %vm975_vm6 = vcmask (!%p819_p9), 80896   ;;  %vm1059_vm7 = vcmask (!%p819_p9), 1040384   ;;  %vm1173_vm8 = vcmask (!%p819_p9), 1043456   ;;  %vm1169_vm9 = vcmask (!%p819_p9), 31744  }
  0x28   : > { %6884 = vmatprep.mubr.msk.f32.mxu0 (!%p819_p9), %vm8123_vm0, %v8122_v5  ;;  %7377 = vmatprep.subr.bf16.mxu0 (!%p819_p9), %v8124_v6  ;;  %s9422_s10 = sld [smem:[#allocation14_spill]] (!%p819_p9)  ;;  %s9425_s9 = sld [smem:[#allocation21_spill]] (!%p819_p9)  ;;  %vm1252_vm10 = vcmask (!%p819_p9), 15360   ;;  %v1663_v55 = vlaneseq (!%p819_p9) }
  0x29   : > { %s9383_s28 = smov (!%p819_p9), 127   ;;  %s9389_s30 = smov (!%p819_p9), 126  }
  0x2a   : > { %v8394_v56 = vshrl.u32 (!%p819_p9), %v1663_v55, 7  ;;  %v8396_v57 = vand.u32 (!%p819_p9), 127, %v1663_v55  ;;  %s9442_s13 = sld [smem:[#allocation27_spill]] (!%p819_p9)  ;;  %s9445_s14 = sld [smem:[#allocation28_spill]] (!%p819_p9) }
  0x2c   : > { %v8399_v58 = vadd.s32 (!%p819_p9), 8, %v8394_v56  ;;  %v1682_v59 = vmul.u32 (!%p819_p9), 2, %v8396_v57  ;;  %v8403_v60 = vadd.s32 (!%p819_p9), 16, %v8394_v56  ;;  %v8406_v61 = vadd.s32 (!%p819_p9), 24, %v8394_v56 }
  0x2d   : > { %s8330_s12 = scalar_select %p918_p10, %s8301_s3, 1  ;;  %v1163_v4 = vld [vmem:[%s9421_s27] sm:$0xff]  ;;  %v8409_v62 = vadd.s32 32, %v8394_v56  ;;  %v8412_v63 = vadd.s32 40, %v8394_v56 }
  0x2e   : > { %v6381_v7 = vld [vmem:[%s9422_s10] ss:$0 sm:$0xff]  ;;  %vm1683_vm11 = vcmp.eq.s32.totalorder %v8394_v56, %v1682_v59  ;;  %vm1684_vm12 = vcmp.eq.s32.totalorder %v8399_v58, %v1682_v59  ;;  %vm1685_vm13 = vcmp.eq.s32.totalorder %v8403_v60, %v1682_v59  ;;  %vm1686_vm14 = vcmp.eq.s32.totalorder %v8406_v61, %v1682_v59 }
  0x2f   : > { %s6377_s1 = sshll.u32 %s8330_s12, 3  ;;  %s8334_s4 = sshll.u32 %s8330_s12, 4  ;;  %v1162_v44 = vld [vmem:[%s9425_s9] sm:$0xff]  ;;  %vm8418_vm15 = vmpackc.low %vm1684_vm12, %vm1683_vm11 }
  0x30   : > { %s935_s29 = scalar_lea.vmem %s9419_s11, %s6377_s1  ;;  %s922_s8 = scalar_lea.vmem %s9420_s7, %s8334_s4 }
  0x31   : > { %v1061_v1 = vld [vmem:[%s935_s29] sm:$0x7f]  ;;  %v947_v3 = vld [vmem:[%s922_s8 + $0x8] sm:$0x3]  ;;  %s6374_s27 = sshll.u32 %s8330_s12, 1  ;;  %s9423_s29 = sld [smem:[#allocation19_spill]] }
  0x32   : > { %v946_v2 = vld [vmem:[%s922_s8] sm:$0xff]  ;;  %1065 = vperm.xlu1 %7760, %v1061_v1   ;;  %s926_s0 = scalar_lea.vmem %s9424_s6, %s6374_s27  ;;  %s9426_s6 = sld [smem:[#allocation24_spill]]  ;;  %v8131_v1 = vmov 1.0|1.0  }
  0x33   : > { %951 = vperm.xlu0 %7759, %v946_v2   ;;  %v948_v28 = vld [vmem:[%s926_s0] sm:$0x3]  ;;  %s9435_s8 = sld [smem:[#allocation23_spill]]  ;;  %s9439_s11 = sld [smem:[#allocation25_spill]] }
  0x34   : > { %s9440_s1 = sld [smem:[#allocation26_spill]]  ;;  %s9443_s9 = smov 127  }
  0x35   : > { %s9447_s0 = smov 125  }
  0x36   : > { %1166 = vperm.xlu1 %7760, %v1163_v4   ;;  %v8436_v4 = vadd.s32 56, %v8394_v56 }
  0x37   : > { %956 = vperm.xlu0 %7759, %v947_v3   ;;  %s939_s7 = scalar_lea.vmem %s9423_s29, %s6374_s27  ;;  %s9380_s27 = smov 2   ;;  %v8433_v3 = vadd.s32 48, %v8394_v56 }
  0x38   : > { %v1062_v23 = vld [vmem:[%s939_s7] sm:$0x3]  ;;  %s9387_s29 = smov 125   ;;  %s9385_s7 = smov 124  }
  0x39   : > { %v1715_v54 = vld [vmem:[%s9426_s6] sm:$0xff]  ;;  %s9436_s12 = smov %s9435_s8  ;;  %v6423_v55 = vld [vmem:[%s9439_s11 + $0x28] sm:$0xff]  ;;  %s9441_s6 = smov 2  }
  0xb1   : > { %v1066_v8 = vpop.permute.xlu1 %1065 }
  0xb2   : > { %v952_v9 = vpop.permute.xlu0 %951  ;;  %v1068_v10 = vsub.f32 %v1066_v8, %v6381_v7  ;;  %v1672_v8 = vadd.s32 64, %v8394_v56 }
  0xb3   : > { %v965_v11 = vsub.f32 %v952_v9, %v6381_v7  ;;  %v1673_v9 = vadd.s32 72, %v8394_v56 }
  0xb4   : > { %v1069_v12 = vmul.f32 %v1068_v10, %v1068_v10  ;;  %v6431_v10 = vld [vmem:[%s9439_s11 + $0x48] sm:$0xff] }
  0xb5   : > { %v967_v13 = vmul.f32 %v965_v11, %v965_v11  ;;  %v1167_v46 = vpop.permute.xlu1 %1166  ;;  %v1674_v11 = vadd.s32 80, %v8394_v56 }
  0xb6   : > { %v957_v14 = vpop.permute.xlu0 %956  ;;  %v1070_v15 = vmul.f32 -128.0, %v1069_v12  ;;  %v1675_v12 = vadd.s32 88, %v8394_v56 }
  0xb7   : > { %v969_v16 = vmul.f32 -128.0, %v967_v13  ;;  %v966_v17 = vsub.f32 %v957_v14, %v6381_v7  ;;  %vm1693_vm12 = vcmp.eq.s32.totalorder %v1674_v11, %v1682_v59  ;;  %v1676_v13 = vadd.s32 96, %v8394_v56 }
  0xb8   : > { %v1071_v18 = vmul.f32 1.442695, %v1070_v15  ;;  %v1677_v14 = vadd.s32 104, %v8394_v56  ;;  %v1678_v15 = vadd.s32 112, %v8394_v56 }
  0xb9   : > { %v968_v19 = vmul.f32 %v966_v17, %v966_v17  ;;  %v971_v20 = vmul.f32 1.442695, %v969_v16  ;;  %v1679_v16 = vadd.s32 120, %v8394_v56 }
  0xba   : > { %8006 = vpow2.f32 %v1071_v18 }
  0xbb   : > { %v970_v21 = vmul.f32 -128.0, %v968_v19  ;;  %8008 = vpow2.f32 %v971_v20  ;;  %v6388_v19 = vld [vmem:[%s9435_s8 + $0x8] sm:$0xff] }
  0xbd   : > { %v973_v22 = vmul.f32 1.442695, %v970_v21  ;;  %v5481_v21 = vld [vmem:[%s9356_s17] sm:$0xff] }
  0xbf   : > { %8010 = vpow2.f32 %v973_v22 }
  0xc4   : > { %v8007_v24 = vpop.eup %8006 }
  0xc5   : > { %6888 = vmatpush3.msk.msra.mxu1 %vm1077_vm1, %v8007_v24  ;;  %v8009_v25 = vpop.eup %8008  ;;  %vm8426_vm1 = vmpackc.low %vm1686_vm14, %vm1685_vm13  ;;  %vm1694_vm13 = vcmp.eq.s32.totalorder %v1675_v12, %v1682_v59  ;;  %v1255_v24 = vld [vmem:[%s9436_s12] sm:$0xff] }
  0xc6   : > { %6890 = vmatmul.mubr.msk.f32.vlgmr.msra.gmra.mrb[0].mxu1 %vm1073_vm2, %v1062_v23  ;;  %6892 = vmatprep.subr.mxu1 %v8122_v5  ;;  %vm1687_vm2 = vcmp.eq.s32.totalorder %v8409_v62, %v1682_v59  ;;  %vm7397_vm14 = vmpackc.low %vm1694_vm13, %vm1693_vm12  ;;  %vm1267_vm12 = vcmask 64512  }
  0xc7   : > { %6894 = vmatprep.mubr.msk.f32.mxu1 %vm8123_vm0, %v8122_v5  ;;  %vm8483_vm13 = vmneg %vm1252_vm10 }
  0xc9   : > { %v8011_v26 = vpop.eup %8010 }
  0xca   : > { %v7378_v27 = vpack.c.bf16 %v8011_v26, %v8009_v25 }
  0xcc   : > { %7380 = vmatpush3.bf16.msk.msra.mxu0 %vm7379_vm5, %v7378_v27  ;;  %vm1689_vm5 = vcmp.eq.s32.totalorder %v8433_v3, %v1682_v59 }
  0xcd   : > { %6897 = vmatprep.subr.mxu0 %v8122_v5 }
  0xcf   : > { %6885 = vmatmul.mubr.msk.f32.vlgmr.msra.gmra.mrb[0].mxu0 %vm975_vm6, %v948_v28  ;;  %vm1690_vm6 = vcmp.eq.s32.totalorder %v8436_v4, %v1682_v59  ;;  %v6393_v28 = vld [vmem:[%s9436_s12 + $0x10] sm:$0xff] }
  0xd0   : > { %6899 = vmatprep.mubr.msk.f32.mxu0 %vm8123_vm0, %v8122_v5 }
 0x199   : > { %v1147_v29 = vpop.f32.mrb[0].mxu1 }
 0x19a   : > { %v1151_v30 = vadd.f32 1e-08, %v1147_v29  ;;  %v6891_v31 = vpop.f32.mrb[1].mxu1 }
 0x19c   : > { %8012 = vrcp.f32 %v1151_v30 }
 0x1a2   : > { %v1049_v32 = vpop.f32.mrb[0].mxu0 }
 0x1a3   : > { %v1053_v33 = vadd.f32 1e-08, %v1049_v32  ;;  %v6886_v34 = vpop.f32.mrb[1].mxu0 }
 0x1a4   : > { %v6397_v34 = vld [vmem:[%s9436_s12 + $0x20] sm:$0xff] }
 0x1a5   : > { %8014 = vrcp.f32 %v1053_v33 }
 0x1a6   : > { %v8013_v35 = vpop.eup %8012 }
 0x1a7   : > { %v1154_v36 = vrot.slane %v8013_v35, 7 }
 0x1a9   : > { %v1156_v37 = vmul.f32 %v1154_v36, %v1147_v29 }
 0x1ab   : > { %v1157_v39 = vsel %vm1059_vm7, %v1147_v29, %v1156_v37 }
 0x1ac   : > { %v1159_v42 = vrot.slane %v1157_v39, 6 }
 0x1af   : > { %v8015_v38 = vpop.eup %8014 }
 0x1b0   : > { %v1056_v40 = vrot.slane %v8015_v38, 7 }
 0x1b2   : > { %v1058_v41 = vmul.f32 %v1056_v40, %v1049_v32 }
 0x1b4   : > { %v1060_v43 = vsel %vm1059_vm7, %v1049_v32, %v1058_v41  ;;  %vm8454_vm7 = vmpackc.low %vm1690_vm6, %vm1689_vm5  ;;  %vm1697_vm6 = vcmp.eq.s32.totalorder %v1678_v15, %v1682_v59  ;;  %v6395_v32 = vld [vmem:[%s9436_s12 + $0x18] sm:$0xff]  ;;  %s9461_s12 = sld [smem:[#allocation30_spill]] }
 0x1b5   : > { %v1161_v45 = vsel %vm979_vm3, %v1060_v43, %v1159_v42  ;;  %vm1688_vm3 = vcmp.eq.s32.totalorder %v8412_v63, %v1682_v59  ;;  %v6415_v42 = vld [vmem:[%s9439_s11 + $0x10] sm:$0xff] }
 0x1b6   : > { %6893 = vmatpush3.msk.msra.mxu1 %vm1173_vm8, %v1161_v45  ;;  %vm8442_vm4 = vmpackc.low %vm1688_vm3, %vm1687_vm2  ;;  %vm1691_vm8 = vcmp.eq.s32.totalorder %v1672_v8, %v1682_v59  ;;  %vm1695_vm2 = vcmp.eq.s32.totalorder %v1676_v13, %v1682_v59  ;;  %vm1696_vm3 = vcmp.eq.s32.totalorder %v1677_v14, %v1682_v59  ;;  %v6427_v8 = vld [vmem:[%s9439_s11 + $0x38] sm:$0xff] }
 0x1b7   : > { %6895 = vmatmul.mubr.msk.f32.vlgmr.msra.gmra.mrb[2].mxu1 %vm1169_vm9, %v1162_v44  ;;  %7381 = vmatprep.subr.bf16.mxu1 %v8124_v6  ;;  %vm1692_vm9 = vcmp.eq.s32.totalorder %v1673_v9, %v1682_v59  ;;  %vm7400_vm5 = vmpackc.low %vm1696_vm3, %vm1695_vm2  ;;  %vm1503_vm2 = vcmask 1022976   ;;  %vm1586_vm3 = vcmask 1014784   ;;  %v6430_v9 = vld [vmem:[%s9439_s11 + $0x40] sm:$0xff] }
 0x1b8   : > { %6954 = vmatprep.mubr.msk.f32.mxu1 %vm8123_vm0, %v8122_v5  ;;  %7383 = vmatpush3.bf16.msk.msra.mxu1 %vm8418_vm15, %v8131_v1  ;;  %vm7394_vm11 = vmpackc.low %vm1692_vm9, %vm1691_vm8  ;;  %vm1698_vm8 = vcmp.eq.s32.totalorder %v1679_v16, %v1682_v59  ;;  %v6426_v59 = vld [vmem:[%s9439_s11 + $0x30] sm:$0xff] }
 0x1b9   : > { %7384 = vmatprep.subr.bf16.mxu1 %v8124_v6  ;;  %vm7403_vm9 = vmpackc.low %vm1698_vm8, %vm1697_vm6  ;;  %vm2810_vm8 = vcmask 261120  }
 0x1bc   : > { %7386 = vmatpush3.bf16.msk.msra.mxu1 %vm8426_vm1, %v8131_v1 }
 0x1bd   : > { %7387 = vmatprep.subr.bf16.mxu1 %v8124_v6 }
 0x1c0   : > { %7389 = vmatpush3.bf16.msk.msra.mxu1 %vm8442_vm4, %v8131_v1 }
 0x1c1   : > { %7390 = vmatprep.subr.bf16.mxu1 %v8124_v6 }
 0x1c4   : > { %7392 = vmatpush3.bf16.msk.msra.mxu1 %vm8454_vm7, %v8131_v1 }
 0x1c5   : > { %7393 = vmatprep.subr.bf16.mxu1 %v8124_v6 }
 0x1c8   : > { %7395 = vmatpush3.bf16.msk.msra.mxu1 %vm7394_vm11, %v8131_v1  ;;  %vm1264_vm11 = vcmask 1039360  }
 0x1c9   : > { %7396 = vmatprep.subr.bf16.mxu1 %v8124_v6 }
 0x1cc   : > { %7398 = vmatpush3.bf16.msk.msra.mxu1 %vm7397_vm14, %v8131_v1  ;;  %vm1420_vm14 = vcmask 1031168  }
 0x1cd   : > { %7399 = vmatprep.subr.bf16.mxu1 %v8124_v6 }
 0x1d0   : > { %7401 = vmatpush3.bf16.msk.msra.mxu1 %vm7400_vm5, %v8131_v1  ;;  %vm2343_vm5 = vcmask 277504  }
 0x1d1   : > { %7402 = vmatprep.subr.bf16.mxu1 %v8124_v6  ;;  %vm7426_vm6 = vmpackc.low %vm2343_vm5, %vm2343_vm5 }
 0x1d4   : > { %7404 = vmatpush3.bf16.msk.msra.mxu1 %vm7403_vm9, %v8131_v1 }
 0x1d5   : > { %7406 = vmatprep.subr.msk.bf16.mxu1 %vm8418_vm15, %v8131_v1 }
 0x28a   : > { %v1243_v47 = vpop.f32.mrb[2].mxu1 }
 0x28b   : > { %v1244_v48 = vadd.f32 %v1243_v47, %v1167_v46  ;;  %v6896_v49 = vpop.f32.mrb[3].mxu1  ;;  %v2238_v46 = vld [vmem:[%s9440_s1 + $0x8] sm:$0xff]  ;;  %v2237_v47 = vld [vmem:[%s9440_s1] sm:$0xff]  ;;  %s8133_s1 = smov [#allocation2]  }
 0x28c   : > { %v6416_v49 = vld [vmem:[%s9439_s11 + $0x18] sm:$0xff] }
 0x28d   : > { %v1247_v50 = vmax.f32 %v1244_v48, 0.0 }
 0x28f   : > { %1249 = vrot.lane.b32.xlu0 %v1247_v50, %s9380_s27  ;;  %v1799_v50 = vld [vmem:[%s9439_s11] sm:$0xff] }
 0x301   : > { %v8377_v51 = vpop.permute.xlu0 %1249 }
 0x302   : > { %v1254_v52 = vsel %vm1252_vm10, %v8377_v51, 0.0  ;;  %v1253_v53 = vsel %vm1252_vm10, 0.0, %v8377_v51 }
 0x303   : > { %1262 = vrot.lane.b32.xlu0 %v1254_v52, %s9383_s28  ;;  %1260 = vrot.lane.b32.xlu1 %v1253_v53, %s9383_s28 }
 0x307   : > { %1418 = vrot.lane.b32.xlu0 %v1254_v52, %s9389_s30  ;;  %1416 = vrot.lane.b32.xlu1 %v1253_v53, %s9389_s30 }
 0x30b   : > { %1501 = vrot.lane.b32.xlu0 %v1254_v52, %s9387_s29  ;;  %1499 = vrot.lane.b32.xlu1 %v1253_v53, %s9387_s29 }
 0x30f   : > { %1584 = vrot.lane.b32.xlu0 %v1254_v52, %s9385_s7  ;;  %1582 = vrot.lane.b32.xlu1 %v1253_v53, %s9385_s7  ;;  %v1800_v52 = vld [vmem:[%s9439_s11 + $0x8] sm:$0xff]  ;;  %v6422_v53 = vld [vmem:[%s9439_s11 + $0x20] sm:$0xff]  ;;  %s9458_s11 = sld [smem:[#allocation17_spill]] }
 0x313   : > { %1718 = vperm.xlu1 %7760, %v1715_v54  }
 0x375   : > { %v1263_v17 = vpop.permute.xlu0 %1262  ;;  %v1261_v18 = vpop.permute.xlu1 %1260 }
 0x376   : > { %v1265_v20 = vsel %vm1264_vm11, %v1261_v18, %v1263_v17 }
 0x377   : > { %6898 = vmatpush3.msra.mxu0 %v1265_v20 }
 0x378   : > { %6900 = vmatmul.mubr.msk.f32.vlgmr.msra.gmra.mrb[2].mxu0 %vm1267_vm12, %v6388_v19  ;;  %6902 = vmatprep.subr.mxu0 %v8122_v5 }
 0x379   : > { %6903 = vmatpush3.msk.msra.mxu0 %vm8483_vm13, %v8377_v51  ;;  %6904 = vmatprep.mubr.msk.f32.mxu0 %vm8123_vm0, %v8122_v5  ;;  %v1419_v22 = vpop.permute.xlu0 %1418  ;;  %v1417_v23 = vpop.permute.xlu1 %1416 }
 0x37a   : > { %6907 = vmatprep.subr.mxu0 %v8122_v5  ;;  %v1421_v25 = vsel %vm1420_vm14, %v1417_v23, %v1419_v22  ;;  %v6444_v23 = vld [vmem:[%s9442_s13 + $0x10] sm:$0xff] }
 0x37d   : > { %v1502_v26 = vpop.permute.xlu0 %1501  ;;  %v1500_v27 = vpop.permute.xlu1 %1499 }
 0x37e   : > { %v1504_v29 = vsel %vm1503_vm2, %v1500_v27, %v1502_v26 }
 0x380   : > { %6905 = vmatmul.mubr.msk.f32.vlgmr.msra.gmra.mrb[2].mxu0 %vm1267_vm12, %v1255_v24 }
 0x381   : > { %6908 = vmatpush3.msra.mxu0 %v1421_v25  ;;  %6909 = vmatprep.mubr.msk.f32.mxu0 %vm8123_vm0, %v8122_v5  ;;  %v1585_v30 = vpop.permute.xlu0 %1584  ;;  %v1583_v31 = vpop.permute.xlu1 %1582 }
 0x382   : > { %6912 = vmatprep.subr.mxu0 %v8122_v5  ;;  %v1587_v33 = vsel %vm1586_vm3, %v1583_v31, %v1585_v30 }
 0x388   : > { %6910 = vmatmul.mubr.msk.f32.vlgmr.msra.gmra.mrb[2].mxu0 %vm1267_vm12, %v6393_v28 }
 0x389   : > { %6913 = vmatpush3.msra.mxu0 %v1504_v29  ;;  %6914 = vmatprep.mubr.msk.f32.mxu0 %vm8123_vm0, %v8122_v5 }
 0x38a   : > { %6917 = vmatprep.subr.mxu0 %v8122_v5 }
 0x390   : > { %6915 = vmatmul.mubr.msk.f32.vlgmr.msra.gmra.mrb[2].mxu0 %vm1267_vm12, %v6395_v32  ;;  %v2799_v32 = vld [vmem:[%s9445_s14 + $0x8] sm:$0xff] }
 0x391   : > { %6918 = vmatpush3.msra.mxu0 %v1587_v33  ;;  %6919 = vmatprep.mubr.msk.f32.mxu0 %vm8123_vm0, %v8122_v5  ;;  %v2798_v33 = vld [vmem:[%s9445_s14] sm:$0xff] }
 0x392   : > { %v1719_v37 = vpop.permute.xlu1 %1718 }
 0x398   : > { %6920 = vmatmul.mubr.msk.f32.vlgmr.msra.gmra.mrb[2].mxu0 %vm1267_vm12, %v6397_v34 }
 0x399   : > { %6959 = vmatprep.mubr.msk.f32.mxu0 %vm1267_vm12, %v6415_v42 }
 0x46b   : > { %v1658_v35 = vpop.f32.mrb[2].mxu0 }
 0x46c   : > { %v6921_v36 = vpop.f32.mrb[3].mxu0  ;;  %6955 = vmatmul.mubr.f32.vlgmr.msra.gmra.mrb[4].mxu1 %v1658_v35 }
 0x46d   : > { %7408 = vmatpush3.bf16.msk.msra.mxu1 %vm8418_vm15, %v8131_v1 }
 0x46e   : > { %7410 = vmatprep.subr.msk.bf16.mxu1 %vm8426_vm1, %v8131_v1 }
 0x471   : > { %7412 = vmatpush3.bf16.msk.msra.mxu1 %vm8426_vm1, %v8131_v1 }
 0x472   : > { %7414 = vmatprep.subr.msk.bf16.mxu1 %vm8442_vm4, %v8131_v1 }
 0x475   : > { %7416 = vmatpush3.bf16.msk.msra.mxu1 %vm8442_vm4, %v8131_v1  ;;  %vm1797_vm4 = vcmask 539648  }
 0x476   : > { %7418 = vmatprep.subr.msk.bf16.mxu1 %vm8454_vm7, %v8131_v1 }
 0x479   : > { %7420 = vmatpush3.bf16.msk.msra.mxu1 %vm8454_vm7, %v8131_v1  ;;  %vm2249_vm7 = vcmask 523264  }
 0x47a   : > { %7444 = vmatprep.subr.msk.bf16.mxu1 %vm8418_vm15, %v8131_v1 }
 0x53f   : > { %v1787_v38 = vpop.f32.mrb[4].mxu1 }
 0x540   : > { %v8546_v39 = vadd.f32 %v1787_v38, %v1719_v37  ;;  %v6956_v40 = vpop.f32.mrb[5].mxu1 }
 0x542   : > { %v1791_v41 = vmax.f32 %v8546_v39, 0.0  ;;  %v4939_v39 = vld [vmem:[%s9358_s19] sm:$0xff] }
 0x544   : > { %1793 = vrot.lane.b32.xlu0 %v1791_v41, %s9380_s27  ;;  %s9444_s27 = smov 124  }
 0x5b6   : > { %v1794_v43 = vpop.permute.xlu0 %1793 }
 0x5b7   : > { %v1796_v44 = vsel %vm1252_vm10, 0.0, %v1794_v43  ;;  %v6445_v43 = vld [vmem:[%s9442_s13 + $0x18] sm:$0xff] }
 0x5b8   : > { %v1798_v45 = vsel %vm1797_vm4, %v1796_v44, 0.0 }
 0x5b9   : > { %1973 = vrot.lane.b32.xlu0 %v1798_v45, %s9389_s30  ;;  %1805 = vrot.lane.b32.xlu1 %v1798_v45, %s9383_s28  ;;  %s931_s28 = scalar_lea.vmem %s9458_s11, %s8334_s4 }
 0x5bd   : > { %2151 = vrot.lane.b32.xlu0 %v1798_v45, %s9385_s7  ;;  %2062 = vrot.lane.b32.xlu1 %v1798_v45, %s9387_s29 }
 0x5c1   : > { %2246 = vperm.xlu0 %7759, %v2238_v46   ;;  %2241 = vperm.xlu1 %7760, %v2237_v47  }
 0x62b   : > { %v1806_v48 = vpop.permute.xlu1 %1805  ;;  %v1974_v51 = vpop.permute.xlu0 %1973 }
 0x62c   : > { %6957 = vmatprep.subr.mxu0 %v1806_v48 }
 0x62d   : > { %6958 = vmatpush3.msra.mxu0 %v1806_v48 }
 0x62e   : > { %6960 = vmatmul.mubr.msk.f32.vlgmr.msra.gmra.mrb[4].mxu0 %vm1267_vm12, %v6416_v49  ;;  %6962 = vmatprep.subr.msk.mxu0 %vm1797_vm4, %v1796_v44  ;;  %v2347_v49 = vld [vmem:[%s9442_s13 + $0x8] sm:$0xff] }
 0x62f   : > { %6963 = vmatpush3.msk.msra.mxu0 %vm1797_vm4, %v1796_v44  ;;  %6964 = vmatprep.mubr.msk.f32.mxu0 %vm1267_vm12, %v1799_v50  ;;  %v2063_v54 = vpop.permute.xlu1 %2062  ;;  %v2152_v7 = vpop.permute.xlu0 %2151  ;;  %v2346_v44 = vld [vmem:[%s9442_s13] sm:$0xff] }
 0x630   : > { %6967 = vmatprep.subr.mxu0 %v1974_v51  ;;  %v6452_v50 = vld [vmem:[%s9442_s13 + $0x20] sm:$0xff] }
 0x636   : > { %6965 = vmatmul.mubr.msk.f32.vlgmr.msra.gmra.mrb[4].mxu0 %vm1267_vm12, %v1800_v52 }
 0x637   : > { %6968 = vmatpush3.msra.mxu0 %v1974_v51  ;;  %6969 = vmatprep.mubr.msk.f32.mxu0 %vm1267_vm12, %v6422_v53 }
 0x638   : > { %6972 = vmatprep.subr.mxu0 %v2063_v54 }
 0x63e   : > { %6970 = vmatmul.mubr.msk.f32.vlgmr.msra.gmra.mrb[4].mxu0 %vm1267_vm12, %v6423_v55  ;;  %v6453_v55 = vld [vmem:[%s9442_s13 + $0x28] sm:$0xff] }
 0x63f   : > { %6973 = vmatpush3.msra.mxu0 %v2063_v54  ;;  %6974 = vmatprep.mubr.msk.f32.mxu0 %vm1267_vm12, %v6426_v59  ;;  %v6456_v59 = vld [vmem:[%s9442_s13 + $0x30] sm:$0xff] }
 0x640   : > { %6977 = vmatprep.subr.mxu0 %v2152_v7  ;;  %v2247_v13 = vpop.permute.xlu0 %2246  ;;  %v2242_v15 = vpop.permute.xlu1 %2241 }
 0x646   : > { %6975 = vmatmul.mubr.msk.f32.vlgmr.msra.gmra.mrb[4].mxu0 %vm1267_vm12, %v6427_v8  ;;  %v6457_v8 = vld [vmem:[%s9442_s13 + $0x38] sm:$0xff] }
 0x647   : > { %6978 = vmatpush3.msra.mxu0 %v2152_v7  ;;  %6979 = vmatprep.mubr.msk.f32.mxu0 %vm1267_vm12, %v6430_v9  ;;  %v6460_v9 = vld [vmem:[%s9442_s13 + $0x40] sm:$0xff] }
 0x64e   : > { %6980 = vmatmul.mubr.msk.f32.vlgmr.msra.gmra.mrb[4].mxu0 %vm1267_vm12, %v6431_v10  ;;  %v6461_v10 = vld [vmem:[%s9442_s13 + $0x48] sm:$0xff] }
 0x721   : > { %v6981_v11 = vpop.f32.mrb[4].mxu0 }
 0x722   : > { %v2226_v12 = vpop.f32.mrb[5].mxu0 }
 0x723   : > { %6998 = vmatprep.mubr.msk.f32.mxu1 %vm2249_vm7, %v2226_v12 }
 0x724   : > { %6999 = vmatmul.mubr.msk.f32.vlgmr.msra.gmra.mrb[6].mxu1 %vm2249_vm7, %v6981_v11 }
 0x725   : > { %7446 = vmatpush3.bf16.msk.msra.mxu1 %vm8418_vm15, %v8131_v1 }
 0x726   : > { %7448 = vmatprep.subr.msk.bf16.mxu1 %vm8426_vm1, %v8131_v1 }
 0x729   : > { %7450 = vmatpush3.bf16.msk.msra.mxu1 %vm8426_vm1, %v8131_v1  ;;  %vm2359_vm1 = vcmask 130048  }
 0x72a   : > { %7005 = vmatprep.mubr.msk.f32.mxu0 %vm2359_vm1, %v6444_v23 }
 0x7f7   : > { %v7000_v14 = vpop.f32.mrb[6].mxu1 }
 0x7f8   : > { %v8617_v16 = vadd.f32 %v7000_v14, %v2247_v13  ;;  %v2322_v17 = vpop.f32.mrb[7].mxu1 }
 0x7f9   : > { %v8619_v18 = vadd.f32 %v2322_v17, %v2242_v15 }
 0x7fa   : > { %v2332_v19 = vmax.f32 %v8617_v16, 0.0 }
 0x7fb   : > { %v2331_v20 = vmax.f32 %v8619_v18, 0.0  ;;  %v4797_v18 = vld [vmem:[%s9361_s22] sm:$0xff] }
 0x7fd   : > { %v7761_v22 = vpack.i.bf16 %v2332_v19, %v2331_v20 }
 0x7ff   : > { %7762 = vrot.lane.b32.xlu1 %v7761_v22, %s9441_s6 }
 0x871   : > { %v7763_v2 = vpop.permute.xlu1 %7762 }
 0x872   : > { %v7765_v24 = vunpack.i.h.bf16 %v7763_v2  ;;  %v7764_v25 = vunpack.i.l.bf16 %v7763_v2 }
 0x874   : > { %v2342_v26 = vsel %vm1252_vm10, 0.0, %v7765_v24  ;;  %v2341_v27 = vsel %vm1252_vm10, 0.0, %v7764_v25 }
 0x875   : > { %v2345_v28 = vsel %vm2343_vm5, %v2342_v26, 0.0  ;;  %v2344_v29 = vsel %vm2343_vm5, %v2341_v27, 0.0  ;;  %v7425_v30 = vpack.c.bf16 %v2342_v26, %v2341_v27  ;;  %v6470_v26 = vld [vmem:[%s9354_s15 + $0x20] sm:$0xff] }
 0x876   : > { %v7771_v31 = vpack.i.bf16 %v2345_v28, %v2344_v29 }
 0x878   : > { %7772 = vrot.lane.b32.xlu1 %v7771_v31, %s9389_s30  ;;  %7767 = vrot.lane.b32.xlu0 %v7771_v31, %s9443_s9 }
 0x87c   : > { %7782 = vrot.lane.b32.xlu1 %v7771_v31, %s9444_s27  ;;  %7777 = vrot.lane.b32.xlu0 %v7771_v31, %s9387_s29  ;;  %s9446_s29 = smov 126  }
 0x880   : > { %2807 = vperm.xlu1 %7760, %v2799_v32   ;;  %2802 = vperm.xlu0 %7759, %v2798_v33  }
 0x8ea   : > { %v7768_v34 = vpop.permute.xlu0 %7767  ;;  %v7773_v37 = vpop.permute.xlu1 %7772 }
 0x8eb   : > { %v7770_v35 = vunpack.i.h.bf16 %v7768_v34  ;;  %v7769_v36 = vunpack.i.l.bf16 %v7768_v34  ;;  %v7775_v40 = vunpack.i.h.bf16 %v7773_v37  ;;  %v7774_v42 = vunpack.i.l.bf16 %v7773_v37  ;;  %v3457_v37 = vld [vmem:[%s9355_s16 + $0x18] sm:$0xff] }
 0x8ed   : > { %v7421_v38 = vpack.c.bf16 %v7770_v35, %v7769_v36  ;;  %v7431_v45 = vpack.c.bf16 %v7775_v40, %v7774_v42  ;;  %v3455_v35 = vld [vmem:[%s9355_s16 + $0x8] sm:$0xff]  ;;  %v3454_v36 = vld [vmem:[%s9355_s16] sm:$0xff] }
 0x8ee   : > { %v7778_v46 = vpop.permute.xlu0 %7777  ;;  %v7783_v52 = vpop.permute.xlu1 %7782 }
 0x8ef   : > { %7422 = vmatprep.subr.bf16.mxu0 %v7421_v38  ;;  %v7780_v47 = vunpack.i.h.bf16 %v7778_v46  ;;  %v7779_v48 = vunpack.i.l.bf16 %v7778_v46  ;;  %v7785_v53 = vunpack.i.h.bf16 %v7783_v52  ;;  %v7784_v54 = vunpack.i.l.bf16 %v7783_v52  ;;  %v6473_v52 = vld [vmem:[%s9354_s15 + $0x38] sm:$0xff] }
 0x8f0   : > { %7424 = vmatpush3.bf16.msra.mxu0 %v7421_v38  ;;  %v3456_v38 = vld [vmem:[%s9355_s16 + $0x10] sm:$0xff] }
 0x8f1   : > { %7427 = vmatprep.subr.msk.bf16.mxu0 %vm7426_vm6, %v7425_v30  ;;  %v7435_v51 = vpack.c.bf16 %v7780_v47, %v7779_v48  ;;  %v7439_v7 = vpack.c.bf16 %v7785_v53, %v7784_v54  ;;  %v6471_v48 = vld [vmem:[%s9354_s15 + $0x28] sm:$0xff]  ;;  %v2907_v53 = vld [vmem:[%s9354_s15] sm:$0xff] }
 0x8f3   : > { %7006 = vmatmul.mubr.msk.f32.vlgmr.msra.gmra.mrb[6].mxu0 %vm2359_vm1, %v6445_v43 }
 0x8f4   : > { %7430 = vmatpush3.bf16.msk.msra.mxu0 %vm7426_vm6, %v7425_v30  ;;  %7012 = vmatprep.mubr.msk.f32.mxu0 %vm2359_vm1, %v2346_v44 }
 0x8f5   : > { %7432 = vmatprep.subr.bf16.mxu0 %v7431_v45 }
 0x8fb   : > { %7013 = vmatmul.mubr.msk.f32.vlgmr.msra.gmra.mrb[6].mxu0 %vm2359_vm1, %v2347_v49  ;;  %v6472_v49 = vld [vmem:[%s9354_s15 + $0x30] sm:$0xff] }
 0x8fc   : > { %7434 = vmatpush3.bf16.msra.mxu0 %v7431_v45  ;;  %7019 = vmatprep.mubr.msk.f32.mxu0 %vm2359_vm1, %v6452_v50 }
 0x8fd   : > { %7436 = vmatprep.subr.bf16.mxu0 %v7435_v51 }
 0x8ff   : > { %v2808_v13 = vpop.permute.xlu1 %2807  ;;  %v2803_v15 = vpop.permute.xlu0 %2802 }
 0x903   : > { %7020 = vmatmul.mubr.msk.f32.vlgmr.msra.gmra.mrb[6].mxu0 %vm2359_vm1, %v6453_v55 }
 0x904   : > { %7438 = vmatpush3.bf16.msra.mxu0 %v7435_v51  ;;  %7026 = vmatprep.mubr.msk.f32.mxu0 %vm2359_vm1, %v6456_v59  ;;  %v2908_v59 = vld [vmem:[%s9354_s15 + $0x8] sm:$0xff] }
 0x905   : > { %7440 = vmatprep.subr.bf16.mxu0 %v7439_v7 }
 0x90b   : > { %7027 = vmatmul.mubr.msk.f32.vlgmr.msra.gmra.mrb[6].mxu0 %vm2359_vm1, %v6457_v8 }
 0x90c   : > { %7442 = vmatpush3.bf16.msra.mxu0 %v7439_v7  ;;  %7033 = vmatprep.mubr.msk.f32.mxu0 %vm2359_vm1, %v6460_v9  ;;  %v2909_v7 = vld [vmem:[%s9354_s15 + $0x10] sm:$0xff] }
 0x90d   : > { %7474 = vmatprep.subr.msk.bf16.mxu0 %vm8418_vm15, %v8131_v1 }
 0x913   : > { %7034 = vmatmul.mubr.msk.f32.vlgmr.msra.gmra.mrb[6].mxu0 %vm2359_vm1, %v6461_v10  ;;  %v2910_v10 = vld [vmem:[%s9354_s15 + $0x18] sm:$0xff] }
 0x914   : > { %7476 = vmatpush3.bf16.msk.msra.mxu0 %vm8418_vm15, %v8131_v1  ;;  %vm2904_vm15 = vcmask 146432  }
 0x915   : > { %vm7456_vm9 = vmpackc.low %vm2904_vm15, %vm2904_vm15 }
 0x9e6   : > { %v7035_v11 = vpop.f32.mrb[6].mxu0 }
 0x9e7   : > { %v2787_v12 = vpop.f32.mrb[7].mxu0 }
 0x9e8   : > { %7044 = vmatprep.mubr.msk.f32.mxu1 %vm2810_vm8, %v2787_v12 }
 0x9e9   : > { %7045 = vmatmul.mubr.msk.f32.vlgmr.msra.gmra.mrb[8].mxu1 %vm2810_vm8, %v7035_v11  ;;  %v6484_v11 = vld [vmem:[%s9354_s15 + $0x40] sm:$0xff] }
 0x9ea   : > { %7051 = vmatprep.mubr.msk.f32.mxu1 %vm2359_vm1, %v6470_v26  ;;  %v6487_v26 = vld [vmem:[%s9354_s15 + $0x58] sm:$0xff] }
 0xabc   : > { %v7046_v14 = vpop.f32.mrb[8].mxu1 }
 0xabd   : > { %v8692_v17 = vadd.f32 %v7046_v14, %v2808_v13  ;;  %v2883_v22 = vpop.f32.mrb[9].mxu1  ;;  %v6485_v14 = vld [vmem:[%s9354_s15 + $0x48] sm:$0xff] }
 0xabe   : > { %v8694_v2 = vadd.f32 %v2883_v22, %v2803_v15  ;;  %v6486_v15 = vld [vmem:[%s9354_s15 + $0x50] sm:$0xff] }
 0xabf   : > { %v2893_v23 = vmax.f32 %v8692_v17, 0.0 }
 0xac0   : > { %v2892_v0 = vmax.f32 %v8694_v2, 0.0 }
 0xac2   : > { %v7786_v24 = vpack.i.bf16 %v2893_v23, %v2892_v0 }
 0xac4   : > { %7787 = vrot.lane.b32.xlu0 %v7786_v24, %s9441_s6  ;;  %v3579_v24 = vmul.u32 2, %v8394_v56  ;;  %v6493_v56 = vld [vmem:[%s9354_s15 + $0x68] sm:$0xff] }
 0xac6   : > { %vm8779_vm4 = vcmp.eq.s32.totalorder %v8396_v57, %v3579_v24 }
 0xb36   : > { %v7788_v25 = vpop.permute.xlu0 %7787 }
 0xb37   : > { %v7790_v27 = vunpack.i.h.bf16 %v7788_v25  ;;  %v7789_v28 = vunpack.i.l.bf16 %v7788_v25  ;;  %v4197_v25 = vmul.u32 2, %v8399_v58  ;;  %v6494_v58 = vld [vmem:[%s9354_s15 + $0x70] sm:$0xff] }
 0xb39   : > { %v2903_v29 = vsel %vm1252_vm10, 0.0, %v7790_v27  ;;  %v2902_v30 = vsel %vm1252_vm10, 0.0, %v7789_v28  ;;  %v6492_v27 = vld [vmem:[%s9354_s15 + $0x60] sm:$0xff]  ;;  %vm4198_vm5 = vcmp.eq.s32.totalorder %v8396_v57, %v4197_v25 }
 0xb3a   : > { %v2906_v31 = vsel %vm2904_vm15, %v2903_v29, 0.0  ;;  %v2905_v32 = vsel %vm2904_vm15, %v2902_v30, 0.0  ;;  %v7455_v33 = vpack.c.bf16 %v2903_v29, %v2902_v30  ;;  %vm8793_vm6 = vmpackc.low %vm4198_vm5, %vm8779_vm4  ;;  %v6495_v30 = vld [vmem:[%s9354_s15 + $0x78] sm:$0xff]  ;;  %vm3699_vm15 = vcmask 138240  }
 0xb3b   : > { %v7796_v34 = vpack.i.bf16 %v2906_v31, %v2905_v32  ;;  %v6500_v31 = vld [vmem:[%s9354_s15 + $0x80] sm:$0xff]  ;;  %v6501_v32 = vld [vmem:[%s9354_s15 + $0x88] sm:$0xff] }
 0xb3d   : > { %7797 = vrot.lane.b32.xlu0 %v7796_v34, %s9446_s29  ;;  %7792 = vrot.lane.b32.xlu1 %v7796_v34, %s9443_s9 }
 0xb41   : > { %7807 = vrot.lane.b32.xlu0 %v7796_v34, %s9444_s27  ;;  %7802 = vrot.lane.b32.xlu1 %v7796_v34, %s9447_s0  ;;  %v6503_v34 = vld [vmem:[%s9354_s15 + $0x98] sm:$0xff] }
 0xb45   : > { %3465 = vperm.xlu0 %7759, %v3455_v35   ;;  %3460 = vperm.xlu1 %7760, %v3454_v36  }
 0xb49   : > { %3475 = vperm.xlu0 %7759, %v3457_v37   ;;  %3470 = vperm.xlu1 %7760, %v3456_v38  }
 0xbaf   : > { %v7793_v40 = vpop.permute.xlu1 %7792  ;;  %v7798_v44 = vpop.permute.xlu0 %7797 }
 0xbb0   : > { %v7795_v42 = vunpack.i.h.bf16 %v7793_v40  ;;  %v7794_v43 = vunpack.i.l.bf16 %v7793_v40  ;;  %v7800_v46 = vunpack.i.h.bf16 %v7798_v44  ;;  %v7799_v47 = vunpack.i.l.bf16 %v7798_v44 }
 0xbb2   : > { %v7451_v45 = vpack.c.bf16 %v7795_v42, %v7794_v43  ;;  %v7461_v50 = vpack.c.bf16 %v7800_v46, %v7799_v47 }
 0xbb3   : > { %v7803_v51 = vpop.permute.xlu1 %7802  ;;  %v7808_v9 = vpop.permute.xlu0 %7807 }
 0xbb4   : > { %7452 = vmatprep.subr.bf16.mxu1 %v7451_v45  ;;  %v7805_v54 = vunpack.i.h.bf16 %v7803_v51  ;;  %v7804_v55 = vunpack.i.l.bf16 %v7803_v51  ;;  %v7810_v12 = vunpack.i.h.bf16 %v7808_v9  ;;  %v7809_v13 = vunpack.i.l.bf16 %v7808_v9 }
 0xbb5   : > { %7454 = vmatpush3.bf16.msra.mxu1 %v7451_v45 }
 0xbb6   : > { %7457 = vmatprep.subr.msk.bf16.mxu1 %vm7456_vm9, %v7455_v33  ;;  %v7465_v8 = vpack.c.bf16 %v7805_v54, %v7804_v55  ;;  %v7469_v22 = vpack.c.bf16 %v7810_v12, %v7809_v13 }
 0xbb8   : > { %7052 = vmatmul.mubr.msk.f32.vlgmr.msra.gmra.mrb[10].mxu1 %vm2359_vm1, %v6471_v48 }
 0xbb9   : > { %7460 = vmatpush3.bf16.msk.msra.mxu1 %vm7456_vm9, %v7455_v33  ;;  %7054 = vmatprep.mubr.msk.f32.mxu1 %vm2359_vm1, %v6472_v49  ;;  %v6502_v33 = vld [vmem:[%s9354_s15 + $0x90] sm:$0xff]  ;;  %vm8883_vm9 = vmpackc.low %vm3699_vm15, %vm3699_vm15 }
 0xbba   : > { %7462 = vmatprep.subr.bf16.mxu1 %v7461_v50 }
 0xbbc   : > { %7055 = vmatmul.mubr.msk.f32.gmra.mrb[12].mxu1 %vm2359_vm1, %v6473_v52 }
 0xbbd   : > { %7061 = vmatprep.mubr.msk.f32.mxu1 %vm2359_vm1, %v2907_v53 }
 0xbc0   : > { %7062 = vmatmul.mubr.msk.f32.vlgmr.msra.gmra.mrb[10].mxu1 %vm2359_vm1, %v2908_v59 }
 0xbc1   : > { %7464 = vmatpush3.bf16.msra.mxu1 %v7461_v50  ;;  %7064 = vmatprep.mubr.msk.f32.mxu1 %vm2359_vm1, %v2909_v7 }
 0xbc2   : > { %7466 = vmatprep.subr.bf16.mxu1 %v7465_v8 }
 0xbc4   : > { %7065 = vmatmul.mubr.msk.f32.gmra.mrb[12].mxu1 %vm2359_vm1, %v2910_v10  ;;  %v3461_v42 = vpop.permute.xlu1 %3460 }
 0xbc5   : > { %7071 = vmatprep.mubr.msk.f32.mxu1 %vm2359_vm1, %v6484_v11 }
 0xbc8   : > { %7072 = vmatmul.mubr.msk.f32.vlgmr.msra.gmra.mrb[10].mxu1 %vm2359_vm1, %v6485_v14  ;;  %v3471_v50 = vpop.permute.xlu1 %3470 }
 0xbc9   : > { %7468 = vmatpush3.bf16.msra.mxu1 %v7465_v8  ;;  %7074 = vmatprep.mubr.msk.f32.mxu1 %vm2359_vm1, %v6486_v15 }
 0xbca   : > { %7470 = vmatprep.subr.bf16.mxu1 %v7469_v22 }
 0xbcc   : > { %7075 = vmatmul.mubr.msk.f32.gmra.mrb[12].mxu1 %vm2359_vm1, %v6487_v26 }
 0xbcd   : > { %7081 = vmatprep.mubr.msk.f32.mxu1 %vm2359_vm1, %v6492_v27 }
 0xbd0   : > { %7082 = vmatmul.mubr.msk.f32.vlgmr.msra.gmra.mrb[10].mxu1 %vm2359_vm1, %v6493_v56 }
 0xbd1   : > { %7472 = vmatpush3.bf16.msra.mxu1 %v7469_v22  ;;  %7084 = vmatprep.mubr.msk.f32.mxu1 %vm2359_vm1, %v6494_v58 }
 0xbd2   : > { %7522 = vmatprep.subr.msk.bf16.mxu1 %vm8793_vm6, %v8131_v1 }
 0xbd4   : > { %7085 = vmatmul.mubr.msk.f32.gmra.mrb[12].mxu1 %vm2359_vm1, %v6495_v30 }
 0xbd5   : > { %7091 = vmatprep.mubr.msk.f32.mxu1 %vm2359_vm1, %v6500_v31  ;;  %v6519_v31 = vld [vmem:[%s9362_s23 + $0x10] sm:$0xff] }
 0xbd8   : > { %7092 = vmatmul.mubr.msk.f32.vlgmr.msra.gmra.mrb[10].mxu1 %vm2359_vm1, %v6501_v32 }
 0xbd9   : > { %7094 = vmatprep.mubr.msk.f32.mxu1 %vm2359_vm1, %v6502_v33  ;;  %7524 = vmatpush3.bf16.msk.msra.mxu1 %vm8793_vm6, %v8131_v1 }
 0xbdc   : > { %7095 = vmatmul.mubr.msk.f32.gmra.mrb[12].mxu1 %vm2359_vm1, %v6503_v34 }
 0xbdd   : > { %7174 = vmatprep.mubr.msk.f32.mxu1 %vm2359_vm1, %v2892_v0  ;;  %v3466_v0 = vpop.permute.xlu0 %3465 }
 0xbe0   : > { %7175 = vmatmul.mubr.msk.f32.vlgmr.msra.gmra.mrb[14].mxu1 %vm2359_vm1, %v2893_v23  ;;  %v8132_v23 = vmov 1.0  }
 0xbe1   : > { %7107 = vmatprep.subr.msk.mxu0 %vm8779_vm4, %v8132_v23  ;;  %v3476_v47 = vpop.permute.xlu0 %3475 }
 0xcab   : > { %v7093_v35 = vpop.f32.mrb[10].mxu1 }
 0xcac   : > { %v3431_v36 = vpop.f32.mrb[11].mxu1 }
 0xcad   : > { %7101 = vmatprep.mubr.msk.f32.mxu0 %vm2359_vm1, %v3431_v36 }
 0xcae   : > { %7102 = vmatmul.mubr.msk.f32.vlgmr.msra.gmra.mrb[8].mxu0 %vm2359_vm1, %v7093_v35 }
 0xcaf   : > { %v7096_v37 = vpop.f32.mrb[12].mxu1  ;;  %7108 = vmatpush3.msk.msra.mxu0 %vm8779_vm4, %v8132_v23  ;;  %v4182_v23 = vld [vmem:[%s9363_s24 + $0x8] sm:$0xff]  ;;  %vm4315_vm4 = vcmask 269312  }
 0xcb0   : > { %v3441_v38 = vpop.f32.mrb[13].mxu1 }
 0xcb1   : > { %7104 = vmatprep.mubr.msk.f32.mxu0 %vm2359_vm1, %v3441_v38  ;;  %v4181_v38 = vld [vmem:[%s9363_s24] sm:$0xff] }
 0xcb2   : > { %7105 = vmatmul.mubr.msk.f32.gmra.mrb[10].mxu0 %vm2359_vm1, %v7096_v37 }
 0xcb3   : > { %v8835_v40 = vpop.f32.mrb[14].mxu1 }
 0xcb4   : > { %v8837_v2 = vpop.f32.mrb[15].mxu1 }
 0xcb5   : > { %v7861_v17 = vpack.i.bf16 %v8835_v40, %v8837_v2  ;;  %v6520_v2 = vld [vmem:[%s9362_s23 + $0x18] sm:$0xff] }
 0xd81   : > { %v7103_v43 = vpop.f32.mrb[8].mxu0 }
 0xd82   : > { %v3562_v44 = vadd.f32 %v7103_v43, %v3466_v0  ;;  %v3556_v45 = vpop.f32.mrb[9].mxu0 }
 0xd83   : > { %v3557_v46 = vadd.f32 %v3556_v45, %v3461_v42 }
 0xd84   : > { %v3576_v51 = vmax.f32 %v3562_v44, 0.0 }
 0xd85   : > { %v3575_v48 = vmax.f32 %v3557_v46, 0.0  ;;  %v7106_v49 = vpop.f32.mrb[10].mxu0 }
 0xd86   : > { %v3572_v52 = vadd.f32 %v7106_v49, %v3476_v47  ;;  %v3566_v53 = vpop.f32.mrb[11].mxu0 }
 0xd87   : > { %v3567_v54 = vadd.f32 %v3566_v53, %v3471_v50  ;;  %7109 = vmatprep.mubr.msk.f32.mxu0 %vm1267_vm12, %v3575_v48 }
 0xd88   : > { %7110 = vmatmul.mubr.msk.f32.vlgmr.msra.gmra.mrb[12].mxu0 %vm1267_vm12, %v3576_v51  ;;  %v3578_v59 = vmax.f32 %v3572_v52, 0.0 }
 0xd89   : > { %v3577_v55 = vmax.f32 %v3567_v54, 0.0 }
 0xd8b   : > { %7112 = vmatprep.mubr.msk.f32.mxu0 %vm1267_vm12, %v3577_v55 }
 0xd8c   : > { %7113 = vmatmul.mubr.msk.f32.gmra.mrb[14].mxu0 %vm1267_vm12, %v3578_v59 }
 0xd8d   : > { %7123 = vmatprep.mubr.msk.f32.mxu0 %vm2810_vm8, %v6519_v31 }
 0xe5b   : > { %v7111_v7 = vpop.f32.mrb[12].mxu0 }
 0xe5c   : > { %v3660_v8 = vpop.f32.mrb[13].mxu0 }
 0xe5d   : > { %v7811_v9 = vpack.i.bf16 %v7111_v7, %v3660_v8  ;;  %v3705_v7 = vld [vmem:[%s9362_s23 + $0x8] sm:$0xff]  ;;  %v6529_v8 = vld [vmem:[%s9362_s23 + $0x20] sm:$0xff] }
 0xe5f   : > { %7812 = vrot.lane.b32.xlu1 %v7811_v9, %s9441_s6  ;;  %v7114_v10 = vpop.f32.mrb[14].mxu0 }
 0xe60   : > { %v3670_v11 = vpop.f32.mrb[15].mxu0 }
 0xe61   : > { %v7816_v12 = vpack.i.bf16 %v7114_v10, %v3670_v11 }
 0xe63   : > { %7817 = vrot.lane.b32.xlu0 %v7816_v12, %s9441_s6 }
 0xed1   : > { %v7813_v13 = vpop.permute.xlu1 %7812 }
 0xed2   : > { %v7815_v14 = vunpack.i.h.bf16 %v7813_v13  ;;  %v7814_v15 = vunpack.i.l.bf16 %v7813_v13 }
 0xed4   : > { %v3696_v22 = vsel %vm1252_vm10, 0.0, %v7815_v14  ;;  %v3695_v24 = vsel %vm1252_vm10, 0.0, %v7814_v15 }
 0xed5   : > { %v3701_v25 = vsel %vm3699_vm15, %v3696_v22, 0.0  ;;  %v3700_v26 = vsel %vm3699_vm15, %v3695_v24, 0.0  ;;  %v7485_v27 = vpack.c.bf16 %v3696_v22, %v3695_v24  ;;  %v7818_v28 = vpop.permute.xlu0 %7817  ;;  %v6530_v24 = vld [vmem:[%s9362_s23 + $0x28] sm:$0xff] }
 0xed6   : > { %v7820_v56 = vunpack.i.h.bf16 %v7818_v28  ;;  %v7819_v58 = vunpack.i.l.bf16 %v7818_v28  ;;  %v7821_v30 = vpack.i.bf16 %v3701_v25, %v3700_v26  ;;  %v6533_v25 = vld [vmem:[%s9362_s23 + $0x30] sm:$0xff] }
 0xed8   : > { %v3698_v32 = vsel %vm1252_vm10, 0.0, %v7820_v56  ;;  %v3697_v33 = vsel %vm1252_vm10, 0.0, %v7819_v58  ;;  %7822 = vrot.lane.b32.xlu1 %v7821_v30, %s9443_s9 }
 0xed9   : > { %v3703_v34 = vsel %vm3699_vm15, %v3698_v32, 0.0  ;;  %v3702_v35 = vsel %vm3699_vm15, %v3697_v33, 0.0  ;;  %v7491_v36 = vpack.c.bf16 %v3698_v32, %v3697_v33 }
 0xeda   : > { %v7826_v37 = vpack.i.bf16 %v3703_v34, %v3702_v35 }
 0xedc   : > { %7832 = vrot.lane.b32.xlu1 %v7821_v30, %s9446_s29  ;;  %7827 = vrot.lane.b32.xlu0 %v7826_v37, %s9443_s9 }
 0xee0   : > { %7842 = vrot.lane.b32.xlu1 %v7821_v30, %s9447_s0  ;;  %7837 = vrot.lane.b32.xlu0 %v7826_v37, %s9446_s29 }
 0xee4   : > { %7852 = vrot.lane.b32.xlu1 %v7821_v30, %s9444_s27  ;;  %7847 = vrot.lane.b32.xlu0 %v7826_v37, %s9447_s0 }
 0xee8   : > { %4185 = vperm.xlu1 %7760, %v4181_v38   ;;  %7857 = vrot.lane.b32.xlu0 %v7826_v37, %s9444_s27  ;;  %v6537_v37 = vld [vmem:[%s9362_s23 + $0x40] sm:$0xff] }
 0xeec   : > { %7862 = vrot.lane.b32.xlu1 %v7861_v17, %s9441_s6  ;;  %4190 = vperm.xlu0 %7759, %v4182_v23   ;;  %v3704_v17 = vld [vmem:[%s9362_s23] sm:$0xff] }
 0xf4a   : > { %v7823_v0 = vpop.permute.xlu1 %7822 }
 0xf4b   : > { %v7825_v42 = vunpack.i.h.bf16 %v7823_v0  ;;  %v7824_v43 = vunpack.i.l.bf16 %v7823_v0  ;;  %v4813_v0 = vmul.u32 2, %v8403_v60  ;;  %v6538_v60 = vld [vmem:[%s9362_s23 + $0x48] sm:$0xff] }
 0xf4d   : > { %v7477_v44 = vpack.c.bf16 %v7825_v42, %v7824_v43  ;;  %v4814_v42 = vmul.u32 2, %v8406_v61  ;;  %vm4815_vm5 = vcmp.eq.s32.totalorder %v8396_v57, %v4813_v0 }
 0xf4e   : > { %v7828_v45 = vpop.permute.xlu0 %7827  ;;  %v7833_v40 = vpop.permute.xlu1 %7832 }
 0xf4f   : > { %v7830_v46 = vunpack.i.h.bf16 %v7828_v45  ;;  %v7829_v47 = vunpack.i.l.bf16 %v7828_v45  ;;  %7478 = vmatprep.subr.bf16.mxu0 %v7477_v44  ;;  %v7835_v50 = vunpack.i.h.bf16 %v7833_v40  ;;  %v7834_v51 = vunpack.i.l.bf16 %v7833_v40 }
 0xf50   : > { %7480 = vmatpush3.bf16.msra.mxu0 %v7477_v44  ;;  %vm4816_vm15 = vcmp.eq.s32.totalorder %v8396_v57, %v4814_v42 }
 0xf51   : > { %v7481_v48 = vpack.c.bf16 %v7830_v46, %v7829_v47  ;;  %v7497_v53 = vpack.c.bf16 %v7835_v50, %v7834_v51 }
 0xf52   : > { %v7838_v52 = vpop.permute.xlu0 %7837  ;;  %v7843_v59 = vpop.permute.xlu1 %7842 }
 0xf53   : > { %7482 = vmatprep.subr.bf16.mxu0 %v7481_v48  ;;  %v7840_v54 = vunpack.i.h.bf16 %v7838_v52  ;;  %v7839_v55 = vunpack.i.l.bf16 %v7838_v52  ;;  %v7845_v9 = vunpack.i.h.bf16 %v7843_v59  ;;  %v7844_v10 = vunpack.i.l.bf16 %v7843_v59 }
 0xf54   : > { %7484 = vmatpush3.bf16.msra.mxu0 %v7481_v48 }
 0xf55   : > { %7487 = vmatprep.subr.msk.bf16.mxu0 %vm8883_vm9, %v7485_v27  ;;  %v7501_v11 = vpack.c.bf16 %v7840_v54, %v7839_v55  ;;  %v7505_v13 = vpack.c.bf16 %v7845_v9, %v7844_v10 }
 0xf56   : > { %v7848_v12 = vpop.permute.xlu0 %7847  ;;  %v7853_v14 = vpop.permute.xlu1 %7852 }
 0xf57   : > { %7124 = vmatmul.mubr.msk.f32.vlgmr.msra.gmra.mrb[16].mxu0 %vm2810_vm8, %v6520_v2  ;;  %v7850_v15 = vunpack.i.h.bf16 %v7848_v12  ;;  %v7849_v22 = vunpack.i.l.bf16 %v7848_v12  ;;  %v7855_v26 = vunpack.i.h.bf16 %v7853_v14 }
 0xf58   : > { %7490 = vmatpush3.bf16.msk.msra.mxu0 %vm8883_vm9, %v7485_v27  ;;  %7134 = vmatprep.mubr.msk.f32.mxu0 %vm2810_vm8, %v3704_v17  ;;  %v7854_v27 = vunpack.i.l.bf16 %v7853_v14 }
 0xf59   : > { %7493 = vmatprep.subr.msk.bf16.mxu0 %vm8883_vm9, %v7491_v36  ;;  %v7509_v28 = vpack.c.bf16 %v7850_v15, %v7849_v22 }
 0xf5a   : > { %v7858_v58 = vpop.permute.xlu0 %7857  ;;  %v7513_v30 = vpack.c.bf16 %v7855_v26, %v7854_v27 }
 0xf5b   : > { %v7860_v31 = vunpack.i.h.bf16 %v7858_v58  ;;  %v7859_v32 = vunpack.i.l.bf16 %v7858_v58 }
 0xf5c   : > { %7496 = vmatpush3.bf16.msk.msra.mxu0 %vm8883_vm9, %v7491_v36  ;;  %v6534_v36 = vld [vmem:[%s9362_s23 + $0x38] sm:$0xff]  ;;  %vm8945_vm9 = vmpackc.low %vm4816_vm15, %vm4815_vm5  ;;  %vm4934_vm5 = vcmask 531456  }
 0xf5d   : > { %7498 = vmatprep.subr.bf16.mxu0 %v7497_v53  ;;  %v7517_v43 = vpack.c.bf16 %v7860_v31, %v7859_v32  ;;  %vm9019_vm15 = vmpackc.low %vm4315_vm4, %vm4315_vm4 }
 0xf5f   : > { %7135 = vmatmul.mubr.msk.f32.vlgmr.msra.gmra.mrb[16].mxu0 %vm2810_vm8, %v3705_v7 }
 0xf60   : > { %7500 = vmatpush3.bf16.msra.mxu0 %v7497_v53  ;;  %7145 = vmatprep.mubr.msk.f32.mxu0 %vm2810_vm8, %v6529_v8 }
 0xf61   : > { %7502 = vmatprep.subr.bf16.mxu0 %v7501_v11 }
 0xf64   : > { %7504 = vmatpush3.bf16.msra.mxu0 %v7501_v11 }
 0xf65   : > { %7506 = vmatprep.subr.bf16.mxu0 %v7505_v13 }
 0xf67   : > { %v4186_v56 = vpop.permute.xlu1 %4185  ;;  %7146 = vmatmul.mubr.msk.f32.vlgmr.msra.gmra.mrb[16].mxu0 %vm2810_vm8, %v6530_v24 }
 0xf68   : > { %7508 = vmatpush3.bf16.msra.mxu0 %v7505_v13  ;;  %7156 = vmatprep.mubr.msk.f32.mxu0 %vm2810_vm8, %v6533_v25 }
 0xf69   : > { %7510 = vmatprep.subr.bf16.mxu0 %v7509_v28 }
 0xf6b   : > { %v7863_v33 = vpop.permute.xlu1 %7862  ;;  %v4191_v2 = vpop.permute.xlu0 %4190 }
 0xf6c   : > { %v7865_v34 = vunpack.i.h.bf16 %v7863_v33  ;;  %v7864_v35 = vunpack.i.l.bf16 %v7863_v33  ;;  %7512 = vmatpush3.bf16.msra.mxu0 %v7509_v28  ;;  %v6547_v33 = vld [vmem:[%s9360_s21 + $0x10] sm:$0xff] }
 0xf6d   : > { %7514 = vmatprep.subr.bf16.mxu0 %v7513_v30 }
 0xf6e   : > { %v4312_v38 = vsel %vm1252_vm10, 0.0, %v7865_v34  ;;  %v4311_v23 = vsel %vm1252_vm10, 0.0, %v7864_v35 }
 0xf6f   : > { %v4317_v44 = vsel %vm4315_vm4, %v4312_v38, 0.0  ;;  %v4316_v45 = vsel %vm4315_vm4, %v4311_v23, 0.0  ;;  %v8931_v46 = vpack.c.bf16 %v4312_v38, %v4311_v23  ;;  %7157 = vmatmul.mubr.msk.f32.vlgmr.msra.gmra.mrb[16].mxu0 %vm2810_vm8, %v6534_v36 }
 0xf70   : > { %7516 = vmatpush3.bf16.msra.mxu0 %v7513_v30  ;;  %v7871_v47 = vpack.i.bf16 %v4317_v44, %v4316_v45  ;;  %7167 = vmatprep.mubr.msk.f32.mxu0 %vm2810_vm8, %v6537_v37 }
 0xf71   : > { %7518 = vmatprep.subr.bf16.mxu0 %v7517_v43 }
 0xf72   : > { %7872 = vrot.lane.b32.xlu1 %v7871_v47, %s9443_s9 }
 0xf74   : > { %7520 = vmatpush3.bf16.msra.mxu0 %v7517_v43  ;;  %v4798_v43 = vld [vmem:[%s9361_s22 + $0x8] sm:$0xff] }
 0xf75   : > { %7570 = vmatprep.subr.msk.bf16.mxu0 %vm8793_vm6, %v8131_v1 }
 0xf76   : > { %7882 = vrot.lane.b32.xlu1 %v7871_v47, %s9446_s29 }
 0xf77   : > { %7168 = vmatmul.mubr.msk.f32.vlgmr.msra.gmra.mrb[16].mxu0 %vm2810_vm8, %v6538_v60 }
 0xf78   : > { %7572 = vmatpush3.bf16.msk.msra.mxu0 %vm8793_vm6, %v8131_v1  ;;  %7243 = vmatprep.mubr.msk.f32.mxu0 %vm2810_vm8, %v2331_v20 }
 0xf79   : > { %7574 = vmatprep.subr.msk.bf16.mxu0 %vm8945_vm9, %v8131_v1 }
 0xf7a   : > { %7892 = vrot.lane.b32.xlu1 %v7871_v47, %s9447_s0 }
 0xf7c   : > { %7576 = vmatpush3.bf16.msk.msra.mxu0 %vm8945_vm9, %v8131_v1 }
 0xf7d   : > { %7577 = vmatprep.subr.bf16.mxu0 %v8124_v6 }
 0xf7e   : > { %7902 = vrot.lane.b32.xlu1 %v7871_v47, %s9444_s27 }
 0xf7f   : > { %7244 = vmatmul.mubr.msk.f32.vlgmr.msra.gmra.mrb[18].mxu0 %vm2810_vm8, %v2332_v19 }
 0xf82   : > { %4801 = vperm.xlu1 %7760, %v4797_v18  }
 0xfe4   : > { %v7873_v20 = vpop.permute.xlu1 %7872 }
 0xfe5   : > { %v7875_v48 = vunpack.i.h.bf16 %v7873_v20  ;;  %v7874_v49 = vunpack.i.l.bf16 %v7873_v20  ;;  %v6548_v20 = vld [vmem:[%s9360_s21 + $0x18] sm:$0xff] }
 0xfe7   : > { %v7525_v40 = vpack.c.bf16 %v7875_v48, %v7874_v49  ;;  %v4320_v48 = vld [vmem:[%s9360_s21] sm:$0xff] }
 0xfe8   : > { %v7883_v59 = vpop.permute.xlu1 %7882 }
 0xfe9   : > { %7526 = vmatprep.subr.bf16.mxu1 %v7525_v40  ;;  %v7885_v49 = vunpack.i.h.bf16 %v7883_v59 }
 0xfea   : > { %7528 = vmatpush3.bf16.msra.mxu1 %v7525_v40  ;;  %v7884_v40 = vunpack.i.l.bf16 %v7883_v59 }
 0xfec   : > { %v8974_v7 = vpop.permute.xlu1 %7892 }
 0xff0   : > { %v8976_v8 = vpop.permute.xlu1 %7902 }
0x1001   : > { %v8978_v9 = vpop.permute.xlu1 %4801 }
0x104a   : > { %v7169_v17 = vpop.f32.mrb[16].mxu0 }
0x104b   : > { %v4194_v50 = vadd.f32 %v7169_v17, %v4191_v2  ;;  %v4170_v51 = vpop.f32.mrb[17].mxu0  ;;  %v7545_v17 = vpack.c.bf16 %v7885_v49, %v7884_v40 }
0x104c   : > { %v4193_v52 = vadd.f32 %v4186_v56, %v4170_v51 }
0x104d   : > { %v4196_v16 = vmax.f32 %v4194_v50, 0.0 }
0x104e   : > { %v4195_v53 = vmax.f32 %v4193_v52, 0.0  ;;  %v4321_v52 = vld [vmem:[%s9360_s21 + $0x8] sm:$0xff] }
0x1050   : > { %7177 = vmatprep.mubr.msk.f32.mxu1 %vm2359_vm1, %v4195_v53  ;;  %v7895_v53 = vunpack.i.h.bf16 %v8974_v7 }
0x1051   : > { %7178 = vmatmul.mubr.msk.f32.gmra.mrb[16].mxu1 %vm2359_vm1, %v4196_v16  ;;  %v7894_v16 = vunpack.i.l.bf16 %v8974_v7  ;;  %v6561_v7 = vld [vmem:[%s9360_s21 + $0x30] sm:$0xff] }
0x1052   : > { %v7245_v19 = vpop.f32.mrb[18].mxu0  ;;  %7188 = vmatprep.mubr.msk.f32.mxu1 %vm2810_vm8, %v6547_v33 }
0x1053   : > { %v4895_v54 = vpop.f32.mrb[19].mxu0 }
0x1054   : > { %v7911_v55 = vpack.i.bf16 %v7245_v19, %v4895_v54 }
0x1056   : > { %7912 = vrot.lane.b32.xlu1 %v7911_v55, %s9441_s6  ;;  %v7553_v55 = vpack.c.bf16 %v7895_v53, %v7894_v16 }
0x10c8   : > { %v7913_v10 = vpop.permute.xlu1 %7912 }
0x10c9   : > { %v7915_v11 = vunpack.i.h.bf16 %v7913_v10  ;;  %v7914_v12 = vunpack.i.l.bf16 %v7913_v10 }
0x10cb   : > { %v8981_v13 = vsel %vm1252_vm10, 0.0, %v7915_v11  ;;  %v8984_v14 = vsel %vm1252_vm10, 0.0, %v7914_v12  ;;  %v6558_v11 = vld [vmem:[%s9360_s21 + $0x28] sm:$0xff]  ;;  %v7905_v12 = vunpack.i.h.bf16 %v8976_v8 }
0x10cc   : > { %v4936_v15 = vsel %vm4934_vm5, %v8981_v13, 0.0  ;;  %v4935_v22 = vsel %vm4934_vm5, %v8984_v14, 0.0  ;;  %v7584_v24 = vpack.c.bf16 %v8981_v13, %v8984_v14 }
0x10cd   : > { %v8992_v25 = vpack.i.bf16 %v4936_v15, %v4935_v22  ;;  %v7904_v15 = vunpack.i.l.bf16 %v8976_v8  ;;  %v6565_v8 = vld [vmem:[%s9360_s21 + $0x40] sm:$0xff] }
0x10cf   : > { %7922 = vrot.lane.b32.xlu1 %v8992_v25, %s9443_s9 }
0x10d3   : > { %7932 = vrot.lane.b32.xlu1 %v8992_v25, %s9446_s29 }
0x10d7   : > { %7937 = vrot.lane.b32.xlu1 %v8992_v25, %s9447_s0 }
0x1124   : > { %v7179_v26 = vpop.f32.mrb[16].mxu1 }
0x1125   : > { %v4286_v27 = vpop.f32.mrb[17].mxu1 }
0x1126   : > { %v7866_v28 = vpack.i.bf16 %v7179_v26, %v4286_v27 }
0x1128   : > { %7867 = vrot.lane.b32.xlu0 %v7866_v28, %s9441_s6  ;;  %v7561_v28 = vpack.c.bf16 %v7905_v12, %v7904_v15 }
0x1141   : > { %v7923_v56 = vpop.permute.xlu1 %7922 }
0x1142   : > { %v7925_v58 = vunpack.i.h.bf16 %v7923_v56  ;;  %v7924_v30 = vunpack.i.l.bf16 %v7923_v56 }
0x1144   : > { %v7578_v31 = vpack.c.bf16 %v7925_v58, %v7924_v30  ;;  %v6562_v30 = vld [vmem:[%s9360_s21 + $0x38] sm:$0xff] }
0x1145   : > { %v9061_v27 = vpop.permute.xlu1 %7932 }
0x1146   : > { %7579 = vmatpush3.bf16.msra.mxu0 %v7578_v31  ;;  %v7934_v12 = vunpack.i.l.bf16 %v9061_v27 }
0x1147   : > { %7580 = vmatprep.subr.bf16.mxu0 %v8124_v6 }
0x1149   : > { %v7938_v31 = vpop.permute.xlu1 %7937 }
0x114a   : > { %v7940_v33 = vunpack.i.h.bf16 %v7938_v31 }
0x119a   : > { %v7868_v32 = vpop.permute.xlu0 %7867 }
0x119b   : > { %v7870_v34 = vunpack.i.h.bf16 %v7868_v32  ;;  %v7869_v35 = vunpack.i.l.bf16 %v7868_v32 }
0x119d   : > { %v4314_v36 = vsel %vm1252_vm10, 0.0, %v7870_v34  ;;  %v4313_v37 = vsel %vm1252_vm10, 0.0, %v7869_v35  ;;  %v7939_v34 = vunpack.i.l.bf16 %v7938_v31  ;;  %v6566_v35 = vld [vmem:[%s9360_s21 + $0x48] sm:$0xff]  ;;  %v5377_v31 = vmul.u32 2, %v8412_v63 }
0x119e   : > { %v4319_v38 = vsel %vm4315_vm4, %v4314_v36, 0.0  ;;  %v4318_v23 = vsel %vm4315_vm4, %v4313_v37, 0.0  ;;  %v7539_v0 = vpack.c.bf16 %v4314_v36, %v4313_v37  ;;  %vm7585_vm4 = vmpackc.low %vm4934_vm5, %vm4934_vm5 }
0x119f   : > { %v7876_v42 = vpack.i.bf16 %v4319_v38, %v4318_v23  ;;  %v7598_v36 = vpack.c.bf16 %v7940_v33, %v7939_v34  ;;  %v5379_v33 = vmul.u32 2, %v8436_v4 }
0x11a1   : > { %7877 = vrot.lane.b32.xlu0 %v7876_v42, %s9443_s9 }
0x11a5   : > { %7887 = vrot.lane.b32.xlu0 %v7876_v42, %s9446_s29 }
0x11a9   : > { %7897 = vrot.lane.b32.xlu0 %v7876_v42, %s9447_s0 }
0x11ad   : > { %7907 = vrot.lane.b32.xlu0 %v7876_v42, %s9444_s27 }
0x11b1   : > { %4806 = vperm.xlu0 %7759, %v4798_v43  }
0x1213   : > { %v7878_v44 = vpop.permute.xlu0 %7877 }
0x1214   : > { %v7880_v45 = vunpack.i.h.bf16 %v7878_v44  ;;  %v7879_v47 = vunpack.i.l.bf16 %v7878_v44 }
0x1216   : > { %v7529_v60 = vpack.c.bf16 %v7880_v45, %v7879_v47 }
0x1217   : > { %v7888_v2 = vpop.permute.xlu0 %7887 }
0x1218   : > { %7530 = vmatprep.subr.bf16.mxu1 %v7529_v60  ;;  %v7890_v50 = vunpack.i.h.bf16 %v7888_v2  ;;  %v7889_v51 = vunpack.i.l.bf16 %v7888_v2 }
0x1219   : > { %7532 = vmatpush3.bf16.msra.mxu1 %v7529_v60 }
0x121a   : > { %7535 = vmatprep.subr.msk.bf16.mxu1 %vm9019_vm15, %v8931_v46  ;;  %v7549_v19 = vpack.c.bf16 %v7890_v50, %v7889_v51  ;;  %v5368_v51 = vld [vmem:[%s9359_s20] sm:$0xff] }
0x121b   : > { %v7898_v54 = vpop.permute.xlu0 %7897 }
0x121c   : > { %7189 = vmatmul.mubr.msk.f32.vlgmr.msra.gmra.mrb[18].mxu1 %vm2810_vm8, %v6548_v20  ;;  %v7900_v59 = vunpack.i.h.bf16 %v7898_v54  ;;  %v7899_v10 = vunpack.i.l.bf16 %v7898_v54 }
0x121d   : > { %7538 = vmatpush3.bf16.msk.msra.mxu1 %vm9019_vm15, %v8931_v46  ;;  %7199 = vmatprep.mubr.msk.f32.mxu1 %vm2810_vm8, %v4320_v48  ;;  %v6557_v46 = vld [vmem:[%s9360_s21 + $0x20] sm:$0xff] }
0x121e   : > { %7541 = vmatprep.subr.msk.bf16.mxu1 %vm9019_vm15, %v7539_v0  ;;  %v7557_v22 = vpack.c.bf16 %v7900_v59, %v7899_v10  ;;  %v6586_v10 = vld [vmem:[%s9358_s19 + $0x18] sm:$0xff] }
0x121f   : > { %v7908_v26 = vpop.permute.xlu0 %7907 }
0x1220   : > { %v7910_v56 = vunpack.i.h.bf16 %v7908_v26  ;;  %v7909_v58 = vunpack.i.l.bf16 %v7908_v26 }
0x1221   : > { %7544 = vmatpush3.bf16.msk.msra.mxu1 %vm9019_vm15, %v7539_v0  ;;  %vm5383_vm15 = vcmp.eq.s32.totalorder %v8396_v57, %v5379_v33 }
0x1222   : > { %7546 = vmatprep.subr.bf16.mxu1 %v7545_v17  ;;  %v7565_v32 = vpack.c.bf16 %v7910_v56, %v7909_v58 }
0x1224   : > { %7200 = vmatmul.mubr.msk.f32.vlgmr.msra.gmra.mrb[18].mxu1 %vm2810_vm8, %v4321_v52 }
0x1225   : > { %7548 = vmatpush3.bf16.msra.mxu1 %v7545_v17  ;;  %7210 = vmatprep.mubr.msk.f32.mxu1 %vm2810_vm8, %v6557_v46 }
0x1226   : > { %7550 = vmatprep.subr.bf16.mxu1 %v7549_v19 }
0x1229   : > { %7552 = vmatpush3.bf16.msra.mxu1 %v7549_v19 }
0x122a   : > { %7554 = vmatprep.subr.bf16.mxu1 %v7553_v55 }
0x122c   : > { %7211 = vmatmul.mubr.msk.f32.vlgmr.msra.gmra.mrb[18].mxu1 %vm2810_vm8, %v6558_v11 }
0x122d   : > { %7556 = vmatpush3.bf16.msra.mxu1 %v7553_v55  ;;  %7221 = vmatprep.mubr.msk.f32.mxu1 %vm2810_vm8, %v6561_v7  ;;  %v7935_v7 = vunpack.i.h.bf16 %v9061_v27  ;;  %v6584_v27 = vld [vmem:[%s9358_s19 + $0x10] sm:$0xff] }
0x122e   : > { %7558 = vmatprep.subr.bf16.mxu1 %v7557_v22 }
0x122f   : > { %v7592_v13 = vpack.c.bf16 %v7935_v7, %v7934_v12 }
0x1230   : > { %v4807_v37 = vpop.permute.xlu0 %4806 }
0x1231   : > { %7560 = vmatpush3.bf16.msra.mxu1 %v7557_v22 }
0x1232   : > { %7562 = vmatprep.subr.bf16.mxu1 %v7561_v28 }
0x1234   : > { %7222 = vmatmul.mubr.msk.f32.vlgmr.msra.gmra.mrb[18].mxu1 %vm2810_vm8, %v6562_v30  ;;  %v6588_v30 = vld [vmem:[%s9358_s19 + $0x20] sm:$0xff] }
0x1235   : > { %7564 = vmatpush3.bf16.msra.mxu1 %v7561_v28  ;;  %7232 = vmatprep.mubr.msk.f32.mxu1 %vm2810_vm8, %v6565_v8  ;;  %v5376_v8 = vmul.u32 2, %v8409_v62 }
0x1236   : > { %7566 = vmatprep.subr.bf16.mxu1 %v7565_v32 }
0x1239   : > { %7568 = vmatpush3.bf16.msra.mxu1 %v7565_v32  ;;  %v5378_v32 = vmul.u32 2, %v8433_v3 }
0x123a   : > { %7597 = vmatprep.subr.bf16.mxu1 %v8124_v6 }
0x123c   : > { %7233 = vmatmul.mubr.msk.f32.vlgmr.msra.gmra.mrb[18].mxu1 %vm2810_vm8, %v6566_v35 }
0x123d   : > { %7599 = vmatpush3.bf16.msra.mxu1 %v7598_v36  ;;  %7290 = vmatprep.mubr.msk.f32.mxu1 %vm8123_vm0, %v8122_v5 }
0x123e   : > { %7600 = vmatprep.subr.bf16.mxu1 %v8124_v6 }
0x130f   : > { %v7234_v38 = vpop.f32.mrb[18].mxu1 }
0x1310   : > { %v4810_v23 = vadd.f32 %v7234_v38, %v4807_v37  ;;  %v4786_v0 = vpop.f32.mrb[19].mxu1 }
0x1311   : > { %v4809_v42 = vadd.f32 %v8978_v9, %v4786_v0 }
0x1312   : > { %v4812_v44 = vmax.f32 %v4810_v23, 0.0 }
0x1313   : > { %v4811_v43 = vmax.f32 %v4809_v42, 0.0 }
0x1315   : > { %7246 = vmatprep.mubr.msk.f32.mxu0 %vm2810_vm8, %v4811_v43 }
0x1316   : > { %7247 = vmatmul.mubr.msk.f32.gmra.mrb[20].mxu0 %vm2810_vm8, %v4812_v44 }
0x1317   : > { %7257 = vmatprep.mubr.msk.f32.mxu0 %vm8123_vm0, %v8122_v5 }
0x13e9   : > { %v7248_v45 = vpop.f32.mrb[20].mxu0 }
0x13ea   : > { %v4905_v47 = vpop.f32.mrb[21].mxu0 }
0x13eb   : > { %v7916_v60 = vpack.i.bf16 %v7248_v45, %v4905_v47 }
0x13ed   : > { %7917 = vrot.lane.b32.xlu0 %v7916_v60, %s9441_s6 }
0x145f   : > { %v7918_v18 = vpop.permute.xlu0 %7917 }
0x1460   : > { %v7920_v20 = vunpack.i.h.bf16 %v7918_v18  ;;  %v7919_v48 = vunpack.i.l.bf16 %v7918_v18 }
0x1462   : > { %v4933_v49 = vsel %vm1252_vm10, 0.0, %v7920_v20  ;;  %v4932_v9 = vsel %vm1252_vm10, 0.0, %v7919_v48 }
0x1463   : > { %v4938_v40 = vsel %vm4934_vm5, %v4933_v49, 0.0  ;;  %v4937_v2 = vsel %vm4934_vm5, %v4932_v9, 0.0  ;;  %v7588_v17 = vpack.c.bf16 %v4933_v49, %v4932_v9 }
0x1464   : > { %v7951_v50 = vpack.i.bf16 %v4938_v40, %v4937_v2 }
0x1466   : > { %7952 = vrot.lane.b32.xlu1 %v7951_v50, %s9447_s0  ;;  %7927 = vrot.lane.b32.xlu0 %v7951_v50, %s9443_s9 }
0x146a   : > { %5371 = vperm.xlu1 %7760, %v5368_v51   ;;  %7942 = vrot.lane.b32.xlu0 %v7951_v50, %s9446_s29 }
0x146e   : > { %7947 = vrot.lane.b32.xlu0 %v8992_v25, %s9444_s27  ;;  %v6577_v25 = vld [vmem:[%s9358_s19 + $0x8] sm:$0xff] }
0x1472   : > { %7957 = vrot.lane.b32.xlu0 %v7951_v50, %s9444_s27 }
0x14d8   : > { %v7953_v52 = vpop.permute.xlu1 %7952  ;;  %v7928_v46 = vpop.permute.xlu0 %7927 }
0x14d9   : > { %v7955_v53 = vunpack.i.h.bf16 %v7953_v52  ;;  %v7954_v16 = vunpack.i.l.bf16 %v7953_v52  ;;  %v7930_v19 = vunpack.i.h.bf16 %v7928_v46  ;;  %v7929_v54 = vunpack.i.l.bf16 %v7928_v46  ;;  %v5998_v46 = vld [vmem:[%s931_s28] sm:$0xff] }
0x14db   : > { %v7601_v55 = vpack.c.bf16 %v7955_v53, %v7954_v16  ;;  %v7581_v59 = vpack.c.bf16 %v7930_v19, %v7929_v54  ;;  %v5910_v53 = vld [vmem:[%s9357_s18] sm:$0xff]  ;;  %v5999_v19 = vld [vmem:[%s931_s28 + $0x8] sm:$0xf]  ;;  %s6616_s28 = sshll.u32 %s8301_s3, 5 }
0x14dc   : > { %v7943_v11 = vpop.permute.xlu0 %7942  ;;  %v5919_v54 = vld [vmem:[%s9365_s26] sm:$0x7] }
0x14dd   : > { %7582 = vmatpush3.bf16.msra.mxu0 %v7581_v59  ;;  %7602 = vmatpush3.bf16.msra.mxu1 %v7601_v55  ;;  %v7945_v14 = vunpack.i.h.bf16 %v7943_v11 }
0x14de   : > { %7583 = vmatprep.subr.bf16.mxu0 %v8124_v6  ;;  %7610 = vmatprep.subr.msk.bf16.mxu1 %vm8793_vm6, %v8131_v1 }
0x14e0   : > { %7291 = vmatmul.mubr.msk.f32.vlgmr.msra.gmra.mrb[20].mxu1 %vm2810_vm8, %v6586_v10  ;;  %7258 = vmatmul.mubr.msk.f32.vlgmr.msra.gmra.mrb[22].mxu0 %vm2810_vm8, %v6577_v25 }
0x14e1   : > { %7586 = vmatpush3.bf16.msk.msra.mxu0 %vm7585_vm4, %v7584_v24  ;;  %7320 = vmatprep.mubr.msk.f32.mxu1 %vm2249_vm7, %v1791_v41  ;;  %v7948_v41 = vpop.permute.xlu0 %7947  ;;  %v7944_v24 = vunpack.i.l.bf16 %v7943_v11 }
0x14e2   : > { %7587 = vmatprep.subr.bf16.mxu0 %v8124_v6  ;;  %7268 = vmatprep.mubr.msk.f32.mxu0 %vm8123_vm0, %v8122_v5  ;;  %v7950_v15 = vunpack.i.h.bf16 %v7948_v41  ;;  %v7949_v22 = vunpack.i.l.bf16 %v7948_v41 }
0x14e3   : > { %7612 = vmatpush3.bf16.msk.msra.mxu1 %vm8793_vm6, %v8131_v1  ;;  %v7595_v29 = vpack.c.bf16 %v7945_v14, %v7944_v24  ;;  %vm5380_vm6 = vcmp.eq.s32.totalorder %v8396_v57, %v5376_v8 }
0x14e4   : > { %7614 = vmatprep.subr.msk.bf16.mxu1 %vm8945_vm9, %v8131_v1  ;;  %v7604_v61 = vpack.c.bf16 %v7950_v15, %v7949_v22 }
0x14e5   : > { %7590 = vmatpush3.bf16.msk.msra.mxu0 %vm7585_vm4, %v7588_v17  ;;  %v7958_v26 = vpop.permute.xlu0 %7957 }
0x14e6   : > { %7591 = vmatprep.subr.bf16.mxu0 %v8124_v6  ;;  %v7960_v28 = vunpack.i.h.bf16 %v7958_v26  ;;  %v7959_v56 = vunpack.i.l.bf16 %v7958_v26 }
0x14e7   : > { %7616 = vmatpush3.bf16.msk.msra.mxu1 %vm8945_vm9, %v8131_v1  ;;  %vm5381_vm9 = vcmp.eq.s32.totalorder %v8396_v57, %v5377_v31 }
0x14e8   : > { %7269 = vmatmul.mubr.msk.f32.vlgmr.msra.gmra.mrb[24].mxu0 %vm2810_vm8, %v4939_v39  ;;  %v7607_v58 = vpack.c.bf16 %v7960_v28, %v7959_v56  ;;  %vm7617_vm5 = vmpackc.low %vm5381_vm9, %vm5380_vm6  ;;  %vm5478_vm6 = vcmask 7168  }
0x14e9   : > { %7593 = vmatpush3.bf16.msra.mxu0 %v7592_v13  ;;  %7279 = vmatprep.mubr.msk.f32.mxu0 %vm8123_vm0, %v8122_v5  ;;  %v5372_v44 = vpop.permute.xlu1 %5371 }
0x14ea   : > { %7594 = vmatprep.subr.bf16.mxu0 %v8124_v6  ;;  %7618 = vmatprep.subr.msk.bf16.mxu1 %vm7617_vm5, %v8131_v1 }
0x14eb   : > { %7620 = vmatpush3.bf16.msk.msra.mxu1 %vm7617_vm5, %v8131_v1 }
0x14ed   : > { %7596 = vmatpush3.bf16.msra.mxu0 %v7595_v29 }
0x14ee   : > { %7603 = vmatprep.subr.bf16.mxu0 %v8124_v6 }
0x14f0   : > { %7280 = vmatmul.mubr.msk.f32.vlgmr.msra.gmra.mrb[26].mxu0 %vm2810_vm8, %v6584_v27  ;;  %v6600_v27 = vld [vmem:[%s9356_s17 + $0x8] sm:$0xff] }
0x14f1   : > { %7605 = vmatpush3.bf16.msra.mxu0 %v7604_v61  ;;  %7301 = vmatprep.mubr.msk.f32.mxu0 %vm8123_vm0, %v8122_v5 }
0x14f2   : > { %7606 = vmatprep.subr.bf16.mxu0 %v8124_v6 }
0x14f5   : > { %7608 = vmatpush3.bf16.msra.mxu0 %v7607_v58 }
0x14f6   : > { %7625 = vmatprep.subr.bf16.mxu0 %v8124_v6 }
0x14f8   : > { %7302 = vmatmul.mubr.msk.f32.vlgmr.msra.gmra.mrb[28].mxu0 %vm2810_vm8, %v6588_v30  ;;  %vm5382_vm8 = vcmp.eq.s32.totalorder %v8396_v57, %v5378_v32 }
0x14f9   : > { %7327 = vmatprep.mubr.msk.f32.mxu0 %vm8123_vm0, %v8122_v5  ;;  %vm7621_vm4 = vmpackc.low %vm5383_vm15, %vm5382_vm8 }
0x14fa   : > { %7622 = vmatprep.subr.msk.bf16.mxu1 %vm7621_vm4, %v8131_v1 }
0x14fb   : > { %7624 = vmatpush3.bf16.msk.msra.mxu1 %vm7621_vm4, %v8131_v1 }
0x14fc   : > { %7638 = vmatprep.subr.bf16.mxu1 %v8124_v6 }
0x15b3   : > { %v5027_v62 = vpop.f32.mrb[22].mxu0  ;;  %v5275_v63 = vpop.f32.mrb[20].mxu1 }
0x15b4   : > { %v7259_v34 = vpop.f32.mrb[23].mxu0  ;;  %v7292_v35 = vpop.f32.mrb[21].mxu1 }
0x15bb   : > { %v5100_v36 = vpop.f32.mrb[24].mxu0 }
0x15bc   : > { %v5101_v37 = vadd.f32 %v5100_v36, %v5027_v62  ;;  %v7270_v3 = vpop.f32.mrb[25].mxu0 }
0x15c3   : > { %v5187_v38 = vpop.f32.mrb[26].mxu0 }
0x15c4   : > { %v5191_v4 = vadd.f32 %v5187_v38, %v5101_v37  ;;  %v7281_v23 = vpop.f32.mrb[27].mxu0 }
0x15c6   : > { %v5279_v0 = vadd.f32 %v5275_v63, %v5191_v4  ;;  %v6607_v4 = vld [vmem:[%s9356_s17 + $0x10] sm:$0xff] }
0x15cb   : > { %v5363_v42 = vpop.f32.mrb[28].mxu0 }
0x15cc   : > { %v5367_v57 = vadd.f32 %v5363_v42, %v5279_v0  ;;  %v7303_v43 = vpop.f32.mrb[29].mxu0 }
0x15cd   : > { %v6609_v43 = vld [vmem:[%s9356_s17 + $0x18] sm:$0xff] }
0x15ce   : > { %v5374_v45 = vadd.f32 %v5372_v44, %v5367_v57  ;;  %v6611_v44 = vld [vmem:[%s9356_s17 + $0x20] sm:$0xff] }
0x15d0   : > { %v5375_v47 = vmax.f32 %v5374_v45, 0.0 }
0x15d2   : > { %7321 = vmatmul.mubr.msk.f32.vlgmr.msra.gmra.mrb[22].mxu1 %vm2249_vm7, %v5375_v47 }
0x15d3   : > { %7355 = vmatprep.mubr.msk.f32.mxu1 %vm8123_vm0, %v8122_v5 }
0x16a5   : > { %v7322_v1 = vpop.f32.mrb[22].mxu1 }
0x16a6   : > { %v5459_v60 = vpop.f32.mrb[23].mxu1 }
0x16a7   : > { %v7961_v18 = vpack.i.bf16 %v7322_v1, %v5459_v60  ;;  %v8024_v1 = vld [vmem:[%s9422_s10] ss:$0 sm:$0xff]  ;;  %s8029_s10 = sshll.u32 %s8133_s1, 4  ;;  %s8030_s10 = int_to_ptr.vmem [resolvable:$false] %s8029_s10 }
0x16a8   : > { %s8031_s14 = scalar_lea.vmem %s8030_s10, 32 }
0x16a9   : > { %7962 = vrot.lane.b32.xlu0 %v7961_v18, %s9441_s6  ;;  %s6615_s6 = sshll.u32 %s8301_s3, 4 }
0x171b   : > { %v7963_v20 = vpop.permute.xlu0 %7962 }
0x171c   : > { %v7965_v48 = vunpack.i.h.bf16 %v7963_v20  ;;  %v7964_v49 = vunpack.i.l.bf16 %v7963_v20 }
0x171e   : > { %v5477_v9 = vsel %vm1252_vm10, 0.0, %v7965_v48  ;;  %v5480_v40 = vsel %vm5478_vm6, %v7965_v48, 0.0  ;;  %v5476_v2 = vsel %vm1252_vm10, 0.0, %v7964_v49  ;;  %v5479_v17 = vsel %vm5478_vm6, %v7964_v49, 0.0  ;;  %vm7630_vm10 = vmpackc.low %vm8483_vm13, %vm8483_vm13 }
0x171f   : > { %v7629_v50 = vpack.c.bf16 %v7965_v48, %v7964_v49  ;;  %v7971_v51 = vpack.i.bf16 %v5480_v40, %v5477_v9  ;;  %v7966_v52 = vpack.i.bf16 %v5479_v17, %v5476_v2 }
0x1721   : > { %7972 = vrot.lane.b32.xlu0 %v7971_v51, %s9443_s9  ;;  %7967 = vrot.lane.b32.xlu1 %v7966_v52, %s9443_s9 }
0x1725   : > { %7977 = vrot.lane.b32.xlu0 %v7971_v51, %s9446_s29  ;;  %7987 = vrot.lane.b32.xlu1 %v7966_v52, %s9446_s29  ;;  %s9459_s29 = sld [smem:[#allocation20_spill]] }
0x1729   : > { %7982 = vrot.lane.b32.xlu0 %v7971_v51, %s9447_s0  ;;  %7992 = vrot.lane.b32.xlu1 %v7966_v52, %s9447_s0 }
0x172b   : > { %s944_s8 = scalar_lea.vmem %s9459_s29, %s8334_s4  ;;  %s9253_s4 = sand.u32 1, %s8111_s5  }
0x172c   : > { %v6092_v16 = vld [vmem:[%s944_s8] sm:$0xff]  ;;  %v6093_v55 = vld [vmem:[%s944_s8 + $0x8] sm:$0x1]  ;;  %s910_s13 = scalar_lea.vmem [#allocation2], %s9253_s4  ;;  %s9460_s29 = sld [smem:[#allocation29_spill]] }
0x172d   : > { %8002 = vrot.lane.b32.xlu0 %v7971_v51, %s9444_s27  ;;  %7997 = vrot.lane.b32.xlu1 %v7966_v52, %s9444_s27  ;;  %s6371_s27 = sshll.u32 %s9253_s4, 1  ;;  %s6207_s11 = sshll.u32 %s910_s13, 4  ;;  %s9267_s11 = int_to_ptr.vmem [resolvable:$true] %s6207_s11 }
0x172e   : > { %s9259_s7 = scalar_lea.vmem [#allocation4], %s6371_s27  ;;  %s9272_s27 = scalar_lea.hbm %s9461_s12, %s6616_s28 }
0x172f   : > { %s6220_s30 = sshll.u32 %s9259_s7, 4  ;;  %s6190_s9 = scalar_lea.sflag [#allocation3], %s9253_s4  ;;  %s9274_s30 = int_to_ptr.vmem [resolvable:$true] %s6220_s30 }
0x1730   : > { %p8032_p0 = scmp.lt.s32.totalorder %s9267_s11, %s8030_s10 }
0x1731   : > { %6002 = vperm.xlu0 %7759, %v5998_v46   ;;  %5913 = vperm.xlu1 %7760, %v5910_v53  }
0x1732   : > { %s9265_s8 = scalar_lea.hbm %s9460_s29, %s6615_s6  ;;  %s8025_s6 = scalar_lea.vmem %s9267_s11, 16 }
0x1733   : > { %p8026_p11 = scmp.ne.s32.totalorder %s9267_s11, %s8025_s6  ;;  %p8033_p1 = scmp.lt.s32.totalorder %s8031_s14, %s8025_s6 }
0x1735   : > { %6096 = vperm.xlu0 %7759, %v6092_v16   ;;  %6007 = vperm.xlu1 %7760, %v5999_v19   ;;  %p8027_p12 = pnand %p8026_p11, %p8318_p5  ;;  %p8034_p2 = por %p8033_p1, %p8032_p0 }
0x1737   : > { %p8028_p13 = pneg %p8027_p12 }
0x1739   : > { %5922 = vperm.xlu0 %7759, %v5919_v54   ;;  %6101 = vperm.xlu1 %7760, %v6093_v55   ;;  %p8035_p3 = pnand %p8034_p2, %p8028_p13 }
0x1793   : > { %v7973_v59 = vpop.permute.xlu0 %7972  ;;  %v7968_v10 = vpop.permute.xlu1 %7967 }
0x1794   : > { %v7975_v25 = vunpack.i.h.bf16 %v7973_v59  ;;  %v7974_v11 = vunpack.i.l.bf16 %v7973_v59  ;;  %v7970_v7 = vunpack.i.h.bf16 %v7968_v10  ;;  %v7969_v12 = vunpack.i.l.bf16 %v7968_v10 }
0x1796   : > { %v5497_v39 = vsel %vm1264_vm11, %v7974_v11, %v7975_v25  ;;  %v5496_v41 = vsel %vm1264_vm11, %v7969_v12, %v7970_v7  ;;  %vm6187_vm11 = vcmask 66560  }
0x1797   : > { %v7626_v13 = vpack.c.bf16 %v5497_v39, %v5496_v41  ;;  %v7978_v14 = vpop.permute.xlu0 %7977  ;;  %v7988_v24 = vpop.permute.xlu1 %7987 }
0x1798   : > { %v7980_v29 = vunpack.i.h.bf16 %v7978_v14  ;;  %v7979_v15 = vunpack.i.l.bf16 %v7978_v14  ;;  %v7990_v22 = vunpack.i.h.bf16 %v7988_v24  ;;  %v7989_v26 = vunpack.i.l.bf16 %v7988_v24 }
0x1799   : > { %7627 = vmatpush3.bf16.msra.mxu0 %v7626_v13 }
0x179a   : > { %7628 = vmatprep.subr.bf16.mxu0 %v8124_v6  ;;  %v5657_v61 = vsel %vm1420_vm14, %v7979_v15, %v7980_v29  ;;  %v5656_v28 = vsel %vm1420_vm14, %v7989_v26, %v7990_v22 }
0x179b   : > { %v7983_v56 = vpop.permute.xlu0 %7982  ;;  %v7993_v58 = vpop.permute.xlu1 %7992  ;;  %v7633_v33 = vpack.c.bf16 %v5657_v61, %v5656_v28 }
0x179c   : > { %v7985_v30 = vunpack.i.h.bf16 %v7983_v56  ;;  %v7984_v8 = vunpack.i.l.bf16 %v7983_v56  ;;  %v7995_v31 = vunpack.i.h.bf16 %v7993_v58  ;;  %v7994_v32 = vunpack.i.l.bf16 %v7993_v58  ;;  %7328 = vmatmul.mubr.msk.f32.vlgmr.msra.gmra.mrb[30].mxu0 %vm2359_vm1, %v6600_v27 }
0x179d   : > { %7631 = vmatpush3.bf16.msk.msra.mxu0 %vm7630_vm10, %v7629_v50  ;;  %7334 = vmatprep.mubr.msk.f32.mxu0 %vm8123_vm0, %v8122_v5 }
0x179e   : > { %7632 = vmatprep.subr.bf16.mxu0 %v8124_v6  ;;  %v5745_v62 = vsel %vm1503_vm2, %v7984_v8, %v7985_v30  ;;  %v5744_v63 = vsel %vm1503_vm2, %v7994_v32, %v7995_v31  ;;  %v5918_v30 = vld [vmem:[%s9364_s25] sm:$0x7] }
0x179f   : > { %v8003_v34 = vpop.permute.xlu0 %8002  ;;  %v7998_v35 = vpop.permute.xlu1 %7997  ;;  %v7636_v42 = vpack.c.bf16 %v5745_v62, %v5744_v63 }
0x17a0   : > { %v8005_v36 = vunpack.i.h.bf16 %v8003_v34  ;;  %v8004_v37 = vunpack.i.l.bf16 %v8003_v34  ;;  %v8000_v3 = vunpack.i.h.bf16 %v7998_v35  ;;  %v7999_v38 = vunpack.i.l.bf16 %v7998_v35  ;;  %7335 = vmatmul.mubr.msk.f32.vlgmr.msra.gmra.mrb[32].mxu0 %vm2359_vm1, %v5481_v21 }
0x17a1   : > { %7634 = vmatpush3.bf16.msra.mxu0 %v7633_v33  ;;  %7341 = vmatprep.mubr.msk.f32.mxu0 %vm8123_vm0, %v8122_v5 }
0x17a2   : > { %v5833_v23 = vsel %vm1586_vm3, %v8004_v37, %v8005_v36  ;;  %v5832_v0 = vsel %vm1586_vm3, %v7999_v38, %v8000_v3  ;;  %7635 = vmatprep.subr.bf16.mxu0 %v8124_v6 }
0x17a3   : > { %v7639_v57 = vpack.c.bf16 %v5833_v23, %v5832_v0 }
0x17a4   : > { %7342 = vmatmul.mubr.msk.f32.vlgmr.msra.gmra.mrb[34].mxu0 %vm2359_vm1, %v6607_v4 }
0x17a5   : > { %7637 = vmatpush3.bf16.msra.mxu0 %v7636_v42  ;;  %7640 = vmatpush3.bf16.msra.mxu1 %v7639_v57 }
0x17a6   : > { %7348 = vmatprep.mubr.msk.f32.mxu0 %vm8123_vm0, %v8122_v5  ;;  %7641 = vmatprep.subr.bf16.mxu1 %v8124_v6 }
0x17a7   : > { %7358 = vmatprep.subr.mxu0 %v8122_v5 }
0x17a8   : > { %7349 = vmatmul.mubr.msk.f32.vlgmr.msra.gmra.mrb[36].mxu0 %vm2359_vm1, %v6609_v43  ;;  %7356 = vmatmul.mubr.msk.f32.vlgmr.msra.gmra.mrb[24].mxu1 %vm2359_vm1, %v6611_v44 }
0x17a9   : > { %7360 = vmatprep.mubr.msk.f32.mxu0 %vm8123_vm0, %v8122_v5  ;;  %7367 = vmatprep.mubr.msk.f32.mxu1 %vm8123_vm0, %v8122_v5 }
0x17b0   : > { %v6003_v45 = vpop.permute.xlu0 %6002  ;;  %v5914_v47 = vpop.permute.xlu1 %5913 }
0x17b1   : > { %v6010_v60 = vsub.f32 %v6003_v45, %v8024_v1 }
0x17b3   : > { %v6012_v18 = vmul.f32 %v6010_v60, %v6010_v60 }
0x17b4   : > { %v6008_v20 = vpop.permute.xlu1 %6007  ;;  %v6097_v53 = vpop.permute.xlu0 %6096 }
0x17b5   : > { %v6014_v48 = vmul.f32 -128.0, %v6012_v18  ;;  %v6011_v49 = vsub.f32 %v6008_v20, %v8024_v1  ;;  %v6104_v19 = vsub.f32 %v6097_v53, %v8024_v1 }
0x17b7   : > { %v6013_v9 = vmul.f32 %v6011_v49, %v6011_v49  ;;  %v6016_v40 = vmul.f32 1.442695, %v6014_v48  ;;  %v6106_v10 = vmul.f32 %v6104_v19, %v6104_v19 }
0x17b8   : > { %v6102_v46 = vpop.permute.xlu1 %6101  ;;  %v5923_v21 = vpop.permute.xlu0 %5922 }
0x17b9   : > { %v6015_v2 = vmul.f32 -128.0, %v6013_v9  ;;  %8016 = vpow2.f32 %v6016_v40  ;;  %v6105_v16 = vsub.f32 %v6102_v46, %v8024_v1  ;;  %v6108_v39 = vmul.f32 -128.0, %v6106_v10 }
0x17bb   : > { %v6018_v17 = vmul.f32 1.442695, %v6015_v2  ;;  %v6107_v55 = vmul.f32 %v6105_v16, %v6105_v16  ;;  %v6110_v29 = vmul.f32 1.442695, %v6108_v39 }
0x17bd   : > { %8018 = vpow2.f32 %v6018_v17  ;;  %v6109_v11 = vmul.f32 -128.0, %v6107_v55 }
0x17bf   : > { %v6112_v13 = vmul.f32 1.442695, %v6109_v11 }
0x17c1   : > { %8020 = vpow2.f32 %v6112_v13 }
0x17c2   : > { %8022 = vpow2.f32 %v6110_v29 }
0x17c3   : > { %v8017_v50 = vpop.eup %8016 }
0x17c7   : > { %v8019_v51 = vpop.eup %8018 }
0x17c8   : > { %v7642_v52 = vpack.c.bf16 %v8019_v51, %v8017_v50 }
0x17ca   : > { %7643 = vmatpush3.bf16.xpose.msra.mxu1 %v7642_v52 }
0x17cb   : > { %v8021_v8 = vpop.eup %8020 }
0x17cc   : > { %v8023_v31 = vpop.eup %8022 }
0x17cd   : > { %v7645_v32 = vpack.c.bf16 %v8021_v8, %v8023_v31 }
0x186f   : > { %v5569_v54 = vpop.f32.mrb[30].mxu0 }
0x1870   : > { %v7329_v59 = vpop.f32.mrb[31].mxu0 }
0x1873   : > { %v5642_v25 = vpop.f32.mrb[32].mxu0 }
0x1874   : > { %v5643_v7 = vadd.f32 %v5642_v25, %v5569_v54  ;;  %v7336_v12 = vpop.f32.mrb[33].mxu0 }
0x1877   : > { %v5729_v41 = vpop.f32.mrb[34].mxu0 }
0x1878   : > { %v5733_v14 = vadd.f32 %v5729_v41, %v5643_v7  ;;  %v7343_v24 = vpop.f32.mrb[35].mxu0 }
0x187b   : > { %v5817_v15 = vpop.f32.mrb[36].mxu0  ;;  %v5905_v22 = vpop.f32.mrb[24].mxu1 }
0x187c   : > { %v5821_v26 = vadd.f32 %v5817_v15, %v5733_v14  ;;  %v7350_v27 = vpop.f32.mrb[37].mxu0  ;;  %v7357_v61 = vpop.f32.mrb[25].mxu1 }
0x187e   : > { %v5909_v28 = vadd.f32 %v5905_v22, %v5821_v26 }
0x1880   : > { %v5916_v56 = vadd.f32 %v5914_v47, %v5909_v28 }
0x1882   : > { %v5917_v58 = vmax.f32 %v5916_v56, 0.0 }
0x1884   : > { %7359 = vmatpush3.msra.mxu0 %v5917_v58 }
0x1885   : > { %7361 = vmatmul.mubr.msk.f32.vlgmr.msra.gmra.mrb[38].mxu0 %vm1267_vm12, %v5918_v30  ;;  %7644 = vmatprep.subr.bf16.mxu0 %v8124_v6 }
0x1886   : > { %7374 = vmatprep.mubr.msk.f32.mxu0 %vm8123_vm0, %v8122_v5  ;;  %vm6090_vm0 = vcmask 90112  }
0x188b   : > { %7646 = vmatpush3.bf16.xpose.msra.mxu0 %v7645_v32 }
0x1958   : > { %v5994_v33 = vpop.f32.mrb[38].mxu0 }
0x1959   : > { %v5995_v62 = vadd.f32 %v5994_v33, %v5923_v21  ;;  %v7362_v63 = vpop.f32.mrb[39].mxu0 }
0x195b   : > { %v6115_v34 = vrot.slane %v5995_v62, 1  ;;  %7368 = vmatmul.mubr.f32.vlgmr.msra.gmra.mrb[26].mxu1 %v5995_v62 }
0x195d   : > { %7375 = vmatmul.mubr.f32.vlgmr.msra.gmra.mrb[40].mxu0 %v6115_v34 }
0x1a2e   : > { %v6086_v5 = vpop.f32.mrb[26].mxu1 }
0x1a2f   : > { %6091 = vst.msk [vmem:[%s910_s13] sm:$0x1] %vm6090_vm0, %v6086_v5  ;;  %v7369_v6 = vpop.f32.mrb[27].mxu1 }
0x1a30   : > { %v6183_v35 = vpop.f32.mrb[40].mxu0 }
0x1a31   : > { %8038 = shalt.err (!%p8035_p3)
}
0x1a32   : > { %s8039_s13 = scalar_lea.hbm %s9265_s8, 16  ;;  %s8043_s3 = scalar_lea.hbm %s9460_s29, 32 }
0x1a33   : > { %p8040_p4 = scmp.ne.s32.totalorder %s9265_s8, %s8039_s13  ;;  %p8044_p9 = scmp.lt.u32.totalorder %s9265_s8, %s9460_s29 }
0x1a34   : > { %p8045_p10 = scmp.lt.u32.totalorder %s8043_s3, %s8039_s13  ;;  %p8047_p12 = scmp.lt.u32.totalorder %s8039_s13, %s9265_s8 }
0x1a35   : > { %p8041_p7 = pnand %p8040_p4, %p8318_p5 }
0x1a36   : > { %p8046_p11 = por %p8045_p10, %p8044_p9 }
0x1a37   : > { %p8042_p8 = pneg %p8041_p7 }
0x1a38   : > { %p8048_p13 = por %p8047_p12, %p8046_p11 }
0x1a3a   : > { %p8049_p0 = pnand %p8048_p13, %p8042_p8 }
0x1a3c   : > { %8052 = shalt.err (!%p8049_p0)
}
0x1a3d   : > { %7703 = dma.vmem_to_hbm [thread:$0]  (%p8318_p5), %s9267_s11, 16, %s9265_s8, %s6190_s9   ;;  %6188 = vst.msk [vmem:[%s9259_s7] sm:$0x3] %vm6187_vm11, %v6183_v35  ;;  %v7376_v36 = vpop.f32.mrb[41].mxu0 }
0x1a3e   : > { %s6194_s14 = scalar_lea.sflag [#allocation5], %s9253_s4  ;;  %s8053_s6 = scalar_lea.vmem %s9274_s30, 32 }
0x1a3f   : > { %p8054_p1 = scmp.ne.s32.totalorder %s9274_s30, %s8053_s6  ;;  %s8134_s13 = smov [#allocation4]  }
0x1a40   : > { %s8057_s28 = sshll.u32 %s8134_s13, 4  ;;  %s8058_s28 = int_to_ptr.vmem [resolvable:$false] %s8057_s28 }
0x1a41   : > { %p8055_p2 = pnand %p8054_p1, %p8318_p5  ;;  %s8059_s0 = scalar_lea.vmem %s8058_s28, 64 }
0x1a42   : > { %p8060_p4 = scmp.lt.s32.totalorder %s9274_s30, %s8058_s28  ;;  %p8061_p7 = scmp.lt.s32.totalorder %s8059_s0, %s8053_s6 }
0x1a43   : > { %p8056_p3 = pneg %p8055_p2 }
0x1a44   : > { %p8062_p8 = por %p8061_p7, %p8060_p4 }
0x1a46   : > { %p8063_p9 = pnand %p8062_p8, %p8056_p3 }
0x1a48   : > { %8066 = shalt.err (!%p8063_p9)
}
0x1a49   : > { %s8067_s4 = scalar_lea.hbm %s9272_s27, 32  ;;  %s8071_s8 = scalar_lea.hbm %s9461_s12, 64 }
0x1a4a   : > { %p8068_p10 = scmp.ne.s32.totalorder %s9272_s27, %s8067_s4  ;;  %p8072_p13 = scmp.lt.u32.totalorder %s9272_s27, %s9461_s12 }
0x1a4b   : > { %p8073_p0 = scmp.lt.u32.totalorder %s8071_s8, %s8067_s4  ;;  %p8075_p2 = scmp.lt.u32.totalorder %s8067_s4, %s9272_s27 }
0x1a4c   : > { %p8069_p11 = pnand %p8068_p10, %p8318_p5 }
0x1a4d   : > { %p8074_p1 = por %p8073_p0, %p8072_p13 }
0x1a4e   : > { %p8070_p12 = pneg %p8069_p11 }
0x1a4f   : > { %p8076_p3 = por %p8075_p2, %p8074_p1 }
0x1a51   : > { %p8077_p4 = pnand %p8076_p3, %p8070_p12 }
0x1a53   : > { %8080 = shalt.err (!%p8077_p4)
}
0x1a54   : > { %7704 = dma.vmem_to_hbm [thread:$0]  (%p8318_p5), %s9274_s30, 32, %s9272_s27, %s6194_s14  }
0x1a55 PF: > { %s9462_s1 = sld [smem:[#allocation10_spill]]  ;;  %s9463_s10 = sld [smem:[#allocation8_spill]] }
0x1a5b   : > { %p7714_p7 = scmp.ge.s32.totalorder %s9462_s1, 2  ;;  %s6232_s13 = sand.u32 1, %s9463_s10  }
0x1a5c   : > { %s6233_s28 = scalar_lea.sflag [#allocation3], %s6232_s13 }
0x1a5d   : > { %p7708_p8 = pnand %p7714_p7, %p8322_p6 }
0x1a5f   : > { %8098 = dma.done.wait (!%p7708_p8), %s6233_s28, 16  }
0x1a60   : > { %8100 = vsyncadd (!%p7708_p8), %s6233_s28, 4294967280  ;;  %s6241_s0 = scalar_lea.sflag [#allocation5], %s6232_s13 }
0x1a61   : > { %8102 = dma.done.wait (!%p7708_p8), %s6241_s0, 32  }
0x1a62   : > { %8104 = vsyncadd (!%p7708_p8), %s6241_s0, 4294967264  ;;  %s9465_s30 = sld [smem:[#allocation11_spill]]  ;;  %s9466_s2 = sld [smem:[#allocation9_spill]] }
0x1a63   : > { %s9467_s9 = sld [smem:[#allocation12_spill]]  ;;  %s9468_s8 = smov %s8111_s5 }
0x1a68   : > { %p42_p5 = scmp.ge.s32.totalorder %s9465_s30, 4   ;;  %s9469_s5 = smov %s9466_s2 }
0x1a6a   :  { %44 = sbr.rel (!%p42_p5) target bundleno = 23 (0x17), region = 227 }
0x1a71   :  { %6246 = vsyncpa [#allocation3], 1 }
0x1a72   :  { %6248 = vsyncpa [#allocation3 + $0x1], 1 }
0x1a73   :  { %6249 = vsyncpa [#allocation5], 1 }
0x1a74   :  { %6251 = vsyncpa [#allocation5 + $0x1], 1 }

</bundles_post_ra>
